<compile_context>
chip_gen: v7x
topology: tpu7x:2x2x1
jax: 0.10.0
libtpu: 0.0.40
codegen_flags: <defaults>
</compile_context>

<pallas_src>
import jax
import jax.numpy as jnp
from jax.experimental import pallas as pl
from jax.experimental.pallas import tpu as pltpu

# ----------------------------- configuration -------------------------------
TEX_SIZE = 16      # cfg.MODEL.TEX_MAPPER.NUM_SIZE
TEX_CH = 8         # cfg.MODEL.TEX_MAPPER.NUM_CHANNELS
ALIGN_MID = 16     # cfg.MODEL.ALIGN_MODULE.MID_CHANNELS
NF0 = 8            # cfg.MODEL.RENDER_MODULE.NF0
NUM_DOWN = 2       # cfg.MODEL.RENDER_MODULE.NUM_DOWN


# --------------------------- in-kernel helpers ------------------------------
def _shift_flat(x, off):
    """shifted[:, p] = x[:, p + off] if 0 <= p + off < HW else 0 (static off)."""
    if off == 0:
        return x
    c, hw = x.shape
    zeros = jnp.zeros((c, abs(off)), x.dtype)
    if off > 0:
        return jnp.concatenate([x[:, off:], zeros], axis=1)
    return jnp.concatenate([zeros, x[:, : hw + off]], axis=1)


def _conv3x3_cf(x, w_t, b, masks, img_w, act=None):
    """Same-padded 3x3 conv in channels-first flattened layout.

    x:     (Cin, HW)  f32 activations (pixels on the lane axis)
    w_t:   (Cout, 9*Cin) bf16, K ordered as (tap, cin)
    b:     (Cout, 1) f32
    masks: (9, HW) bf16 {0,1} boundary masks (zero taps that fall off-image)
    Single fused im2col matmul, f32 accumulation on the MXU.
    """
    xb = x.astype(jnp.bfloat16)
    taps = []
    for k in range(9):
        dy, dx = k // 3 - 1, k % 3 - 1
        off = dy * img_w + dx
        taps.append(_shift_flat(xb, off) * masks[k:k + 1, :])
    patches = jnp.concatenate(taps, axis=0)                  # (9*Cin, HW) bf16
    acc = jnp.dot(w_t, patches, preferred_element_type=jnp.float32)
    acc = acc + b                                            # (Cout, HW) f32
    if act == "relu":
        acc = jnp.maximum(acc, 0.0)
    elif act == "tanh":
        acc = jnp.tanh(acc)
    return acc


def _bilinear_weight_matrix(u_row, v_row, s):
    """u_row, v_row: (1, HW) f32 uv coords in [0,1].

    Returns the (S*S, HW) bilinear weight matrix, built as the outer product
    of two S-wide one-hot weight vectors (factored construction)."""
    hw = u_row.shape[1]
    u = jnp.clip(u_row, 0.0, 1.0) * (s - 1)                  # x coordinate
    v = jnp.clip(v_row, 0.0, 1.0) * (s - 1)                  # y coordinate
    x0f = jnp.floor(u)
    y0f = jnp.floor(v)
    fx = u - x0f
    fy = v - y0f
    x0 = x0f.astype(jnp.int32)
    y0 = y0f.astype(jnp.int32)
    x1 = jnp.minimum(x0 + 1, s - 1)
    y1 = jnp.minimum(y0 + 1, s - 1)
    iota = jax.lax.broadcasted_iota(jnp.int32, (s, hw), 0)   # (S, HW)
    wx = jnp.where(iota == x0, 1.0 - fx, 0.0) + jnp.where(iota == x1, fx, 0.0)
    wy = jnp.where(iota == y0, 1.0 - fy, 0.0) + jnp.where(iota == y1, fy, 0.0)
    # wmat[y*S + x, p] = wy[y, p] * wx[x, p]
    return (wy[:, None, :] * wx[None, :, :]).reshape(s * s, hw)


# ------------------------------ fused kernel --------------------------------
def _make_render_kernel(h, w, s):
    w2, w4 = w // 2, w // 4

    def kernel(uv_ref, tex_ref, m0_ref, m1_ref, m2_ref,
               pa_ref, pb_ref, ub_ref, ua_ref,
               aw1_ref, ab1_ref, aw2_ref, ab2_ref,
               e0w_ref, e0b_ref, d1w_ref, d1b_ref, d2w_ref, d2b_ref,
               u1w_ref, u1b_ref, u2w_ref, u2b_ref, ow_ref, ob_ref,
               out_ref):
        uv = uv_ref[0]                                       # (2, HW) f32
        tex_t = tex_ref[...]                                 # (C, S*S) f32
        m0, m1, m2 = m0_ref[...], m1_ref[...], m2_ref[...]

        # 1) texture sample #1 (reference detaches uv; forward is identical,
        #    gradients would differ -> training-only concern).
        wmat1 = _bilinear_weight_matrix(uv[0:1, :], uv[1:2, :], s)
        neural1 = jnp.dot(tex_t, wmat1, preferred_element_type=jnp.float32)

        # 2) AlignModule: conv3x3+relu -> conv3x3, residual on uv, clamp.
        a_in = jnp.concatenate([uv, neural1], axis=0)        # (2+C, HW)
        a1 = _conv3x3_cf(a_in, aw1_ref[...], ab1_ref[...], m0, w, "relu")
        uv_off = _conv3x3_cf(a1, aw2_ref[...], ab2_ref[...], m0, w, None)
        aligned = jnp.clip(uv + uv_off, 0.0, 1.0)            # (2, HW)

        # 3) texture sample #2 at the aligned uv.
        wmat2 = _bilinear_weight_matrix(aligned[0:1, :], aligned[1:2, :], s)
        neural2 = jnp.dot(tex_t, wmat2, preferred_element_type=jnp.float32)

        # 4) rendering UNet (num_down = 2); pool / nearest-upsample are
        #    constant matmuls kept entirely in VMEM.
        e0 = _conv3x3_cf(neural2, e0w_ref[...], e0b_ref[...], m0, w, "relu")
        p1 = jnp.dot(e0, pa_ref[...], preferred_element_type=jnp.float32)
        d1 = _conv3x3_cf(p1, d1w_ref[...], d1b_ref[...], m1, w2, "relu")
        p2 = jnp.dot(d1, pb_ref[...], preferred_element_type=jnp.float32)
        d2 = _conv3x3_cf(p2, d2w_ref[...], d2b_ref[...], m2, w4, "relu")
        u1_in = jnp.concatenate(
            [jnp.dot(d2, ub_ref[...], preferred_element_type=jnp.float32), d1],
            axis=0)
        u1 = _conv3x3_cf(u1_in, u1w_ref[...], u1b_ref[...], m1, w2, "relu")
        u2_in = jnp.concatenate(
            [jnp.dot(u1, ua_ref[...], preferred_element_type=jnp.float32), e0],
            axis=0)
        u2 = _conv3x3_cf(u2_in, u2w_ref[...], u2b_ref[...], m0, w, "relu")
        rgb = _conv3x3_cf(u2, ow_ref[...], ob_ref[...], m0, w, "tanh")

        # 5) channel concat; (13, HW) is already NCHW once HW is unflattened.
        out_ref[0] = jnp.concatenate([rgb, neural2, aligned], axis=0)

    return kernel


# ------------------------------ host helpers --------------------------------
def _conv_boundary_masks(h, w):
    """(9, HW) bf16 {0,1} masks: tap k valid iff source pixel is in-image."""
    hw = h * w
    idx = jnp.arange(hw, dtype=jnp.int32)
    r = idx // w
    c = idx % w
    rows = []
    for k in range(9):
        dy, dx = k // 3 - 1, k % 3 - 1
        ok = (r + dy >= 0) & (r + dy < h) & (c + dx >= 0) & (c + dx < w)
        rows.append(ok)
    return jnp.stack(rows, axis=0).astype(jnp.bfloat16)


def _pool_up_matrices(h, w):
    """pool: (HW, HW/4) 2x2 average-pool matrix; up: (HW/4, HW) nearest."""
    hw = h * w
    h2, w2 = h // 2, w // 2
    idx = jnp.arange(hw, dtype=jnp.int32)
    parent = (idx // w // 2) * w2 + (idx % w) // 2
    onehot = (parent[:, None] == jnp.arange(h2 * w2)[None, :]).astype(jnp.float32)
    return onehot * 0.25, onehot.T


def _pack_conv(wt, b):
    """(3,3,Cin,Cout) f32 -> (Cout, 9*Cin) bf16  (K ordered (tap, cin));
       (Cout,) -> (Cout, 1) f32."""
    cin, cout = wt.shape[2], wt.shape[3]
    w_t = wt.reshape(9 * cin, cout).T.astype(jnp.bfloat16)
    return w_t, b.reshape(cout, 1).astype(jnp.float32)


# ------------------------------ parameter init ------------------------------
def init_params(key):
    ks = jax.random.split(key, 16)

    def conv_w(k, cin, cout):
        return jax.random.normal(k, (3, 3, cin, cout), jnp.float32) * 0.1

    p = {
        "texture": jax.random.uniform(ks[0], (TEX_SIZE, TEX_SIZE, TEX_CH),
                                      jnp.float32),
        "align_w1": conv_w(ks[1], 2 + TEX_CH, ALIGN_MID),
        "align_b1": jnp.zeros((ALIGN_MID,), jnp.float32),
        "align_w2": conv_w(ks[2], ALIGN_MID, 2),
        "align_b2": jnp.zeros((2,), jnp.float32),
        "enc0_w": conv_w(ks[3], TEX_CH, NF0),
        "enc0_b": jnp.zeros((NF0,), jnp.float32),
        "down1_w": conv_w(ks[4], NF0, NF0 * 2),
        "down1_b": jnp.zeros((NF0 * 2,), jnp.float32),
        "down2_w": conv_w(ks[5], NF0 * 2, NF0 * 4),
        "down2_b": jnp.zeros((NF0 * 4,), jnp.float32),
        "up1_w": conv_w(ks[6], NF0 * 4 + NF0 * 2, NF0 * 2),
        "up1_b": jnp.zeros((NF0 * 2,), jnp.float32),
        "up2_w": conv_w(ks[7], NF0 * 2 + NF0, NF0),
        "up2_b": jnp.zeros((NF0,), jnp.float32),
        "out_w": conv_w(ks[8], NF0, 3),
        "out_b": jnp.zeros((3,), jnp.float32),
    }
    return p


# ------------------------------- forward pass --------------------------------
@jax.jit
def render_net_forward(uv_map, params):
    """uv_map: (B, H, W, 2) in [0,1].  Returns NCHW (B, 3 + TEX_CH + 2, H, W)."""
    b, h, w, _ = uv_map.shape
    assert h % 4 == 0 and w % 4 == 0
    hw, hw4, hw16 = h * w, (h // 2) * (w // 2), (h // 4) * (w // 4)
    s, _, c = params["texture"].shape
    out_ch = 3 + c + 2

    # Lane-dense inputs: uv as (B, 2, HW); texture transposed to (C, S*S).
    uv_cf = jnp.transpose(uv_map.astype(jnp.float32),
                          (0, 3, 1, 2)).reshape(b, 2, hw)
    tex_t = params["texture"].reshape(s * s, c).T.astype(jnp.float32)

    m0 = _conv_boundary_masks(h, w)
    m1 = _conv_boundary_masks(h // 2, w // 2)
    m2 = _conv_boundary_masks(h // 4, w // 4)
    pool_a, up_a = _pool_up_matrices(h, w)              # HW  <-> HW/4
    pool_b, up_b = _pool_up_matrices(h // 2, w // 2)    # HW/4 <-> HW/16

    aw1, ab1 = _pack_conv(params["align_w1"], params["align_b1"])
    aw2, ab2 = _pack_conv(params["align_w2"], params["align_b2"])
    e0w, e0b = _pack_conv(params["enc0_w"], params["enc0_b"])
    d1w, d1b = _pack_conv(params["down1_w"], params["down1_b"])
    d2w, d2b = _pack_conv(params["down2_w"], params["down2_b"])
    u1w, u1b = _pack_conv(params["up1_w"], params["up1_b"])
    u2w, u2b = _pack_conv(params["up2_w"], params["up2_b"])
    ow, ob = _pack_conv(params["out_w"], params["out_b"])

    operands = [uv_cf, tex_t, m0, m1, m2, pool_a, pool_b, up_b, up_a,
                aw1, ab1, aw2, ab2, e0w, e0b, d1w, d1b, d2w, d2b,
                u1w, u1b, u2w, u2b, ow, ob]

    def const_spec(arr):
        shape = arr.shape
        return pl.BlockSpec(shape, lambda bi: (0,) * len(shape))

    in_specs = [pl.BlockSpec((1, 2, hw), lambda bi: (bi, 0, 0))]
    in_specs += [const_spec(a) for a in operands[1:]]

    # Rough advisory cost for XLA scheduling around the custom call.
    conv_cfg = [(2 + c, ALIGN_MID, hw), (ALIGN_MID, 2, hw), (c, NF0, hw),
                (NF0, 2 * NF0, hw4), (2 * NF0, 4 * NF0, hw16),
                (6 * NF0, 2 * NF0, hw4), (3 * NF0, NF0, hw), (NF0, 3, hw)]
    flops = b * (2 * 2 * c * s * s * hw
                 + sum(2 * 9 * ci * co * n for ci, co, n in conv_cfg))
    bytes_acc = int(sum(x.size * x.dtype.itemsize for x in operands)
                    + b * out_ch * hw * 4)
    cost = pl.CostEstimate(flops=int(flops), transcendentals=int(b * 3 * hw),
                           bytes_accessed=bytes_acc)

    out = pl.pallas_call(
        _make_render_kernel(h, w, s),
        out_shape=jax.ShapeDtypeStruct((b, out_ch, hw), jnp.float32),
        grid=(b,),
        in_specs=in_specs,
        out_specs=pl.BlockSpec((1, out_ch, hw), lambda bi: (bi, 0, 0)),
        compiler_params=pltpu.CompilerParams(
            dimension_semantics=("parallel",),
            vmem_limit_bytes=32 * 1024 * 1024),
        cost_estimate=cost,
    )(*operands)

    return out.reshape(b, out_ch, h, w)


# ----------------------------------- main -----------------------------------
if __name__ == "__main__":
    key = jax.random.PRNGKey(0)
    k_param, k_uv = jax.random.split(key)
    params = init_params(k_param)

    B, H, W = 2, 16, 16
    uv_map = jax.random.uniform(k_uv, (B, H, W, 2), jnp.float32)

    out = jax.block_until_ready(render_net_forward(uv_map, params))

    expected = (B, 3 + TEX_CH + 2, H, W)
    assert out.shape == expected, (out.shape, expected)
    assert jnp.all(jnp.isfinite(out))
    print("KERNEL_OK")
</pallas_src>

<mosaic_0001>
module attributes {stable_mosaic.version = 11 : i64} {
  func.func @kernel(%arg0: i32, %arg1: memref<1x2x256xf32, #tpu.memory_space<vmem>>, %arg2: memref<8x256xf32, #tpu.memory_space<vmem>>, %arg3: memref<9x256xbf16, #tpu.memory_space<vmem>>, %arg4: memref<9x64xbf16, #tpu.memory_space<vmem>>, %arg5: memref<9x16xbf16, #tpu.memory_space<vmem>>, %arg6: memref<256x64xf32, #tpu.memory_space<vmem>>, %arg7: memref<64x16xf32, #tpu.memory_space<vmem>>, %arg8: memref<16x64xf32, #tpu.memory_space<vmem>>, %arg9: memref<64x256xf32, #tpu.memory_space<vmem>>, %arg10: memref<16x90xbf16, #tpu.memory_space<vmem>>, %arg11: memref<16x1xf32, #tpu.memory_space<vmem>>, %arg12: memref<2x144xbf16, #tpu.memory_space<vmem>>, %arg13: memref<2x1xf32, #tpu.memory_space<vmem>>, %arg14: memref<8x72xbf16, #tpu.memory_space<vmem>>, %arg15: memref<8x1xf32, #tpu.memory_space<vmem>>, %arg16: memref<16x72xbf16, #tpu.memory_space<vmem>>, %arg17: memref<16x1xf32, #tpu.memory_space<vmem>>, %arg18: memref<32x144xbf16, #tpu.memory_space<vmem>>, %arg19: memref<32x1xf32, #tpu.memory_space<vmem>>, %arg20: memref<16x432xbf16, #tpu.memory_space<vmem>>, %arg21: memref<16x1xf32, #tpu.memory_space<vmem>>, %arg22: memref<8x216xbf16, #tpu.memory_space<vmem>>, %arg23: memref<8x1xf32, #tpu.memory_space<vmem>>, %arg24: memref<3x72xbf16, #tpu.memory_space<vmem>>, %arg25: memref<3x1xf32, #tpu.memory_space<vmem>>, %arg26: memref<1x13x256xf32, #tpu.memory_space<vmem>>) attributes {dimension_semantics = [#tpu.dimension_semantics<parallel>], iteration_bounds = array<i64: 2>, scalar_prefetch = 0 : i64, scratch_operands = 0 : i64, tpu.core_type = #tpu.core_type<tc>, window_params = [{transform_indices = @transform_0, window_bounds = array<i64: 1, 2, 256>}, {pipeline_mode = #tpu.pipeline_mode<synchronous>, transform_indices = @transform_1, window_bounds = array<i64: 8, 256>}, {pipeline_mode = #tpu.pipeline_mode<synchronous>, transform_indices = @transform_2, window_bounds = array<i64: 9, 256>}, {pipeline_mode = #tpu.pipeline_mode<synchronous>, transform_indices = @transform_3, window_bounds = array<i64: 9, 64>}, {pipeline_mode = #tpu.pipeline_mode<synchronous>, transform_indices = @transform_4, window_bounds = array<i64: 9, 16>}, {pipeline_mode = #tpu.pipeline_mode<synchronous>, transform_indices = @transform_5, window_bounds = array<i64: 256, 64>}, {pipeline_mode = #tpu.pipeline_mode<synchronous>, transform_indices = @transform_6, window_bounds = array<i64: 64, 16>}, {pipeline_mode = #tpu.pipeline_mode<synchronous>, transform_indices = @transform_7, window_bounds = array<i64: 16, 64>}, {pipeline_mode = #tpu.pipeline_mode<synchronous>, transform_indices = @transform_8, window_bounds = array<i64: 64, 256>}, {pipeline_mode = #tpu.pipeline_mode<synchronous>, transform_indices = @transform_9, window_bounds = array<i64: 16, 90>}, {pipeline_mode = #tpu.pipeline_mode<synchronous>, transform_indices = @transform_10, window_bounds = array<i64: 16, 1>}, {pipeline_mode = #tpu.pipeline_mode<synchronous>, transform_indices = @transform_11, window_bounds = array<i64: 2, 144>}, {pipeline_mode = #tpu.pipeline_mode<synchronous>, transform_indices = @transform_12, window_bounds = array<i64: 2, 1>}, {pipeline_mode = #tpu.pipeline_mode<synchronous>, transform_indices = @transform_13, window_bounds = array<i64: 8, 72>}, {pipeline_mode = #tpu.pipeline_mode<synchronous>, transform_indices = @transform_14, window_bounds = array<i64: 8, 1>}, {pipeline_mode = #tpu.pipeline_mode<synchronous>, transform_indices = @transform_15, window_bounds = array<i64: 16, 72>}, {pipeline_mode = #tpu.pipeline_mode<synchronous>, transform_indices = @transform_16, window_bounds = array<i64: 16, 1>}, {pipeline_mode = #tpu.pipeline_mode<synchronous>, transform_indices = @transform_17, window_bounds = array<i64: 32, 144>}, {pipeline_mode = #tpu.pipeline_mode<synchronous>, transform_indices = @transform_18, window_bounds = array<i64: 32, 1>}, {pipeline_mode = #tpu.pipeline_mode<synchronous>, transform_indices = @transform_19, window_bounds = array<i64: 16, 432>}, {pipeline_mode = #tpu.pipeline_mode<synchronous>, transform_indices = @transform_20, window_bounds = array<i64: 16, 1>}, {pipeline_mode = #tpu.pipeline_mode<synchronous>, transform_indices = @transform_21, window_bounds = array<i64: 8, 216>}, {pipeline_mode = #tpu.pipeline_mode<synchronous>, transform_indices = @transform_22, window_bounds = array<i64: 8, 1>}, {pipeline_mode = #tpu.pipeline_mode<synchronous>, transform_indices = @transform_23, window_bounds = array<i64: 3, 72>}, {pipeline_mode = #tpu.pipeline_mode<synchronous>, transform_indices = @transform_24, window_bounds = array<i64: 3, 1>}, {transform_indices = @transform_25, window_bounds = array<i64: 1, 13, 256>}]} {
    %c0 = arith.constant 0 : index
    %c0_0 = arith.constant 0 : index
    %c0_1 = arith.constant 0 : index
    %0 = vector.load %arg1[%c0, %c0_0, %c0_1] : memref<1x2x256xf32, #tpu.memory_space<vmem>>, vector<1x2x256xf32>
    %1 = vector.shape_cast %0 : vector<1x2x256xf32> to vector<2x256xf32>
    %c0_2 = arith.constant 0 : index
    %c0_3 = arith.constant 0 : index
    %2 = vector.load %arg2[%c0_2, %c0_3] : memref<8x256xf32, #tpu.memory_space<vmem>>, vector<8x256xf32>
    %c0_4 = arith.constant 0 : index
    %c0_5 = arith.constant 0 : index
    %3 = vector.load %arg3[%c0_4, %c0_5] : memref<9x256xbf16, #tpu.memory_space<vmem>>, vector<9x256xbf16>
    %c0_6 = arith.constant 0 : index
    %c0_7 = arith.constant 0 : index
    %4 = vector.load %arg4[%c0_6, %c0_7] : memref<9x64xbf16, #tpu.memory_space<vmem>>, vector<9x64xbf16>
    %c0_8 = arith.constant 0 : index
    %c0_9 = arith.constant 0 : index
    %5 = vector.load %arg5[%c0_8, %c0_9] : memref<9x16xbf16, #tpu.memory_space<vmem>>, vector<9x16xbf16>
    %6 = vector.extract_strided_slice %1 {offsets = [0, 0], sizes = [1, 256], strides = [1, 1]} : vector<2x256xf32> to vector<1x256xf32>
    %7 = vector.extract_strided_slice %1 {offsets = [1, 0], sizes = [1, 256], strides = [1, 1]} : vector<2x256xf32> to vector<1x256xf32>
    %cst = arith.constant 0.000000e+00 : f32
    %cst_10 = arith.constant 1.000000e+00 : f32
    %8 = vector.broadcast %cst : f32 to vector<1x256xf32>
    %9 = arith.maximumf %8, %6 : vector<1x256xf32>
    %10 = vector.broadcast %cst_10 : f32 to vector<1x256xf32>
    %11 = arith.minimumf %10, %9 : vector<1x256xf32>
    %cst_11 = arith.constant 1.500000e+01 : f32
    %12 = vector.broadcast %cst_11 : f32 to vector<1x256xf32>
    %13 = arith.mulf %11, %12 : vector<1x256xf32>
    %cst_12 = arith.constant 0.000000e+00 : f32
    %cst_13 = arith.constant 1.000000e+00 : f32
    %14 = vector.broadcast %cst_12 : f32 to vector<1x256xf32>
    %15 = arith.maximumf %14, %7 : vector<1x256xf32>
    %16 = vector.broadcast %cst_13 : f32 to vector<1x256xf32>
    %17 = arith.minimumf %16, %15 : vector<1x256xf32>
    %cst_14 = arith.constant 1.500000e+01 : f32
    %18 = vector.broadcast %cst_14 : f32 to vector<1x256xf32>
    %19 = arith.mulf %17, %18 : vector<1x256xf32>
    %20 = math.floor %13 : vector<1x256xf32>
    %21 = math.floor %19 : vector<1x256xf32>
    %22 = arith.subf %13, %20 : vector<1x256xf32>
    %23 = arith.subf %19, %21 : vector<1x256xf32>
    %24 = arith.fptosi %20 : vector<1x256xf32> to vector<1x256xi32>
    %25 = arith.fptosi %21 : vector<1x256xf32> to vector<1x256xi32>
    %c1_i32 = arith.constant 1 : i32
    %26 = vector.broadcast %c1_i32 : i32 to vector<1x256xi32>
    %27 = arith.addi %24, %26 : vector<1x256xi32>
    %c15_i32 = arith.constant 15 : i32
    %28 = vector.broadcast %c15_i32 : i32 to vector<1x256xi32>
    %29 = arith.minsi %27, %28 : vector<1x256xi32>
    %c1_i32_15 = arith.constant 1 : i32
    %30 = vector.broadcast %c1_i32_15 : i32 to vector<1x256xi32>
    %31 = arith.addi %25, %30 : vector<1x256xi32>
    %c15_i32_16 = arith.constant 15 : i32
    %32 = vector.broadcast %c15_i32_16 : i32 to vector<1x256xi32>
    %33 = arith.minsi %31, %32 : vector<1x256xi32>
    %34 = tpu.iota {dimensions = array<i32: 0>} : vector<16x256xi32>
    %35 = vector.broadcast %24 : vector<1x256xi32> to vector<16x256xi32>
    %36 = arith.cmpi eq, %34, %35 : vector<16x256xi32>
    %cst_17 = arith.constant 1.000000e+00 : f32
    %37 = vector.broadcast %cst_17 : f32 to vector<1x256xf32>
    %38 = arith.subf %37, %22 : vector<1x256xf32>
    %cst_18 = arith.constant 0.000000e+00 : f32
    %39 = vector.shape_cast %38 : vector<1x256xf32> to vector<1x256xf32>
    %40 = vector.broadcast %39 : vector<1x256xf32> to vector<16x256xf32>
    %41 = vector.broadcast %cst_18 : f32 to vector<16x256xf32>
    %42 = arith.select %36, %40, %41 : vector<16x256xi1>, vector<16x256xf32>
    %43 = vector.broadcast %29 : vector<1x256xi32> to vector<16x256xi32>
    %44 = arith.cmpi eq, %34, %43 : vector<16x256xi32>
    %cst_19 = arith.constant 0.000000e+00 : f32
    %45 = vector.shape_cast %22 : vector<1x256xf32> to vector<1x256xf32>
    %46 = vector.broadcast %45 : vector<1x256xf32> to vector<16x256xf32>
    %47 = vector.broadcast %cst_19 : f32 to vector<16x256xf32>
    %48 = arith.select %44, %46, %47 : vector<16x256xi1>, vector<16x256xf32>
    %49 = arith.addf %42, %48 : vector<16x256xf32>
    %50 = vector.broadcast %25 : vector<1x256xi32> to vector<16x256xi32>
    %51 = arith.cmpi eq, %34, %50 : vector<16x256xi32>
    %cst_20 = arith.constant 1.000000e+00 : f32
    %52 = vector.broadcast %cst_20 : f32 to vector<1x256xf32>
    %53 = arith.subf %52, %23 : vector<1x256xf32>
    %cst_21 = arith.constant 0.000000e+00 : f32
    %54 = vector.shape_cast %53 : vector<1x256xf32> to vector<1x256xf32>
    %55 = vector.broadcast %54 : vector<1x256xf32> to vector<16x256xf32>
    %56 = vector.broadcast %cst_21 : f32 to vector<16x256xf32>
    %57 = arith.select %51, %55, %56 : vector<16x256xi1>, vector<16x256xf32>
    %58 = vector.broadcast %33 : vector<1x256xi32> to vector<16x256xi32>
    %59 = arith.cmpi eq, %34, %58 : vector<16x256xi32>
    %cst_22 = arith.constant 0.000000e+00 : f32
    %60 = vector.shape_cast %23 : vector<1x256xf32> to vector<1x256xf32>
    %61 = vector.broadcast %60 : vector<1x256xf32> to vector<16x256xf32>
    %62 = vector.broadcast %cst_22 : f32 to vector<16x256xf32>
    %63 = arith.select %59, %61, %62 : vector<16x256xi1>, vector<16x256xf32>
    %64 = arith.addf %57, %63 : vector<16x256xf32>
    %65 = vector.shape_cast %64 : vector<16x256xf32> to vector<16x1x256xf32>
    %66 = vector.shape_cast %49 : vector<16x256xf32> to vector<1x16x256xf32>
    %67 = vector.broadcast %65 : vector<16x1x256xf32> to vector<16x16x256xf32>
    %68 = vector.broadcast %66 : vector<1x16x256xf32> to vector<16x16x256xf32>
    %69 = arith.mulf %67, %68 : vector<16x16x256xf32>
    %70 = vector.shape_cast %69 : vector<16x16x256xf32> to vector<256x256xf32>
    %cst_23 = arith.constant dense<0.000000e+00> : vector<8x256xf32>
    %71 = tpu.matmul %2, %70, %cst_23 {dimension_numbers = #tpu.dot_dimension_numbers<[1], [0], [0], [1], [0, 0, 1, 1], [], []>} : vector<8x256xf32>, vector<256x256xf32>, vector<8x256xf32> -> vector<8x256xf32>
    %72 = tpu.concatenate %1, %71 in 0 : vector<2x256xf32>, vector<8x256xf32> -> vector<10x256xf32>
    %c0_24 = arith.constant 0 : index
    %c0_25 = arith.constant 0 : index
    %73 = vector.load %arg10[%c0_24, %c0_25] : memref<16x90xbf16, #tpu.memory_space<vmem>>, vector<16x90xbf16>
    %c0_26 = arith.constant 0 : index
    %c0_27 = arith.constant 0 : index
    %74 = vector.load %arg11[%c0_26, %c0_27] : memref<16x1xf32, #tpu.memory_space<vmem>>, vector<16x1xf32>
    %75 = arith.truncf %72 : vector<10x256xf32> to vector<10x256xbf16>
    %cst_28 = arith.constant 0.000000e+00 : bf16
    %76 = vector.broadcast %cst_28 : bf16 to vector<10x17xbf16>
    %77 = vector.extract_strided_slice %75 {offsets = [0, 0], sizes = [10, 239], strides = [1, 1]} : vector<10x256xbf16> to vector<10x239xbf16>
    %78 = tpu.concatenate %76, %77 in 1 : vector<10x17xbf16>, vector<10x239xbf16> -> vector<10x256xbf16>
    %79 = vector.extract_strided_slice %3 {offsets = [0, 0], sizes = [1, 256], strides = [1, 1]} : vector<9x256xbf16> to vector<1x256xbf16>
    %80 = vector.broadcast %79 : vector<1x256xbf16> to vector<10x256xbf16>
    %81 = arith.mulf %78, %80 : vector<10x256xbf16>
    %cst_29 = arith.constant 0.000000e+00 : bf16
    %82 = vector.broadcast %cst_29 : bf16 to vector<10x16xbf16>
    %83 = vector.extract_strided_slice %75 {offsets = [0, 0], sizes = [10, 240], strides = [1, 1]} : vector<10x256xbf16> to vector<10x240xbf16>
    %84 = tpu.concatenate %82, %83 in 1 : vector<10x16xbf16>, vector<10x240xbf16> -> vector<10x256xbf16>
    %85 = vector.extract_strided_slice %3 {offsets = [1, 0], sizes = [1, 256], strides = [1, 1]} : vector<9x256xbf16> to vector<1x256xbf16>
    %86 = vector.broadcast %85 : vector<1x256xbf16> to vector<10x256xbf16>
    %87 = arith.mulf %84, %86 : vector<10x256xbf16>
    %cst_30 = arith.constant 0.000000e+00 : bf16
    %88 = vector.broadcast %cst_30 : bf16 to vector<10x15xbf16>
    %89 = vector.extract_strided_slice %75 {offsets = [0, 0], sizes = [10, 241], strides = [1, 1]} : vector<10x256xbf16> to vector<10x241xbf16>
    %90 = tpu.concatenate %88, %89 in 1 : vector<10x15xbf16>, vector<10x241xbf16> -> vector<10x256xbf16>
    %91 = vector.extract_strided_slice %3 {offsets = [2, 0], sizes = [1, 256], strides = [1, 1]} : vector<9x256xbf16> to vector<1x256xbf16>
    %92 = vector.broadcast %91 : vector<1x256xbf16> to vector<10x256xbf16>
    %93 = arith.mulf %90, %92 : vector<10x256xbf16>
    %cst_31 = arith.constant 0.000000e+00 : bf16
    %94 = vector.broadcast %cst_31 : bf16 to vector<10x1xbf16>
    %95 = vector.extract_strided_slice %75 {offsets = [0, 0], sizes = [10, 255], strides = [1, 1]} : vector<10x256xbf16> to vector<10x255xbf16>
    %96 = tpu.concatenate %94, %95 in 1 : vector<10x1xbf16>, vector<10x255xbf16> -> vector<10x256xbf16>
    %97 = vector.extract_strided_slice %3 {offsets = [3, 0], sizes = [1, 256], strides = [1, 1]} : vector<9x256xbf16> to vector<1x256xbf16>
    %98 = vector.broadcast %97 : vector<1x256xbf16> to vector<10x256xbf16>
    %99 = arith.mulf %96, %98 : vector<10x256xbf16>
    %100 = vector.extract_strided_slice %3 {offsets = [4, 0], sizes = [1, 256], strides = [1, 1]} : vector<9x256xbf16> to vector<1x256xbf16>
    %101 = vector.broadcast %100 : vector<1x256xbf16> to vector<10x256xbf16>
    %102 = arith.mulf %75, %101 : vector<10x256xbf16>
    %cst_32 = arith.constant 0.000000e+00 : bf16
    %103 = vector.broadcast %cst_32 : bf16 to vector<10x1xbf16>
    %104 = vector.extract_strided_slice %75 {offsets = [0, 1], sizes = [10, 255], strides = [1, 1]} : vector<10x256xbf16> to vector<10x255xbf16>
    %105 = tpu.concatenate %104, %103 in 1 : vector<10x255xbf16>, vector<10x1xbf16> -> vector<10x256xbf16>
    %106 = vector.extract_strided_slice %3 {offsets = [5, 0], sizes = [1, 256], strides = [1, 1]} : vector<9x256xbf16> to vector<1x256xbf16>
    %107 = vector.broadcast %106 : vector<1x256xbf16> to vector<10x256xbf16>
    %108 = arith.mulf %105, %107 : vector<10x256xbf16>
    %cst_33 = arith.constant 0.000000e+00 : bf16
    %109 = vector.broadcast %cst_33 : bf16 to vector<10x15xbf16>
    %110 = vector.extract_strided_slice %75 {offsets = [0, 15], sizes = [10, 241], strides = [1, 1]} : vector<10x256xbf16> to vector<10x241xbf16>
    %111 = tpu.concatenate %110, %109 in 1 : vector<10x241xbf16>, vector<10x15xbf16> -> vector<10x256xbf16>
    %112 = vector.extract_strided_slice %3 {offsets = [6, 0], sizes = [1, 256], strides = [1, 1]} : vector<9x256xbf16> to vector<1x256xbf16>
    %113 = vector.broadcast %112 : vector<1x256xbf16> to vector<10x256xbf16>
    %114 = arith.mulf %111, %113 : vector<10x256xbf16>
    %cst_34 = arith.constant 0.000000e+00 : bf16
    %115 = vector.broadcast %cst_34 : bf16 to vector<10x16xbf16>
    %116 = vector.extract_strided_slice %75 {offsets = [0, 16], sizes = [10, 240], strides = [1, 1]} : vector<10x256xbf16> to vector<10x240xbf16>
    %117 = tpu.concatenate %116, %115 in 1 : vector<10x240xbf16>, vector<10x16xbf16> -> vector<10x256xbf16>
    %118 = vector.extract_strided_slice %3 {offsets = [7, 0], sizes = [1, 256], strides = [1, 1]} : vector<9x256xbf16> to vector<1x256xbf16>
    %119 = vector.broadcast %118 : vector<1x256xbf16> to vector<10x256xbf16>
    %120 = arith.mulf %117, %119 : vector<10x256xbf16>
    %cst_35 = arith.constant 0.000000e+00 : bf16
    %121 = vector.broadcast %cst_35 : bf16 to vector<10x17xbf16>
    %122 = vector.extract_strided_slice %75 {offsets = [0, 17], sizes = [10, 239], strides = [1, 1]} : vector<10x256xbf16> to vector<10x239xbf16>
    %123 = tpu.concatenate %122, %121 in 1 : vector<10x239xbf16>, vector<10x17xbf16> -> vector<10x256xbf16>
    %124 = vector.extract_strided_slice %3 {offsets = [8, 0], sizes = [1, 256], strides = [1, 1]} : vector<9x256xbf16> to vector<1x256xbf16>
    %125 = vector.broadcast %124 : vector<1x256xbf16> to vector<10x256xbf16>
    %126 = arith.mulf %123, %125 : vector<10x256xbf16>
    %127 = tpu.concatenate %81, %87, %93, %99, %102, %108, %114, %120, %126 in 0 : vector<10x256xbf16>, vector<10x256xbf16>, vector<10x256xbf16>, vector<10x256xbf16>, vector<10x256xbf16>, vector<10x256xbf16>, vector<10x256xbf16>, vector<10x256xbf16>, vector<10x256xbf16> -> vector<90x256xbf16>
    %cst_36 = arith.constant dense<0.000000e+00> : vector<16x256xf32>
    %128 = tpu.matmul %73, %127, %cst_36 {dimension_numbers = #tpu.dot_dimension_numbers<[1], [0], [0], [1], [0, 0, 1, 1], [], []>} : vector<16x90xbf16>, vector<90x256xbf16>, vector<16x256xf32> -> vector<16x256xf32>
    %129 = vector.broadcast %74 : vector<16x1xf32> to vector<16x256xf32>
    %130 = arith.addf %128, %129 : vector<16x256xf32>
    %cst_37 = arith.constant 0.000000e+00 : f32
    %131 = vector.broadcast %cst_37 : f32 to vector<16x256xf32>
    %132 = arith.maximumf %130, %131 : vector<16x256xf32>
    %c0_38 = arith.constant 0 : index
    %c0_39 = arith.constant 0 : index
    %133 = vector.load %arg12[%c0_38, %c0_39] : memref<2x144xbf16, #tpu.memory_space<vmem>>, vector<2x144xbf16>
    %c0_40 = arith.constant 0 : index
    %c0_41 = arith.constant 0 : index
    %134 = vector.load %arg13[%c0_40, %c0_41] : memref<2x1xf32, #tpu.memory_space<vmem>>, vector<2x1xf32>
    %135 = arith.truncf %132 : vector<16x256xf32> to vector<16x256xbf16>
    %cst_42 = arith.constant 0.000000e+00 : bf16
    %136 = vector.broadcast %cst_42 : bf16 to vector<16x17xbf16>
    %137 = vector.extract_strided_slice %135 {offsets = [0, 0], sizes = [16, 239], strides = [1, 1]} : vector<16x256xbf16> to vector<16x239xbf16>
    %138 = tpu.concatenate %136, %137 in 1 : vector<16x17xbf16>, vector<16x239xbf16> -> vector<16x256xbf16>
    %139 = vector.extract_strided_slice %3 {offsets = [0, 0], sizes = [1, 256], strides = [1, 1]} : vector<9x256xbf16> to vector<1x256xbf16>
    %140 = vector.broadcast %139 : vector<1x256xbf16> to vector<16x256xbf16>
    %141 = arith.mulf %138, %140 : vector<16x256xbf16>
    %cst_43 = arith.constant 0.000000e+00 : bf16
    %142 = vector.broadcast %cst_43 : bf16 to vector<16x16xbf16>
    %143 = vector.extract_strided_slice %135 {offsets = [0, 0], sizes = [16, 240], strides = [1, 1]} : vector<16x256xbf16> to vector<16x240xbf16>
    %144 = tpu.concatenate %142, %143 in 1 : vector<16x16xbf16>, vector<16x240xbf16> -> vector<16x256xbf16>
    %145 = vector.extract_strided_slice %3 {offsets = [1, 0], sizes = [1, 256], strides = [1, 1]} : vector<9x256xbf16> to vector<1x256xbf16>
    %146 = vector.broadcast %145 : vector<1x256xbf16> to vector<16x256xbf16>
    %147 = arith.mulf %144, %146 : vector<16x256xbf16>
    %cst_44 = arith.constant 0.000000e+00 : bf16
    %148 = vector.broadcast %cst_44 : bf16 to vector<16x15xbf16>
    %149 = vector.extract_strided_slice %135 {offsets = [0, 0], sizes = [16, 241], strides = [1, 1]} : vector<16x256xbf16> to vector<16x241xbf16>
    %150 = tpu.concatenate %148, %149 in 1 : vector<16x15xbf16>, vector<16x241xbf16> -> vector<16x256xbf16>
    %151 = vector.extract_strided_slice %3 {offsets = [2, 0], sizes = [1, 256], strides = [1, 1]} : vector<9x256xbf16> to vector<1x256xbf16>
    %152 = vector.broadcast %151 : vector<1x256xbf16> to vector<16x256xbf16>
    %153 = arith.mulf %150, %152 : vector<16x256xbf16>
    %cst_45 = arith.constant 0.000000e+00 : bf16
    %154 = vector.broadcast %cst_45 : bf16 to vector<16x1xbf16>
    %155 = vector.extract_strided_slice %135 {offsets = [0, 0], sizes = [16, 255], strides = [1, 1]} : vector<16x256xbf16> to vector<16x255xbf16>
    %156 = tpu.concatenate %154, %155 in 1 : vector<16x1xbf16>, vector<16x255xbf16> -> vector<16x256xbf16>
    %157 = vector.extract_strided_slice %3 {offsets = [3, 0], sizes = [1, 256], strides = [1, 1]} : vector<9x256xbf16> to vector<1x256xbf16>
    %158 = vector.broadcast %157 : vector<1x256xbf16> to vector<16x256xbf16>
    %159 = arith.mulf %156, %158 : vector<16x256xbf16>
    %160 = vector.extract_strided_slice %3 {offsets = [4, 0], sizes = [1, 256], strides = [1, 1]} : vector<9x256xbf16> to vector<1x256xbf16>
    %161 = vector.broadcast %160 : vector<1x256xbf16> to vector<16x256xbf16>
    %162 = arith.mulf %135, %161 : vector<16x256xbf16>
    %cst_46 = arith.constant 0.000000e+00 : bf16
    %163 = vector.broadcast %cst_46 : bf16 to vector<16x1xbf16>
    %164 = vector.extract_strided_slice %135 {offsets = [0, 1], sizes = [16, 255], strides = [1, 1]} : vector<16x256xbf16> to vector<16x255xbf16>
    %165 = tpu.concatenate %164, %163 in 1 : vector<16x255xbf16>, vector<16x1xbf16> -> vector<16x256xbf16>
    %166 = vector.extract_strided_slice %3 {offsets = [5, 0], sizes = [1, 256], strides = [1, 1]} : vector<9x256xbf16> to vector<1x256xbf16>
    %167 = vector.broadcast %166 : vector<1x256xbf16> to vector<16x256xbf16>
    %168 = arith.mulf %165, %167 : vector<16x256xbf16>
    %cst_47 = arith.constant 0.000000e+00 : bf16
    %169 = vector.broadcast %cst_47 : bf16 to vector<16x15xbf16>
    %170 = vector.extract_strided_slice %135 {offsets = [0, 15], sizes = [16, 241], strides = [1, 1]} : vector<16x256xbf16> to vector<16x241xbf16>
    %171 = tpu.concatenate %170, %169 in 1 : vector<16x241xbf16>, vector<16x15xbf16> -> vector<16x256xbf16>
    %172 = vector.extract_strided_slice %3 {offsets = [6, 0], sizes = [1, 256], strides = [1, 1]} : vector<9x256xbf16> to vector<1x256xbf16>
    %173 = vector.broadcast %172 : vector<1x256xbf16> to vector<16x256xbf16>
    %174 = arith.mulf %171, %173 : vector<16x256xbf16>
    %cst_48 = arith.constant 0.000000e+00 : bf16
    %175 = vector.broadcast %cst_48 : bf16 to vector<16x16xbf16>
    %176 = vector.extract_strided_slice %135 {offsets = [0, 16], sizes = [16, 240], strides = [1, 1]} : vector<16x256xbf16> to vector<16x240xbf16>
    %177 = tpu.concatenate %176, %175 in 1 : vector<16x240xbf16>, vector<16x16xbf16> -> vector<16x256xbf16>
    %178 = vector.extract_strided_slice %3 {offsets = [7, 0], sizes = [1, 256], strides = [1, 1]} : vector<9x256xbf16> to vector<1x256xbf16>
    %179 = vector.broadcast %178 : vector<1x256xbf16> to vector<16x256xbf16>
    %180 = arith.mulf %177, %179 : vector<16x256xbf16>
    %cst_49 = arith.constant 0.000000e+00 : bf16
    %181 = vector.broadcast %cst_49 : bf16 to vector<16x17xbf16>
    %182 = vector.extract_strided_slice %135 {offsets = [0, 17], sizes = [16, 239], strides = [1, 1]} : vector<16x256xbf16> to vector<16x239xbf16>
    %183 = tpu.concatenate %182, %181 in 1 : vector<16x239xbf16>, vector<16x17xbf16> -> vector<16x256xbf16>
    %184 = vector.extract_strided_slice %3 {offsets = [8, 0], sizes = [1, 256], strides = [1, 1]} : vector<9x256xbf16> to vector<1x256xbf16>
    %185 = vector.broadcast %184 : vector<1x256xbf16> to vector<16x256xbf16>
    %186 = arith.mulf %183, %185 : vector<16x256xbf16>
    %187 = tpu.concatenate %141, %147, %153, %159, %162, %168, %174, %180, %186 in 0 : vector<16x256xbf16>, vector<16x256xbf16>, vector<16x256xbf16>, vector<16x256xbf16>, vector<16x256xbf16>, vector<16x256xbf16>, vector<16x256xbf16>, vector<16x256xbf16>, vector<16x256xbf16> -> vector<144x256xbf16>
    %cst_50 = arith.constant dense<0.000000e+00> : vector<2x256xf32>
    %188 = tpu.matmul %133, %187, %cst_50 {dimension_numbers = #tpu.dot_dimension_numbers<[1], [0], [0], [1], [0, 0, 1, 1], [], []>} : vector<2x144xbf16>, vector<144x256xbf16>, vector<2x256xf32> -> vector<2x256xf32>
    %189 = vector.broadcast %134 : vector<2x1xf32> to vector<2x256xf32>
    %190 = arith.addf %188, %189 : vector<2x256xf32>
    %191 = arith.addf %1, %190 : vector<2x256xf32>
    %cst_51 = arith.constant 0.000000e+00 : f32
    %cst_52 = arith.constant 1.000000e+00 : f32
    %192 = vector.broadcast %cst_51 : f32 to vector<2x256xf32>
    %193 = arith.maximumf %192, %191 : vector<2x256xf32>
    %194 = vector.broadcast %cst_52 : f32 to vector<2x256xf32>
    %195 = arith.minimumf %194, %193 : vector<2x256xf32>
    %196 = vector.extract_strided_slice %195 {offsets = [0, 0], sizes = [1, 256], strides = [1, 1]} : vector<2x256xf32> to vector<1x256xf32>
    %197 = vector.extract_strided_slice %195 {offsets = [1, 0], sizes = [1, 256], strides = [1, 1]} : vector<2x256xf32> to vector<1x256xf32>
    %cst_53 = arith.constant 0.000000e+00 : f32
    %cst_54 = arith.constant 1.000000e+00 : f32
    %198 = vector.broadcast %cst_53 : f32 to vector<1x256xf32>
    %199 = arith.maximumf %198, %196 : vector<1x256xf32>
    %200 = vector.broadcast %cst_54 : f32 to vector<1x256xf32>
    %201 = arith.minimumf %200, %199 : vector<1x256xf32>
    %cst_55 = arith.constant 1.500000e+01 : f32
    %202 = vector.broadcast %cst_55 : f32 to vector<1x256xf32>
    %203 = arith.mulf %201, %202 : vector<1x256xf32>
    %cst_56 = arith.constant 0.000000e+00 : f32
    %cst_57 = arith.constant 1.000000e+00 : f32
    %204 = vector.broadcast %cst_56 : f32 to vector<1x256xf32>
    %205 = arith.maximumf %204, %197 : vector<1x256xf32>
    %206 = vector.broadcast %cst_57 : f32 to vector<1x256xf32>
    %207 = arith.minimumf %206, %205 : vector<1x256xf32>
    %cst_58 = arith.constant 1.500000e+01 : f32
    %208 = vector.broadcast %cst_58 : f32 to vector<1x256xf32>
    %209 = arith.mulf %207, %208 : vector<1x256xf32>
    %210 = math.floor %203 : vector<1x256xf32>
    %211 = math.floor %209 : vector<1x256xf32>
    %212 = arith.subf %203, %210 : vector<1x256xf32>
    %213 = arith.subf %209, %211 : vector<1x256xf32>
    %214 = arith.fptosi %210 : vector<1x256xf32> to vector<1x256xi32>
    %215 = arith.fptosi %211 : vector<1x256xf32> to vector<1x256xi32>
    %c1_i32_59 = arith.constant 1 : i32
    %216 = vector.broadcast %c1_i32_59 : i32 to vector<1x256xi32>
    %217 = arith.addi %214, %216 : vector<1x256xi32>
    %c15_i32_60 = arith.constant 15 : i32
    %218 = vector.broadcast %c15_i32_60 : i32 to vector<1x256xi32>
    %219 = arith.minsi %217, %218 : vector<1x256xi32>
    %c1_i32_61 = arith.constant 1 : i32
    %220 = vector.broadcast %c1_i32_61 : i32 to vector<1x256xi32>
    %221 = arith.addi %215, %220 : vector<1x256xi32>
    %c15_i32_62 = arith.constant 15 : i32
    %222 = vector.broadcast %c15_i32_62 : i32 to vector<1x256xi32>
    %223 = arith.minsi %221, %222 : vector<1x256xi32>
    %224 = tpu.iota {dimensions = array<i32: 0>} : vector<16x256xi32>
    %225 = vector.broadcast %214 : vector<1x256xi32> to vector<16x256xi32>
    %226 = arith.cmpi eq, %224, %225 : vector<16x256xi32>
    %cst_63 = arith.constant 1.000000e+00 : f32
    %227 = vector.broadcast %cst_63 : f32 to vector<1x256xf32>
    %228 = arith.subf %227, %212 : vector<1x256xf32>
    %cst_64 = arith.constant 0.000000e+00 : f32
    %229 = vector.shape_cast %228 : vector<1x256xf32> to vector<1x256xf32>
    %230 = vector.broadcast %229 : vector<1x256xf32> to vector<16x256xf32>
    %231 = vector.broadcast %cst_64 : f32 to vector<16x256xf32>
    %232 = arith.select %226, %230, %231 : vector<16x256xi1>, vector<16x256xf32>
    %233 = vector.broadcast %219 : vector<1x256xi32> to vector<16x256xi32>
    %234 = arith.cmpi eq, %224, %233 : vector<16x256xi32>
    %cst_65 = arith.constant 0.000000e+00 : f32
    %235 = vector.shape_cast %212 : vector<1x256xf32> to vector<1x256xf32>
    %236 = vector.broadcast %235 : vector<1x256xf32> to vector<16x256xf32>
    %237 = vector.broadcast %cst_65 : f32 to vector<16x256xf32>
    %238 = arith.select %234, %236, %237 : vector<16x256xi1>, vector<16x256xf32>
    %239 = arith.addf %232, %238 : vector<16x256xf32>
    %240 = vector.broadcast %215 : vector<1x256xi32> to vector<16x256xi32>
    %241 = arith.cmpi eq, %224, %240 : vector<16x256xi32>
    %cst_66 = arith.constant 1.000000e+00 : f32
    %242 = vector.broadcast %cst_66 : f32 to vector<1x256xf32>
    %243 = arith.subf %242, %213 : vector<1x256xf32>
    %cst_67 = arith.constant 0.000000e+00 : f32
    %244 = vector.shape_cast %243 : vector<1x256xf32> to vector<1x256xf32>
    %245 = vector.broadcast %244 : vector<1x256xf32> to vector<16x256xf32>
    %246 = vector.broadcast %cst_67 : f32 to vector<16x256xf32>
    %247 = arith.select %241, %245, %246 : vector<16x256xi1>, vector<16x256xf32>
    %248 = vector.broadcast %223 : vector<1x256xi32> to vector<16x256xi32>
    %249 = arith.cmpi eq, %224, %248 : vector<16x256xi32>
    %cst_68 = arith.constant 0.000000e+00 : f32
    %250 = vector.shape_cast %213 : vector<1x256xf32> to vector<1x256xf32>
    %251 = vector.broadcast %250 : vector<1x256xf32> to vector<16x256xf32>
    %252 = vector.broadcast %cst_68 : f32 to vector<16x256xf32>
    %253 = arith.select %249, %251, %252 : vector<16x256xi1>, vector<16x256xf32>
    %254 = arith.addf %247, %253 : vector<16x256xf32>
    %255 = vector.shape_cast %254 : vector<16x256xf32> to vector<16x1x256xf32>
    %256 = vector.shape_cast %239 : vector<16x256xf32> to vector<1x16x256xf32>
    %257 = vector.broadcast %255 : vector<16x1x256xf32> to vector<16x16x256xf32>
    %258 = vector.broadcast %256 : vector<1x16x256xf32> to vector<16x16x256xf32>
    %259 = arith.mulf %257, %258 : vector<16x16x256xf32>
    %260 = vector.shape_cast %259 : vector<16x16x256xf32> to vector<256x256xf32>
    %cst_69 = arith.constant dense<0.000000e+00> : vector<8x256xf32>
    %261 = tpu.matmul %2, %260, %cst_69 {dimension_numbers = #tpu.dot_dimension_numbers<[1], [0], [0], [1], [0, 0, 1, 1], [], []>} : vector<8x256xf32>, vector<256x256xf32>, vector<8x256xf32> -> vector<8x256xf32>
    %c0_70 = arith.constant 0 : index
    %c0_71 = arith.constant 0 : index
    %262 = vector.load %arg14[%c0_70, %c0_71] : memref<8x72xbf16, #tpu.memory_space<vmem>>, vector<8x72xbf16>
    %c0_72 = arith.constant 0 : index
    %c0_73 = arith.constant 0 : index
    %263 = vector.load %arg15[%c0_72, %c0_73] : memref<8x1xf32, #tpu.memory_space<vmem>>, vector<8x1xf32>
    %264 = arith.truncf %261 : vector<8x256xf32> to vector<8x256xbf16>
    %cst_74 = arith.constant 0.000000e+00 : bf16
    %265 = vector.broadcast %cst_74 : bf16 to vector<8x17xbf16>
    %266 = vector.extract_strided_slice %264 {offsets = [0, 0], sizes = [8, 239], strides = [1, 1]} : vector<8x256xbf16> to vector<8x239xbf16>
    %267 = tpu.concatenate %265, %266 in 1 : vector<8x17xbf16>, vector<8x239xbf16> -> vector<8x256xbf16>
    %268 = vector.extract_strided_slice %3 {offsets = [0, 0], sizes = [1, 256], strides = [1, 1]} : vector<9x256xbf16> to vector<1x256xbf16>
    %269 = vector.broadcast %268 : vector<1x256xbf16> to vector<8x256xbf16>
    %270 = arith.mulf %267, %269 : vector<8x256xbf16>
    %cst_75 = arith.constant 0.000000e+00 : bf16
    %271 = vector.broadcast %cst_75 : bf16 to vector<8x16xbf16>
    %272 = vector.extract_strided_slice %264 {offsets = [0, 0], sizes = [8, 240], strides = [1, 1]} : vector<8x256xbf16> to vector<8x240xbf16>
    %273 = tpu.concatenate %271, %272 in 1 : vector<8x16xbf16>, vector<8x240xbf16> -> vector<8x256xbf16>
    %274 = vector.extract_strided_slice %3 {offsets = [1, 0], sizes = [1, 256], strides = [1, 1]} : vector<9x256xbf16> to vector<1x256xbf16>
    %275 = vector.broadcast %274 : vector<1x256xbf16> to vector<8x256xbf16>
    %276 = arith.mulf %273, %275 : vector<8x256xbf16>
    %cst_76 = arith.constant 0.000000e+00 : bf16
    %277 = vector.broadcast %cst_76 : bf16 to vector<8x15xbf16>
    %278 = vector.extract_strided_slice %264 {offsets = [0, 0], sizes = [8, 241], strides = [1, 1]} : vector<8x256xbf16> to vector<8x241xbf16>
    %279 = tpu.concatenate %277, %278 in 1 : vector<8x15xbf16>, vector<8x241xbf16> -> vector<8x256xbf16>
    %280 = vector.extract_strided_slice %3 {offsets = [2, 0], sizes = [1, 256], strides = [1, 1]} : vector<9x256xbf16> to vector<1x256xbf16>
    %281 = vector.broadcast %280 : vector<1x256xbf16> to vector<8x256xbf16>
    %282 = arith.mulf %279, %281 : vector<8x256xbf16>
    %cst_77 = arith.constant 0.000000e+00 : bf16
    %283 = vector.broadcast %cst_77 : bf16 to vector<8x1xbf16>
    %284 = vector.extract_strided_slice %264 {offsets = [0, 0], sizes = [8, 255], strides = [1, 1]} : vector<8x256xbf16> to vector<8x255xbf16>
    %285 = tpu.concatenate %283, %284 in 1 : vector<8x1xbf16>, vector<8x255xbf16> -> vector<8x256xbf16>
    %286 = vector.extract_strided_slice %3 {offsets = [3, 0], sizes = [1, 256], strides = [1, 1]} : vector<9x256xbf16> to vector<1x256xbf16>
    %287 = vector.broadcast %286 : vector<1x256xbf16> to vector<8x256xbf16>
    %288 = arith.mulf %285, %287 : vector<8x256xbf16>
    %289 = vector.extract_strided_slice %3 {offsets = [4, 0], sizes = [1, 256], strides = [1, 1]} : vector<9x256xbf16> to vector<1x256xbf16>
    %290 = vector.broadcast %289 : vector<1x256xbf16> to vector<8x256xbf16>
    %291 = arith.mulf %264, %290 : vector<8x256xbf16>
    %cst_78 = arith.constant 0.000000e+00 : bf16
    %292 = vector.broadcast %cst_78 : bf16 to vector<8x1xbf16>
    %293 = vector.extract_strided_slice %264 {offsets = [0, 1], sizes = [8, 255], strides = [1, 1]} : vector<8x256xbf16> to vector<8x255xbf16>
    %294 = tpu.concatenate %293, %292 in 1 : vector<8x255xbf16>, vector<8x1xbf16> -> vector<8x256xbf16>
    %295 = vector.extract_strided_slice %3 {offsets = [5, 0], sizes = [1, 256], strides = [1, 1]} : vector<9x256xbf16> to vector<1x256xbf16>
    %296 = vector.broadcast %295 : vector<1x256xbf16> to vector<8x256xbf16>
    %297 = arith.mulf %294, %296 : vector<8x256xbf16>
    %cst_79 = arith.constant 0.000000e+00 : bf16
    %298 = vector.broadcast %cst_79 : bf16 to vector<8x15xbf16>
    %299 = vector.extract_strided_slice %264 {offsets = [0, 15], sizes = [8, 241], strides = [1, 1]} : vector<8x256xbf16> to vector<8x241xbf16>
    %300 = tpu.concatenate %299, %298 in 1 : vector<8x241xbf16>, vector<8x15xbf16> -> vector<8x256xbf16>
    %301 = vector.extract_strided_slice %3 {offsets = [6, 0], sizes = [1, 256], strides = [1, 1]} : vector<9x256xbf16> to vector<1x256xbf16>
    %302 = vector.broadcast %301 : vector<1x256xbf16> to vector<8x256xbf16>
    %303 = arith.mulf %300, %302 : vector<8x256xbf16>
    %cst_80 = arith.constant 0.000000e+00 : bf16
    %304 = vector.broadcast %cst_80 : bf16 to vector<8x16xbf16>
    %305 = vector.extract_strided_slice %264 {offsets = [0, 16], sizes = [8, 240], strides = [1, 1]} : vector<8x256xbf16> to vector<8x240xbf16>
    %306 = tpu.concatenate %305, %304 in 1 : vector<8x240xbf16>, vector<8x16xbf16> -> vector<8x256xbf16>
    %307 = vector.extract_strided_slice %3 {offsets = [7, 0], sizes = [1, 256], strides = [1, 1]} : vector<9x256xbf16> to vector<1x256xbf16>
    %308 = vector.broadcast %307 : vector<1x256xbf16> to vector<8x256xbf16>
    %309 = arith.mulf %306, %308 : vector<8x256xbf16>
    %cst_81 = arith.constant 0.000000e+00 : bf16
    %310 = vector.broadcast %cst_81 : bf16 to vector<8x17xbf16>
    %311 = vector.extract_strided_slice %264 {offsets = [0, 17], sizes = [8, 239], strides = [1, 1]} : vector<8x256xbf16> to vector<8x239xbf16>
    %312 = tpu.concatenate %311, %310 in 1 : vector<8x239xbf16>, vector<8x17xbf16> -> vector<8x256xbf16>
    %313 = vector.extract_strided_slice %3 {offsets = [8, 0], sizes = [1, 256], strides = [1, 1]} : vector<9x256xbf16> to vector<1x256xbf16>
    %314 = vector.broadcast %313 : vector<1x256xbf16> to vector<8x256xbf16>
    %315 = arith.mulf %312, %314 : vector<8x256xbf16>
    %316 = tpu.concatenate %270, %276, %282, %288, %291, %297, %303, %309, %315 in 0 : vector<8x256xbf16>, vector<8x256xbf16>, vector<8x256xbf16>, vector<8x256xbf16>, vector<8x256xbf16>, vector<8x256xbf16>, vector<8x256xbf16>, vector<8x256xbf16>, vector<8x256xbf16> -> vector<72x256xbf16>
    %cst_82 = arith.constant dense<0.000000e+00> : vector<8x256xf32>
    %317 = tpu.matmul %262, %316, %cst_82 {dimension_numbers = #tpu.dot_dimension_numbers<[1], [0], [0], [1], [0, 0, 1, 1], [], []>} : vector<8x72xbf16>, vector<72x256xbf16>, vector<8x256xf32> -> vector<8x256xf32>
    %318 = vector.broadcast %263 : vector<8x1xf32> to vector<8x256xf32>
    %319 = arith.addf %317, %318 : vector<8x256xf32>
    %cst_83 = arith.constant 0.000000e+00 : f32
    %320 = vector.broadcast %cst_83 : f32 to vector<8x256xf32>
    %321 = arith.maximumf %319, %320 : vector<8x256xf32>
    %c0_84 = arith.constant 0 : index
    %c0_85 = arith.constant 0 : index
    %322 = vector.load %arg6[%c0_84, %c0_85] : memref<256x64xf32, #tpu.memory_space<vmem>>, vector<256x64xf32>
    %cst_86 = arith.constant dense<0.000000e+00> : vector<8x64xf32>
    %323 = tpu.matmul %321, %322, %cst_86 {dimension_numbers = #tpu.dot_dimension_numbers<[1], [0], [0], [1], [0, 0, 1, 1], [], []>} : vector<8x256xf32>, vector<256x64xf32>, vector<8x64xf32> -> vector<8x64xf32>
    %c0_87 = arith.constant 0 : index
    %c0_88 = arith.constant 0 : index
    %324 = vector.load %arg16[%c0_87, %c0_88] : memref<16x72xbf16, #tpu.memory_space<vmem>>, vector<16x72xbf16>
    %c0_89 = arith.constant 0 : index
    %c0_90 = arith.constant 0 : index
    %325 = vector.load %arg17[%c0_89, %c0_90] : memref<16x1xf32, #tpu.memory_space<vmem>>, vector<16x1xf32>
    %326 = arith.truncf %323 : vector<8x64xf32> to vector<8x64xbf16>
    %cst_91 = arith.constant 0.000000e+00 : bf16
    %327 = vector.broadcast %cst_91 : bf16 to vector<8x9xbf16>
    %328 = vector.extract_strided_slice %326 {offsets = [0, 0], sizes = [8, 55], strides = [1, 1]} : vector<8x64xbf16> to vector<8x55xbf16>
    %329 = tpu.concatenate %327, %328 in 1 : vector<8x9xbf16>, vector<8x55xbf16> -> vector<8x64xbf16>
    %330 = vector.extract_strided_slice %4 {offsets = [0, 0], sizes = [1, 64], strides = [1, 1]} : vector<9x64xbf16> to vector<1x64xbf16>
    %331 = vector.broadcast %330 : vector<1x64xbf16> to vector<8x64xbf16>
    %332 = arith.mulf %329, %331 : vector<8x64xbf16>
    %cst_92 = arith.constant 0.000000e+00 : bf16
    %333 = vector.broadcast %cst_92 : bf16 to vector<8x8xbf16>
    %334 = vector.extract_strided_slice %326 {offsets = [0, 0], sizes = [8, 56], strides = [1, 1]} : vector<8x64xbf16> to vector<8x56xbf16>
    %335 = tpu.concatenate %333, %334 in 1 : vector<8x8xbf16>, vector<8x56xbf16> -> vector<8x64xbf16>
    %336 = vector.extract_strided_slice %4 {offsets = [1, 0], sizes = [1, 64], strides = [1, 1]} : vector<9x64xbf16> to vector<1x64xbf16>
    %337 = vector.broadcast %336 : vector<1x64xbf16> to vector<8x64xbf16>
    %338 = arith.mulf %335, %337 : vector<8x64xbf16>
    %cst_93 = arith.constant 0.000000e+00 : bf16
    %339 = vector.broadcast %cst_93 : bf16 to vector<8x7xbf16>
    %340 = vector.extract_strided_slice %326 {offsets = [0, 0], sizes = [8, 57], strides = [1, 1]} : vector<8x64xbf16> to vector<8x57xbf16>
    %341 = tpu.concatenate %339, %340 in 1 : vector<8x7xbf16>, vector<8x57xbf16> -> vector<8x64xbf16>
    %342 = vector.extract_strided_slice %4 {offsets = [2, 0], sizes = [1, 64], strides = [1, 1]} : vector<9x64xbf16> to vector<1x64xbf16>
    %343 = vector.broadcast %342 : vector<1x64xbf16> to vector<8x64xbf16>
    %344 = arith.mulf %341, %343 : vector<8x64xbf16>
    %cst_94 = arith.constant 0.000000e+00 : bf16
    %345 = vector.broadcast %cst_94 : bf16 to vector<8x1xbf16>
    %346 = vector.extract_strided_slice %326 {offsets = [0, 0], sizes = [8, 63], strides = [1, 1]} : vector<8x64xbf16> to vector<8x63xbf16>
    %347 = tpu.concatenate %345, %346 in 1 : vector<8x1xbf16>, vector<8x63xbf16> -> vector<8x64xbf16>
    %348 = vector.extract_strided_slice %4 {offsets = [3, 0], sizes = [1, 64], strides = [1, 1]} : vector<9x64xbf16> to vector<1x64xbf16>
    %349 = vector.broadcast %348 : vector<1x64xbf16> to vector<8x64xbf16>
    %350 = arith.mulf %347, %349 : vector<8x64xbf16>
    %351 = vector.extract_strided_slice %4 {offsets = [4, 0], sizes = [1, 64], strides = [1, 1]} : vector<9x64xbf16> to vector<1x64xbf16>
    %352 = vector.broadcast %351 : vector<1x64xbf16> to vector<8x64xbf16>
    %353 = arith.mulf %326, %352 : vector<8x64xbf16>
    %cst_95 = arith.constant 0.000000e+00 : bf16
    %354 = vector.broadcast %cst_95 : bf16 to vector<8x1xbf16>
    %355 = vector.extract_strided_slice %326 {offsets = [0, 1], sizes = [8, 63], strides = [1, 1]} : vector<8x64xbf16> to vector<8x63xbf16>
    %356 = tpu.concatenate %355, %354 in 1 : vector<8x63xbf16>, vector<8x1xbf16> -> vector<8x64xbf16>
    %357 = vector.extract_strided_slice %4 {offsets = [5, 0], sizes = [1, 64], strides = [1, 1]} : vector<9x64xbf16> to vector<1x64xbf16>
    %358 = vector.broadcast %357 : vector<1x64xbf16> to vector<8x64xbf16>
    %359 = arith.mulf %356, %358 : vector<8x64xbf16>
    %cst_96 = arith.constant 0.000000e+00 : bf16
    %360 = vector.broadcast %cst_96 : bf16 to vector<8x7xbf16>
    %361 = vector.extract_strided_slice %326 {offsets = [0, 7], sizes = [8, 57], strides = [1, 1]} : vector<8x64xbf16> to vector<8x57xbf16>
    %362 = tpu.concatenate %361, %360 in 1 : vector<8x57xbf16>, vector<8x7xbf16> -> vector<8x64xbf16>
    %363 = vector.extract_strided_slice %4 {offsets = [6, 0], sizes = [1, 64], strides = [1, 1]} : vector<9x64xbf16> to vector<1x64xbf16>
    %364 = vector.broadcast %363 : vector<1x64xbf16> to vector<8x64xbf16>
    %365 = arith.mulf %362, %364 : vector<8x64xbf16>
    %cst_97 = arith.constant 0.000000e+00 : bf16
    %366 = vector.broadcast %cst_97 : bf16 to vector<8x8xbf16>
    %367 = vector.extract_strided_slice %326 {offsets = [0, 8], sizes = [8, 56], strides = [1, 1]} : vector<8x64xbf16> to vector<8x56xbf16>
    %368 = tpu.concatenate %367, %366 in 1 : vector<8x56xbf16>, vector<8x8xbf16> -> vector<8x64xbf16>
    %369 = vector.extract_strided_slice %4 {offsets = [7, 0], sizes = [1, 64], strides = [1, 1]} : vector<9x64xbf16> to vector<1x64xbf16>
    %370 = vector.broadcast %369 : vector<1x64xbf16> to vector<8x64xbf16>
    %371 = arith.mulf %368, %370 : vector<8x64xbf16>
    %cst_98 = arith.constant 0.000000e+00 : bf16
    %372 = vector.broadcast %cst_98 : bf16 to vector<8x9xbf16>
    %373 = vector.extract_strided_slice %326 {offsets = [0, 9], sizes = [8, 55], strides = [1, 1]} : vector<8x64xbf16> to vector<8x55xbf16>
    %374 = tpu.concatenate %373, %372 in 1 : vector<8x55xbf16>, vector<8x9xbf16> -> vector<8x64xbf16>
    %375 = vector.extract_strided_slice %4 {offsets = [8, 0], sizes = [1, 64], strides = [1, 1]} : vector<9x64xbf16> to vector<1x64xbf16>
    %376 = vector.broadcast %375 : vector<1x64xbf16> to vector<8x64xbf16>
    %377 = arith.mulf %374, %376 : vector<8x64xbf16>
    %378 = tpu.concatenate %332, %338, %344, %350, %353, %359, %365, %371, %377 in 0 : vector<8x64xbf16>, vector<8x64xbf16>, vector<8x64xbf16>, vector<8x64xbf16>, vector<8x64xbf16>, vector<8x64xbf16>, vector<8x64xbf16>, vector<8x64xbf16>, vector<8x64xbf16> -> vector<72x64xbf16>
    %cst_99 = arith.constant dense<0.000000e+00> : vector<16x64xf32>
    %379 = tpu.matmul %324, %378, %cst_99 {dimension_numbers = #tpu.dot_dimension_numbers<[1], [0], [0], [1], [0, 0, 1, 1], [], []>} : vector<16x72xbf16>, vector<72x64xbf16>, vector<16x64xf32> -> vector<16x64xf32>
    %380 = vector.broadcast %325 : vector<16x1xf32> to vector<16x64xf32>
    %381 = arith.addf %379, %380 : vector<16x64xf32>
    %cst_100 = arith.constant 0.000000e+00 : f32
    %382 = vector.broadcast %cst_100 : f32 to vector<16x64xf32>
    %383 = arith.maximumf %381, %382 : vector<16x64xf32>
    %c0_101 = arith.constant 0 : index
    %c0_102 = arith.constant 0 : index
    %384 = vector.load %arg7[%c0_101, %c0_102] : memref<64x16xf32, #tpu.memory_space<vmem>>, vector<64x16xf32>
    %cst_103 = arith.constant dense<0.000000e+00> : vector<16x16xf32>
    %385 = tpu.matmul %383, %384, %cst_103 {dimension_numbers = #tpu.dot_dimension_numbers<[1], [0], [0], [1], [0, 0, 1, 1], [], []>} : vector<16x64xf32>, vector<64x16xf32>, vector<16x16xf32> -> vector<16x16xf32>
    %c0_104 = arith.constant 0 : index
    %c0_105 = arith.constant 0 : index
    %386 = vector.load %arg18[%c0_104, %c0_105] : memref<32x144xbf16, #tpu.memory_space<vmem>>, vector<32x144xbf16>
    %c0_106 = arith.constant 0 : index
    %c0_107 = arith.constant 0 : index
    %387 = vector.load %arg19[%c0_106, %c0_107] : memref<32x1xf32, #tpu.memory_space<vmem>>, vector<32x1xf32>
    %388 = arith.truncf %385 : vector<16x16xf32> to vector<16x16xbf16>
    %cst_108 = arith.constant 0.000000e+00 : bf16
    %389 = vector.broadcast %cst_108 : bf16 to vector<16x5xbf16>
    %390 = vector.extract_strided_slice %388 {offsets = [0, 0], sizes = [16, 11], strides = [1, 1]} : vector<16x16xbf16> to vector<16x11xbf16>
    %391 = tpu.concatenate %389, %390 in 1 : vector<16x5xbf16>, vector<16x11xbf16> -> vector<16x16xbf16>
    %392 = vector.extract_strided_slice %5 {offsets = [0, 0], sizes = [1, 16], strides = [1, 1]} : vector<9x16xbf16> to vector<1x16xbf16>
    %393 = vector.broadcast %392 : vector<1x16xbf16> to vector<16x16xbf16>
    %394 = arith.mulf %391, %393 : vector<16x16xbf16>
    %cst_109 = arith.constant 0.000000e+00 : bf16
    %395 = vector.broadcast %cst_109 : bf16 to vector<16x4xbf16>
    %396 = vector.extract_strided_slice %388 {offsets = [0, 0], sizes = [16, 12], strides = [1, 1]} : vector<16x16xbf16> to vector<16x12xbf16>
    %397 = tpu.concatenate %395, %396 in 1 : vector<16x4xbf16>, vector<16x12xbf16> -> vector<16x16xbf16>
    %398 = vector.extract_strided_slice %5 {offsets = [1, 0], sizes = [1, 16], strides = [1, 1]} : vector<9x16xbf16> to vector<1x16xbf16>
    %399 = vector.broadcast %398 : vector<1x16xbf16> to vector<16x16xbf16>
    %400 = arith.mulf %397, %399 : vector<16x16xbf16>
    %cst_110 = arith.constant 0.000000e+00 : bf16
    %401 = vector.broadcast %cst_110 : bf16 to vector<16x3xbf16>
    %402 = vector.extract_strided_slice %388 {offsets = [0, 0], sizes = [16, 13], strides = [1, 1]} : vector<16x16xbf16> to vector<16x13xbf16>
    %403 = tpu.concatenate %401, %402 in 1 : vector<16x3xbf16>, vector<16x13xbf16> -> vector<16x16xbf16>
    %404 = vector.extract_strided_slice %5 {offsets = [2, 0], sizes = [1, 16], strides = [1, 1]} : vector<9x16xbf16> to vector<1x16xbf16>
    %405 = vector.broadcast %404 : vector<1x16xbf16> to vector<16x16xbf16>
    %406 = arith.mulf %403, %405 : vector<16x16xbf16>
    %cst_111 = arith.constant 0.000000e+00 : bf16
    %407 = vector.broadcast %cst_111 : bf16 to vector<16x1xbf16>
    %408 = vector.extract_strided_slice %388 {offsets = [0, 0], sizes = [16, 15], strides = [1, 1]} : vector<16x16xbf16> to vector<16x15xbf16>
    %409 = tpu.concatenate %407, %408 in 1 : vector<16x1xbf16>, vector<16x15xbf16> -> vector<16x16xbf16>
    %410 = vector.extract_strided_slice %5 {offsets = [3, 0], sizes = [1, 16], strides = [1, 1]} : vector<9x16xbf16> to vector<1x16xbf16>
    %411 = vector.broadcast %410 : vector<1x16xbf16> to vector<16x16xbf16>
    %412 = arith.mulf %409, %411 : vector<16x16xbf16>
    %413 = vector.extract_strided_slice %5 {offsets = [4, 0], sizes = [1, 16], strides = [1, 1]} : vector<9x16xbf16> to vector<1x16xbf16>
    %414 = vector.broadcast %413 : vector<1x16xbf16> to vector<16x16xbf16>
    %415 = arith.mulf %388, %414 : vector<16x16xbf16>
    %cst_112 = arith.constant 0.000000e+00 : bf16
    %416 = vector.broadcast %cst_112 : bf16 to vector<16x1xbf16>
    %417 = vector.extract_strided_slice %388 {offsets = [0, 1], sizes = [16, 15], strides = [1, 1]} : vector<16x16xbf16> to vector<16x15xbf16>
    %418 = tpu.concatenate %417, %416 in 1 : vector<16x15xbf16>, vector<16x1xbf16> -> vector<16x16xbf16>
    %419 = vector.extract_strided_slice %5 {offsets = [5, 0], sizes = [1, 16], strides = [1, 1]} : vector<9x16xbf16> to vector<1x16xbf16>
    %420 = vector.broadcast %419 : vector<1x16xbf16> to vector<16x16xbf16>
    %421 = arith.mulf %418, %420 : vector<16x16xbf16>
    %cst_113 = arith.constant 0.000000e+00 : bf16
    %422 = vector.broadcast %cst_113 : bf16 to vector<16x3xbf16>
    %423 = vector.extract_strided_slice %388 {offsets = [0, 3], sizes = [16, 13], strides = [1, 1]} : vector<16x16xbf16> to vector<16x13xbf16>
    %424 = tpu.concatenate %423, %422 in 1 : vector<16x13xbf16>, vector<16x3xbf16> -> vector<16x16xbf16>
    %425 = vector.extract_strided_slice %5 {offsets = [6, 0], sizes = [1, 16], strides = [1, 1]} : vector<9x16xbf16> to vector<1x16xbf16>
    %426 = vector.broadcast %425 : vector<1x16xbf16> to vector<16x16xbf16>
    %427 = arith.mulf %424, %426 : vector<16x16xbf16>
    %cst_114 = arith.constant 0.000000e+00 : bf16
    %428 = vector.broadcast %cst_114 : bf16 to vector<16x4xbf16>
    %429 = vector.extract_strided_slice %388 {offsets = [0, 4], sizes = [16, 12], strides = [1, 1]} : vector<16x16xbf16> to vector<16x12xbf16>
    %430 = tpu.concatenate %429, %428 in 1 : vector<16x12xbf16>, vector<16x4xbf16> -> vector<16x16xbf16>
    %431 = vector.extract_strided_slice %5 {offsets = [7, 0], sizes = [1, 16], strides = [1, 1]} : vector<9x16xbf16> to vector<1x16xbf16>
    %432 = vector.broadcast %431 : vector<1x16xbf16> to vector<16x16xbf16>
    %433 = arith.mulf %430, %432 : vector<16x16xbf16>
    %cst_115 = arith.constant 0.000000e+00 : bf16
    %434 = vector.broadcast %cst_115 : bf16 to vector<16x5xbf16>
    %435 = vector.extract_strided_slice %388 {offsets = [0, 5], sizes = [16, 11], strides = [1, 1]} : vector<16x16xbf16> to vector<16x11xbf16>
    %436 = tpu.concatenate %435, %434 in 1 : vector<16x11xbf16>, vector<16x5xbf16> -> vector<16x16xbf16>
    %437 = vector.extract_strided_slice %5 {offsets = [8, 0], sizes = [1, 16], strides = [1, 1]} : vector<9x16xbf16> to vector<1x16xbf16>
    %438 = vector.broadcast %437 : vector<1x16xbf16> to vector<16x16xbf16>
    %439 = arith.mulf %436, %438 : vector<16x16xbf16>
    %440 = tpu.concatenate %394, %400, %406, %412, %415, %421, %427, %433, %439 in 0 : vector<16x16xbf16>, vector<16x16xbf16>, vector<16x16xbf16>, vector<16x16xbf16>, vector<16x16xbf16>, vector<16x16xbf16>, vector<16x16xbf16>, vector<16x16xbf16>, vector<16x16xbf16> -> vector<144x16xbf16>
    %cst_116 = arith.constant dense<0.000000e+00> : vector<32x16xf32>
    %441 = tpu.matmul %386, %440, %cst_116 {dimension_numbers = #tpu.dot_dimension_numbers<[1], [0], [0], [1], [0, 0, 1, 1], [], []>} : vector<32x144xbf16>, vector<144x16xbf16>, vector<32x16xf32> -> vector<32x16xf32>
    %442 = vector.broadcast %387 : vector<32x1xf32> to vector<32x16xf32>
    %443 = arith.addf %441, %442 : vector<32x16xf32>
    %cst_117 = arith.constant 0.000000e+00 : f32
    %444 = vector.broadcast %cst_117 : f32 to vector<32x16xf32>
    %445 = arith.maximumf %443, %444 : vector<32x16xf32>
    %c0_118 = arith.constant 0 : index
    %c0_119 = arith.constant 0 : index
    %446 = vector.load %arg8[%c0_118, %c0_119] : memref<16x64xf32, #tpu.memory_space<vmem>>, vector<16x64xf32>
    %cst_120 = arith.constant dense<0.000000e+00> : vector<32x64xf32>
    %447 = tpu.matmul %445, %446, %cst_120 {dimension_numbers = #tpu.dot_dimension_numbers<[1], [0], [0], [1], [0, 0, 1, 1], [], []>} : vector<32x16xf32>, vector<16x64xf32>, vector<32x64xf32> -> vector<32x64xf32>
    %448 = tpu.concatenate %447, %383 in 0 : vector<32x64xf32>, vector<16x64xf32> -> vector<48x64xf32>
    %c0_121 = arith.constant 0 : index
    %c0_122 = arith.constant 0 : index
    %449 = vector.load %arg20[%c0_121, %c0_122] : memref<16x432xbf16, #tpu.memory_space<vmem>>, vector<16x432xbf16>
    %c0_123 = arith.constant 0 : index
    %c0_124 = arith.constant 0 : index
    %450 = vector.load %arg21[%c0_123, %c0_124] : memref<16x1xf32, #tpu.memory_space<vmem>>, vector<16x1xf32>
    %451 = arith.truncf %448 : vector<48x64xf32> to vector<48x64xbf16>
    %cst_125 = arith.constant 0.000000e+00 : bf16
    %452 = vector.broadcast %cst_125 : bf16 to vector<48x9xbf16>
    %453 = vector.extract_strided_slice %451 {offsets = [0, 0], sizes = [48, 55], strides = [1, 1]} : vector<48x64xbf16> to vector<48x55xbf16>
    %454 = tpu.concatenate %452, %453 in 1 : vector<48x9xbf16>, vector<48x55xbf16> -> vector<48x64xbf16>
    %455 = vector.extract_strided_slice %4 {offsets = [0, 0], sizes = [1, 64], strides = [1, 1]} : vector<9x64xbf16> to vector<1x64xbf16>
    %456 = vector.broadcast %455 : vector<1x64xbf16> to vector<48x64xbf16>
    %457 = arith.mulf %454, %456 : vector<48x64xbf16>
    %cst_126 = arith.constant 0.000000e+00 : bf16
    %458 = vector.broadcast %cst_126 : bf16 to vector<48x8xbf16>
    %459 = vector.extract_strided_slice %451 {offsets = [0, 0], sizes = [48, 56], strides = [1, 1]} : vector<48x64xbf16> to vector<48x56xbf16>
    %460 = tpu.concatenate %458, %459 in 1 : vector<48x8xbf16>, vector<48x56xbf16> -> vector<48x64xbf16>
    %461 = vector.extract_strided_slice %4 {offsets = [1, 0], sizes = [1, 64], strides = [1, 1]} : vector<9x64xbf16> to vector<1x64xbf16>
    %462 = vector.broadcast %461 : vector<1x64xbf16> to vector<48x64xbf16>
    %463 = arith.mulf %460, %462 : vector<48x64xbf16>
    %cst_127 = arith.constant 0.000000e+00 : bf16
    %464 = vector.broadcast %cst_127 : bf16 to vector<48x7xbf16>
    %465 = vector.extract_strided_slice %451 {offsets = [0, 0], sizes = [48, 57], strides = [1, 1]} : vector<48x64xbf16> to vector<48x57xbf16>
    %466 = tpu.concatenate %464, %465 in 1 : vector<48x7xbf16>, vector<48x57xbf16> -> vector<48x64xbf16>
    %467 = vector.extract_strided_slice %4 {offsets = [2, 0], sizes = [1, 64], strides = [1, 1]} : vector<9x64xbf16> to vector<1x64xbf16>
    %468 = vector.broadcast %467 : vector<1x64xbf16> to vector<48x64xbf16>
    %469 = arith.mulf %466, %468 : vector<48x64xbf16>
    %cst_128 = arith.constant 0.000000e+00 : bf16
    %470 = vector.broadcast %cst_128 : bf16 to vector<48x1xbf16>
    %471 = vector.extract_strided_slice %451 {offsets = [0, 0], sizes = [48, 63], strides = [1, 1]} : vector<48x64xbf16> to vector<48x63xbf16>
    %472 = tpu.concatenate %470, %471 in 1 : vector<48x1xbf16>, vector<48x63xbf16> -> vector<48x64xbf16>
    %473 = vector.extract_strided_slice %4 {offsets = [3, 0], sizes = [1, 64], strides = [1, 1]} : vector<9x64xbf16> to vector<1x64xbf16>
    %474 = vector.broadcast %473 : vector<1x64xbf16> to vector<48x64xbf16>
    %475 = arith.mulf %472, %474 : vector<48x64xbf16>
    %476 = vector.extract_strided_slice %4 {offsets = [4, 0], sizes = [1, 64], strides = [1, 1]} : vector<9x64xbf16> to vector<1x64xbf16>
    %477 = vector.broadcast %476 : vector<1x64xbf16> to vector<48x64xbf16>
    %478 = arith.mulf %451, %477 : vector<48x64xbf16>
    %cst_129 = arith.constant 0.000000e+00 : bf16
    %479 = vector.broadcast %cst_129 : bf16 to vector<48x1xbf16>
    %480 = vector.extract_strided_slice %451 {offsets = [0, 1], sizes = [48, 63], strides = [1, 1]} : vector<48x64xbf16> to vector<48x63xbf16>
    %481 = tpu.concatenate %480, %479 in 1 : vector<48x63xbf16>, vector<48x1xbf16> -> vector<48x64xbf16>
    %482 = vector.extract_strided_slice %4 {offsets = [5, 0], sizes = [1, 64], strides = [1, 1]} : vector<9x64xbf16> to vector<1x64xbf16>
    %483 = vector.broadcast %482 : vector<1x64xbf16> to vector<48x64xbf16>
    %484 = arith.mulf %481, %483 : vector<48x64xbf16>
    %cst_130 = arith.constant 0.000000e+00 : bf16
    %485 = vector.broadcast %cst_130 : bf16 to vector<48x7xbf16>
    %486 = vector.extract_strided_slice %451 {offsets = [0, 7], sizes = [48, 57], strides = [1, 1]} : vector<48x64xbf16> to vector<48x57xbf16>
    %487 = tpu.concatenate %486, %485 in 1 : vector<48x57xbf16>, vector<48x7xbf16> -> vector<48x64xbf16>
    %488 = vector.extract_strided_slice %4 {offsets = [6, 0], sizes = [1, 64], strides = [1, 1]} : vector<9x64xbf16> to vector<1x64xbf16>
    %489 = vector.broadcast %488 : vector<1x64xbf16> to vector<48x64xbf16>
    %490 = arith.mulf %487, %489 : vector<48x64xbf16>
    %cst_131 = arith.constant 0.000000e+00 : bf16
    %491 = vector.broadcast %cst_131 : bf16 to vector<48x8xbf16>
    %492 = vector.extract_strided_slice %451 {offsets = [0, 8], sizes = [48, 56], strides = [1, 1]} : vector<48x64xbf16> to vector<48x56xbf16>
    %493 = tpu.concatenate %492, %491 in 1 : vector<48x56xbf16>, vector<48x8xbf16> -> vector<48x64xbf16>
    %494 = vector.extract_strided_slice %4 {offsets = [7, 0], sizes = [1, 64], strides = [1, 1]} : vector<9x64xbf16> to vector<1x64xbf16>
    %495 = vector.broadcast %494 : vector<1x64xbf16> to vector<48x64xbf16>
    %496 = arith.mulf %493, %495 : vector<48x64xbf16>
    %cst_132 = arith.constant 0.000000e+00 : bf16
    %497 = vector.broadcast %cst_132 : bf16 to vector<48x9xbf16>
    %498 = vector.extract_strided_slice %451 {offsets = [0, 9], sizes = [48, 55], strides = [1, 1]} : vector<48x64xbf16> to vector<48x55xbf16>
    %499 = tpu.concatenate %498, %497 in 1 : vector<48x55xbf16>, vector<48x9xbf16> -> vector<48x64xbf16>
    %500 = vector.extract_strided_slice %4 {offsets = [8, 0], sizes = [1, 64], strides = [1, 1]} : vector<9x64xbf16> to vector<1x64xbf16>
    %501 = vector.broadcast %500 : vector<1x64xbf16> to vector<48x64xbf16>
    %502 = arith.mulf %499, %501 : vector<48x64xbf16>
    %503 = tpu.concatenate %457, %463, %469, %475, %478, %484, %490, %496, %502 in 0 : vector<48x64xbf16>, vector<48x64xbf16>, vector<48x64xbf16>, vector<48x64xbf16>, vector<48x64xbf16>, vector<48x64xbf16>, vector<48x64xbf16>, vector<48x64xbf16>, vector<48x64xbf16> -> vector<432x64xbf16>
    %cst_133 = arith.constant dense<0.000000e+00> : vector<16x64xf32>
    %504 = tpu.matmul %449, %503, %cst_133 {dimension_numbers = #tpu.dot_dimension_numbers<[1], [0], [0], [1], [0, 0, 1, 1], [], []>} : vector<16x432xbf16>, vector<432x64xbf16>, vector<16x64xf32> -> vector<16x64xf32>
    %505 = vector.broadcast %450 : vector<16x1xf32> to vector<16x64xf32>
    %506 = arith.addf %504, %505 : vector<16x64xf32>
    %cst_134 = arith.constant 0.000000e+00 : f32
    %507 = vector.broadcast %cst_134 : f32 to vector<16x64xf32>
    %508 = arith.maximumf %506, %507 : vector<16x64xf32>
    %c0_135 = arith.constant 0 : index
    %c0_136 = arith.constant 0 : index
    %509 = vector.load %arg9[%c0_135, %c0_136] : memref<64x256xf32, #tpu.memory_space<vmem>>, vector<64x256xf32>
    %cst_137 = arith.constant dense<0.000000e+00> : vector<16x256xf32>
    %510 = tpu.matmul %508, %509, %cst_137 {dimension_numbers = #tpu.dot_dimension_numbers<[1], [0], [0], [1], [0, 0, 1, 1], [], []>} : vector<16x64xf32>, vector<64x256xf32>, vector<16x256xf32> -> vector<16x256xf32>
    %511 = tpu.concatenate %510, %321 in 0 : vector<16x256xf32>, vector<8x256xf32> -> vector<24x256xf32>
    %c0_138 = arith.constant 0 : index
    %c0_139 = arith.constant 0 : index
    %512 = vector.load %arg22[%c0_138, %c0_139] : memref<8x216xbf16, #tpu.memory_space<vmem>>, vector<8x216xbf16>
    %c0_140 = arith.constant 0 : index
    %c0_141 = arith.constant 0 : index
    %513 = vector.load %arg23[%c0_140, %c0_141] : memref<8x1xf32, #tpu.memory_space<vmem>>, vector<8x1xf32>
    %514 = arith.truncf %511 : vector<24x256xf32> to vector<24x256xbf16>
    %cst_142 = arith.constant 0.000000e+00 : bf16
    %515 = vector.broadcast %cst_142 : bf16 to vector<24x17xbf16>
    %516 = vector.extract_strided_slice %514 {offsets = [0, 0], sizes = [24, 239], strides = [1, 1]} : vector<24x256xbf16> to vector<24x239xbf16>
    %517 = tpu.concatenate %515, %516 in 1 : vector<24x17xbf16>, vector<24x239xbf16> -> vector<24x256xbf16>
    %518 = vector.extract_strided_slice %3 {offsets = [0, 0], sizes = [1, 256], strides = [1, 1]} : vector<9x256xbf16> to vector<1x256xbf16>
    %519 = vector.broadcast %518 : vector<1x256xbf16> to vector<24x256xbf16>
    %520 = arith.mulf %517, %519 : vector<24x256xbf16>
    %cst_143 = arith.constant 0.000000e+00 : bf16
    %521 = vector.broadcast %cst_143 : bf16 to vector<24x16xbf16>
    %522 = vector.extract_strided_slice %514 {offsets = [0, 0], sizes = [24, 240], strides = [1, 1]} : vector<24x256xbf16> to vector<24x240xbf16>
    %523 = tpu.concatenate %521, %522 in 1 : vector<24x16xbf16>, vector<24x240xbf16> -> vector<24x256xbf16>
    %524 = vector.extract_strided_slice %3 {offsets = [1, 0], sizes = [1, 256], strides = [1, 1]} : vector<9x256xbf16> to vector<1x256xbf16>
    %525 = vector.broadcast %524 : vector<1x256xbf16> to vector<24x256xbf16>
    %526 = arith.mulf %523, %525 : vector<24x256xbf16>
    %cst_144 = arith.constant 0.000000e+00 : bf16
    %527 = vector.broadcast %cst_144 : bf16 to vector<24x15xbf16>
    %528 = vector.extract_strided_slice %514 {offsets = [0, 0], sizes = [24, 241], strides = [1, 1]} : vector<24x256xbf16> to vector<24x241xbf16>
    %529 = tpu.concatenate %527, %528 in 1 : vector<24x15xbf16>, vector<24x241xbf16> -> vector<24x256xbf16>
    %530 = vector.extract_strided_slice %3 {offsets = [2, 0], sizes = [1, 256], strides = [1, 1]} : vector<9x256xbf16> to vector<1x256xbf16>
    %531 = vector.broadcast %530 : vector<1x256xbf16> to vector<24x256xbf16>
    %532 = arith.mulf %529, %531 : vector<24x256xbf16>
    %cst_145 = arith.constant 0.000000e+00 : bf16
    %533 = vector.broadcast %cst_145 : bf16 to vector<24x1xbf16>
    %534 = vector.extract_strided_slice %514 {offsets = [0, 0], sizes = [24, 255], strides = [1, 1]} : vector<24x256xbf16> to vector<24x255xbf16>
    %535 = tpu.concatenate %533, %534 in 1 : vector<24x1xbf16>, vector<24x255xbf16> -> vector<24x256xbf16>
    %536 = vector.extract_strided_slice %3 {offsets = [3, 0], sizes = [1, 256], strides = [1, 1]} : vector<9x256xbf16> to vector<1x256xbf16>
    %537 = vector.broadcast %536 : vector<1x256xbf16> to vector<24x256xbf16>
    %538 = arith.mulf %535, %537 : vector<24x256xbf16>
    %539 = vector.extract_strided_slice %3 {offsets = [4, 0], sizes = [1, 256], strides = [1, 1]} : vector<9x256xbf16> to vector<1x256xbf16>
    %540 = vector.broadcast %539 : vector<1x256xbf16> to vector<24x256xbf16>
    %541 = arith.mulf %514, %540 : vector<24x256xbf16>
    %cst_146 = arith.constant 0.000000e+00 : bf16
    %542 = vector.broadcast %cst_146 : bf16 to vector<24x1xbf16>
    %543 = vector.extract_strided_slice %514 {offsets = [0, 1], sizes = [24, 255], strides = [1, 1]} : vector<24x256xbf16> to vector<24x255xbf16>
    %544 = tpu.concatenate %543, %542 in 1 : vector<24x255xbf16>, vector<24x1xbf16> -> vector<24x256xbf16>
    %545 = vector.extract_strided_slice %3 {offsets = [5, 0], sizes = [1, 256], strides = [1, 1]} : vector<9x256xbf16> to vector<1x256xbf16>
    %546 = vector.broadcast %545 : vector<1x256xbf16> to vector<24x256xbf16>
    %547 = arith.mulf %544, %546 : vector<24x256xbf16>
    %cst_147 = arith.constant 0.000000e+00 : bf16
    %548 = vector.broadcast %cst_147 : bf16 to vector<24x15xbf16>
    %549 = vector.extract_strided_slice %514 {offsets = [0, 15], sizes = [24, 241], strides = [1, 1]} : vector<24x256xbf16> to vector<24x241xbf16>
    %550 = tpu.concatenate %549, %548 in 1 : vector<24x241xbf16>, vector<24x15xbf16> -> vector<24x256xbf16>
    %551 = vector.extract_strided_slice %3 {offsets = [6, 0], sizes = [1, 256], strides = [1, 1]} : vector<9x256xbf16> to vector<1x256xbf16>
    %552 = vector.broadcast %551 : vector<1x256xbf16> to vector<24x256xbf16>
    %553 = arith.mulf %550, %552 : vector<24x256xbf16>
    %cst_148 = arith.constant 0.000000e+00 : bf16
    %554 = vector.broadcast %cst_148 : bf16 to vector<24x16xbf16>
    %555 = vector.extract_strided_slice %514 {offsets = [0, 16], sizes = [24, 240], strides = [1, 1]} : vector<24x256xbf16> to vector<24x240xbf16>
    %556 = tpu.concatenate %555, %554 in 1 : vector<24x240xbf16>, vector<24x16xbf16> -> vector<24x256xbf16>
    %557 = vector.extract_strided_slice %3 {offsets = [7, 0], sizes = [1, 256], strides = [1, 1]} : vector<9x256xbf16> to vector<1x256xbf16>
    %558 = vector.broadcast %557 : vector<1x256xbf16> to vector<24x256xbf16>
    %559 = arith.mulf %556, %558 : vector<24x256xbf16>
    %cst_149 = arith.constant 0.000000e+00 : bf16
    %560 = vector.broadcast %cst_149 : bf16 to vector<24x17xbf16>
    %561 = vector.extract_strided_slice %514 {offsets = [0, 17], sizes = [24, 239], strides = [1, 1]} : vector<24x256xbf16> to vector<24x239xbf16>
    %562 = tpu.concatenate %561, %560 in 1 : vector<24x239xbf16>, vector<24x17xbf16> -> vector<24x256xbf16>
    %563 = vector.extract_strided_slice %3 {offsets = [8, 0], sizes = [1, 256], strides = [1, 1]} : vector<9x256xbf16> to vector<1x256xbf16>
    %564 = vector.broadcast %563 : vector<1x256xbf16> to vector<24x256xbf16>
    %565 = arith.mulf %562, %564 : vector<24x256xbf16>
    %566 = tpu.concatenate %520, %526, %532, %538, %541, %547, %553, %559, %565 in 0 : vector<24x256xbf16>, vector<24x256xbf16>, vector<24x256xbf16>, vector<24x256xbf16>, vector<24x256xbf16>, vector<24x256xbf16>, vector<24x256xbf16>, vector<24x256xbf16>, vector<24x256xbf16> -> vector<216x256xbf16>
    %cst_150 = arith.constant dense<0.000000e+00> : vector<8x256xf32>
    %567 = tpu.matmul %512, %566, %cst_150 {dimension_numbers = #tpu.dot_dimension_numbers<[1], [0], [0], [1], [0, 0, 1, 1], [], []>} : vector<8x216xbf16>, vector<216x256xbf16>, vector<8x256xf32> -> vector<8x256xf32>
    %568 = vector.broadcast %513 : vector<8x1xf32> to vector<8x256xf32>
    %569 = arith.addf %567, %568 : vector<8x256xf32>
    %cst_151 = arith.constant 0.000000e+00 : f32
    %570 = vector.broadcast %cst_151 : f32 to vector<8x256xf32>
    %571 = arith.maximumf %569, %570 : vector<8x256xf32>
    %c0_152 = arith.constant 0 : index
    %c0_153 = arith.constant 0 : index
    %572 = vector.load %arg24[%c0_152, %c0_153] : memref<3x72xbf16, #tpu.memory_space<vmem>>, vector<3x72xbf16>
    %c0_154 = arith.constant 0 : index
    %c0_155 = arith.constant 0 : index
    %573 = vector.load %arg25[%c0_154, %c0_155] : memref<3x1xf32, #tpu.memory_space<vmem>>, vector<3x1xf32>
    %574 = arith.truncf %571 : vector<8x256xf32> to vector<8x256xbf16>
    %cst_156 = arith.constant 0.000000e+00 : bf16
    %575 = vector.broadcast %cst_156 : bf16 to vector<8x17xbf16>
    %576 = vector.extract_strided_slice %574 {offsets = [0, 0], sizes = [8, 239], strides = [1, 1]} : vector<8x256xbf16> to vector<8x239xbf16>
    %577 = tpu.concatenate %575, %576 in 1 : vector<8x17xbf16>, vector<8x239xbf16> -> vector<8x256xbf16>
    %578 = vector.extract_strided_slice %3 {offsets = [0, 0], sizes = [1, 256], strides = [1, 1]} : vector<9x256xbf16> to vector<1x256xbf16>
    %579 = vector.broadcast %578 : vector<1x256xbf16> to vector<8x256xbf16>
    %580 = arith.mulf %577, %579 : vector<8x256xbf16>
    %cst_157 = arith.constant 0.000000e+00 : bf16
    %581 = vector.broadcast %cst_157 : bf16 to vector<8x16xbf16>
    %582 = vector.extract_strided_slice %574 {offsets = [0, 0], sizes = [8, 240], strides = [1, 1]} : vector<8x256xbf16> to vector<8x240xbf16>
    %583 = tpu.concatenate %581, %582 in 1 : vector<8x16xbf16>, vector<8x240xbf16> -> vector<8x256xbf16>
    %584 = vector.extract_strided_slice %3 {offsets = [1, 0], sizes = [1, 256], strides = [1, 1]} : vector<9x256xbf16> to vector<1x256xbf16>
    %585 = vector.broadcast %584 : vector<1x256xbf16> to vector<8x256xbf16>
    %586 = arith.mulf %583, %585 : vector<8x256xbf16>
    %cst_158 = arith.constant 0.000000e+00 : bf16
    %587 = vector.broadcast %cst_158 : bf16 to vector<8x15xbf16>
    %588 = vector.extract_strided_slice %574 {offsets = [0, 0], sizes = [8, 241], strides = [1, 1]} : vector<8x256xbf16> to vector<8x241xbf16>
    %589 = tpu.concatenate %587, %588 in 1 : vector<8x15xbf16>, vector<8x241xbf16> -> vector<8x256xbf16>
    %590 = vector.extract_strided_slice %3 {offsets = [2, 0], sizes = [1, 256], strides = [1, 1]} : vector<9x256xbf16> to vector<1x256xbf16>
    %591 = vector.broadcast %590 : vector<1x256xbf16> to vector<8x256xbf16>
    %592 = arith.mulf %589, %591 : vector<8x256xbf16>
    %cst_159 = arith.constant 0.000000e+00 : bf16
    %593 = vector.broadcast %cst_159 : bf16 to vector<8x1xbf16>
    %594 = vector.extract_strided_slice %574 {offsets = [0, 0], sizes = [8, 255], strides = [1, 1]} : vector<8x256xbf16> to vector<8x255xbf16>
    %595 = tpu.concatenate %593, %594 in 1 : vector<8x1xbf16>, vector<8x255xbf16> -> vector<8x256xbf16>
    %596 = vector.extract_strided_slice %3 {offsets = [3, 0], sizes = [1, 256], strides = [1, 1]} : vector<9x256xbf16> to vector<1x256xbf16>
    %597 = vector.broadcast %596 : vector<1x256xbf16> to vector<8x256xbf16>
    %598 = arith.mulf %595, %597 : vector<8x256xbf16>
    %599 = vector.extract_strided_slice %3 {offsets = [4, 0], sizes = [1, 256], strides = [1, 1]} : vector<9x256xbf16> to vector<1x256xbf16>
    %600 = vector.broadcast %599 : vector<1x256xbf16> to vector<8x256xbf16>
    %601 = arith.mulf %574, %600 : vector<8x256xbf16>
    %cst_160 = arith.constant 0.000000e+00 : bf16
    %602 = vector.broadcast %cst_160 : bf16 to vector<8x1xbf16>
    %603 = vector.extract_strided_slice %574 {offsets = [0, 1], sizes = [8, 255], strides = [1, 1]} : vector<8x256xbf16> to vector<8x255xbf16>
    %604 = tpu.concatenate %603, %602 in 1 : vector<8x255xbf16>, vector<8x1xbf16> -> vector<8x256xbf16>
    %605 = vector.extract_strided_slice %3 {offsets = [5, 0], sizes = [1, 256], strides = [1, 1]} : vector<9x256xbf16> to vector<1x256xbf16>
    %606 = vector.broadcast %605 : vector<1x256xbf16> to vector<8x256xbf16>
    %607 = arith.mulf %604, %606 : vector<8x256xbf16>
    %cst_161 = arith.constant 0.000000e+00 : bf16
    %608 = vector.broadcast %cst_161 : bf16 to vector<8x15xbf16>
    %609 = vector.extract_strided_slice %574 {offsets = [0, 15], sizes = [8, 241], strides = [1, 1]} : vector<8x256xbf16> to vector<8x241xbf16>
    %610 = tpu.concatenate %609, %608 in 1 : vector<8x241xbf16>, vector<8x15xbf16> -> vector<8x256xbf16>
    %611 = vector.extract_strided_slice %3 {offsets = [6, 0], sizes = [1, 256], strides = [1, 1]} : vector<9x256xbf16> to vector<1x256xbf16>
    %612 = vector.broadcast %611 : vector<1x256xbf16> to vector<8x256xbf16>
    %613 = arith.mulf %610, %612 : vector<8x256xbf16>
    %cst_162 = arith.constant 0.000000e+00 : bf16
    %614 = vector.broadcast %cst_162 : bf16 to vector<8x16xbf16>
    %615 = vector.extract_strided_slice %574 {offsets = [0, 16], sizes = [8, 240], strides = [1, 1]} : vector<8x256xbf16> to vector<8x240xbf16>
    %616 = tpu.concatenate %615, %614 in 1 : vector<8x240xbf16>, vector<8x16xbf16> -> vector<8x256xbf16>
    %617 = vector.extract_strided_slice %3 {offsets = [7, 0], sizes = [1, 256], strides = [1, 1]} : vector<9x256xbf16> to vector<1x256xbf16>
    %618 = vector.broadcast %617 : vector<1x256xbf16> to vector<8x256xbf16>
    %619 = arith.mulf %616, %618 : vector<8x256xbf16>
    %cst_163 = arith.constant 0.000000e+00 : bf16
    %620 = vector.broadcast %cst_163 : bf16 to vector<8x17xbf16>
    %621 = vector.extract_strided_slice %574 {offsets = [0, 17], sizes = [8, 239], strides = [1, 1]} : vector<8x256xbf16> to vector<8x239xbf16>
    %622 = tpu.concatenate %621, %620 in 1 : vector<8x239xbf16>, vector<8x17xbf16> -> vector<8x256xbf16>
    %623 = vector.extract_strided_slice %3 {offsets = [8, 0], sizes = [1, 256], strides = [1, 1]} : vector<9x256xbf16> to vector<1x256xbf16>
    %624 = vector.broadcast %623 : vector<1x256xbf16> to vector<8x256xbf16>
    %625 = arith.mulf %622, %624 : vector<8x256xbf16>
    %626 = tpu.concatenate %580, %586, %592, %598, %601, %607, %613, %619, %625 in 0 : vector<8x256xbf16>, vector<8x256xbf16>, vector<8x256xbf16>, vector<8x256xbf16>, vector<8x256xbf16>, vector<8x256xbf16>, vector<8x256xbf16>, vector<8x256xbf16>, vector<8x256xbf16> -> vector<72x256xbf16>
    %cst_164 = arith.constant dense<0.000000e+00> : vector<3x256xf32>
    %627 = tpu.matmul %572, %626, %cst_164 {dimension_numbers = #tpu.dot_dimension_numbers<[1], [0], [0], [1], [0, 0, 1, 1], [], []>} : vector<3x72xbf16>, vector<72x256xbf16>, vector<3x256xf32> -> vector<3x256xf32>
    %628 = vector.broadcast %573 : vector<3x1xf32> to vector<3x256xf32>
    %629 = arith.addf %627, %628 : vector<3x256xf32>
    %630 = math.tanh %629 : vector<3x256xf32>
    %631 = tpu.concatenate %630, %261, %195 in 0 : vector<3x256xf32>, vector<8x256xf32>, vector<2x256xf32> -> vector<13x256xf32>
    %c0_165 = arith.constant 0 : index
    %c0_166 = arith.constant 0 : index
    %c0_167 = arith.constant 0 : index
    %632 = vector.load %arg26[%c0_165, %c0_166, %c0_167] : memref<1x13x256xf32, #tpu.memory_space<vmem>>, vector<1x13x256xf32>
    %633 = vector.shape_cast %632 : vector<1x13x256xf32> to vector<13x256xf32>
    %634 = vector.shape_cast %631 : vector<13x256xf32> to vector<1x13x256xf32>
    tpu.vector_store %arg26[%c0_165, %c0_166, %c0_167], %634 {strides = array<i32>} : memref<1x13x256xf32, #tpu.memory_space<vmem>>, vector<1x13x256xf32>,
    return
  }
  func.func @transform_0(%arg0: i32) -> (i32, i32, i32) {
    %c0_i32 = arith.constant 0 : i32
    %c0_i32_0 = arith.constant 0 : i32
    %c0_i32_1 = arith.constant 0 : i32
    return %arg0, %c0_i32, %c0_i32_0 : i32, i32, i32
  }
  func.func @transform_1(%arg0: i32) -> (i32, i32) {
    %c0_i32 = arith.constant 0 : i32
    %c0_i32_0 = arith.constant 0 : i32
    %c0_i32_1 = arith.constant 0 : i32
    return %c0_i32, %c0_i32_0 : i32, i32
  }
  func.func @transform_2(%arg0: i32) -> (i32, i32) {
    %c0_i32 = arith.constant 0 : i32
    %c0_i32_0 = arith.constant 0 : i32
    %c0_i32_1 = arith.constant 0 : i32
    return %c0_i32, %c0_i32_0 : i32, i32
  }
  func.func @transform_3(%arg0: i32) -> (i32, i32) {
    %c0_i32 = arith.constant 0 : i32
    %c0_i32_0 = arith.constant 0 : i32
    %c0_i32_1 = arith.constant 0 : i32
    return %c0_i32, %c0_i32_0 : i32, i32
  }
  func.func @transform_4(%arg0: i32) -> (i32, i32) {
    %c0_i32 = arith.constant 0 : i32
    %c0_i32_0 = arith.constant 0 : i32
    %c0_i32_1 = arith.constant 0 : i32
    return %c0_i32, %c0_i32_0 : i32, i32
  }
  func.func @transform_5(%arg0: i32) -> (i32, i32) {
    %c0_i32 = arith.constant 0 : i32
    %c0_i32_0 = arith.constant 0 : i32
    %c0_i32_1 = arith.constant 0 : i32
    return %c0_i32, %c0_i32_0 : i32, i32
  }
  func.func @transform_6(%arg0: i32) -> (i32, i32) {
    %c0_i32 = arith.constant 0 : i32
    %c0_i32_0 = arith.constant 0 : i32
    %c0_i32_1 = arith.constant 0 : i32
    return %c0_i32, %c0_i32_0 : i32, i32
  }
  func.func @transform_7(%arg0: i32) -> (i32, i32) {
    %c0_i32 = arith.constant 0 : i32
    %c0_i32_0 = arith.constant 0 : i32
    %c0_i32_1 = arith.constant 0 : i32
    return %c0_i32, %c0_i32_0 : i32, i32
  }
  func.func @transform_8(%arg0: i32) -> (i32, i32) {
    %c0_i32 = arith.constant 0 : i32
    %c0_i32_0 = arith.constant 0 : i32
    %c0_i32_1 = arith.constant 0 : i32
    return %c0_i32, %c0_i32_0 : i32, i32
  }
  func.func @transform_9(%arg0: i32) -> (i32, i32) {
    %c0_i32 = arith.constant 0 : i32
    %c0_i32_0 = arith.constant 0 : i32
    %c0_i32_1 = arith.constant 0 : i32
    return %c0_i32, %c0_i32_0 : i32, i32
  }
  func.func @transform_10(%arg0: i32) -> (i32, i32) {
    %c0_i32 = arith.constant 0 : i32
    %c0_i32_0 = arith.constant 0 : i32
    %c0_i32_1 = arith.constant 0 : i32
    return %c0_i32, %c0_i32_0 : i32, i32
  }
  func.func @transform_11(%arg0: i32) -> (i32, i32) {
    %c0_i32 = arith.constant 0 : i32
    %c0_i32_0 = arith.constant 0 : i32
    %c0_i32_1 = arith.constant 0 : i32
    return %c0_i32, %c0_i32_0 : i32, i32
  }
  func.func @transform_12(%arg0: i32) -> (i32, i32) {
    %c0_i32 = arith.constant 0 : i32
    %c0_i32_0 = arith.constant 0 : i32
    %c0_i32_1 = arith.constant 0 : i32
    return %c0_i32, %c0_i32_0 : i32, i32
  }
  func.func @transform_13(%arg0: i32) -> (i32, i32) {
    %c0_i32 = arith.constant 0 : i32
    %c0_i32_0 = arith.constant 0 : i32
    %c0_i32_1 = arith.constant 0 : i32
    return %c0_i32, %c0_i32_0 : i32, i32
  }
  func.func @transform_14(%arg0: i32) -> (i32, i32) {
    %c0_i32 = arith.constant 0 : i32
    %c0_i32_0 = arith.constant 0 : i32
    %c0_i32_1 = arith.constant 0 : i32
    return %c0_i32, %c0_i32_0 : i32, i32
  }
  func.func @transform_15(%arg0: i32) -> (i32, i32) {
    %c0_i32 = arith.constant 0 : i32
    %c0_i32_0 = arith.constant 0 : i32
    %c0_i32_1 = arith.constant 0 : i32
    return %c0_i32, %c0_i32_0 : i32, i32
  }
  func.func @transform_16(%arg0: i32) -> (i32, i32) {
    %c0_i32 = arith.constant 0 : i32
    %c0_i32_0 = arith.constant 0 : i32
    %c0_i32_1 = arith.constant 0 : i32
    return %c0_i32, %c0_i32_0 : i32, i32
  }
  func.func @transform_17(%arg0: i32) -> (i32, i32) {
    %c0_i32 = arith.constant 0 : i32
    %c0_i32_0 = arith.constant 0 : i32
    %c0_i32_1 = arith.constant 0 : i32
    return %c0_i32, %c0_i32_0 : i32, i32
  }
  func.func @transform_18(%arg0: i32) -> (i32, i32) {
    %c0_i32 = arith.constant 0 : i32
    %c0_i32_0 = arith.constant 0 : i32
    %c0_i32_1 = arith.constant 0 : i32
    return %c0_i32, %c0_i32_0 : i32, i32
  }
  func.func @transform_19(%arg0: i32) -> (i32, i32) {
    %c0_i32 = arith.constant 0 : i32
    %c0_i32_0 = arith.constant 0 : i32
    %c0_i32_1 = arith.constant 0 : i32
    return %c0_i32, %c0_i32_0 : i32, i32
  }
  func.func @transform_20(%arg0: i32) -> (i32, i32) {
    %c0_i32 = arith.constant 0 : i32
    %c0_i32_0 = arith.constant 0 : i32
    %c0_i32_1 = arith.constant 0 : i32
    return %c0_i32, %c0_i32_0 : i32, i32
  }
  func.func @transform_21(%arg0: i32) -> (i32, i32) {
    %c0_i32 = arith.constant 0 : i32
    %c0_i32_0 = arith.constant 0 : i32
    %c0_i32_1 = arith.constant 0 : i32
    return %c0_i32, %c0_i32_0 : i32, i32
  }
  func.func @transform_22(%arg0: i32) -> (i32, i32) {
    %c0_i32 = arith.constant 0 : i32
    %c0_i32_0 = arith.constant 0 : i32
    %c0_i32_1 = arith.constant 0 : i32
    return %c0_i32, %c0_i32_0 : i32, i32
  }
  func.func @transform_23(%arg0: i32) -> (i32, i32) {
    %c0_i32 = arith.constant 0 : i32
    %c0_i32_0 = arith.constant 0 : i32
    %c0_i32_1 = arith.constant 0 : i32
    return %c0_i32, %c0_i32_0 : i32, i32
  }
  func.func @transform_24(%arg0: i32) -> (i32, i32) {
    %c0_i32 = arith.constant 0 : i32
    %c0_i32_0 = arith.constant 0 : i32
    %c0_i32_1 = arith.constant 0 : i32
    return %c0_i32, %c0_i32_0 : i32, i32
  }
  func.func @transform_25(%arg0: i32) -> (i32, i32, i32) {
    %c0_i32 = arith.constant 0 : i32
    %c0_i32_0 = arith.constant 0 : i32
    %c0_i32_1 = arith.constant 0 : i32
    return %arg0, %c0_i32, %c0_i32_0 : i32, i32, i32
  }
}

</mosaic_0001>

<bundles_post_ra>
// kernel: render_net_forward.1
= control target key start
LH: loop header
LB: loop body
LE: loop exit
PB: predicated region body
PF: predicated region fallthrough
CT: control target
= control target key end

     0   :  { %s5003_s29 = smov 0   ;;  %s6573_s0 = inlined_call_operand.vmem [shape: f32[2,2,256], index: 0, kind: input, shape index: {}]   ;;  %s6574_s1 = inlined_call_operand.vmem [shape: f32[8,256], index: 1, kind: input, shape index: {}]   ;;  %s6575_s2 = inlined_call_operand.vmem [shape: bf16[9,256], index: 2, kind: input, shape index: {}]   ;;  %s6576_s3 = inlined_call_operand.vmem [shape: bf16[9,64], index: 3, kind: input, shape index: {}]   ;;  %s6577_s4 = inlined_call_operand.vmem [shape: bf16[9,16], index: 4, kind: input, shape index: {}]   ;;  %s6578_s5 = inlined_call_operand.vmem [shape: f32[256,64], index: 5, kind: input, shape index: {}]   ;;  %s6579_s6 = inlined_call_operand.vmem [shape: f32[64,16], index: 6, kind: input, shape index: {}]   ;;  %s6580_s7 = inlined_call_operand.vmem [shape: f32[16,64], index: 7, kind: input, shape index: {}]   ;;  %s6581_s8 = inlined_call_operand.vmem [shape: f32[64,256], index: 8, kind: input, shape index: {}]   ;;  %s6582_s9 = inlined_call_operand.vmem [shape: bf16[16,90], index: 9, kind: input, shape index: {}]   ;;  %s6583_s10 = inlined_call_operand.vmem [shape: f32[16,1], index: 10, kind: input, shape index: {}]   ;;  %s6584_s11 = inlined_call_operand.vmem [shape: bf16[2,144], index: 11, kind: input, shape index: {}]   ;;  %s6585_s12 = inlined_call_operand.vmem [shape: f32[2,1], index: 12, kind: input, shape index: {}]   ;;  %s6586_s13 = inlined_call_operand.vmem [shape: bf16[8,72], index: 13, kind: input, shape index: {}]   ;;  %s6587_s14 = inlined_call_operand.vmem [shape: f32[8,1], index: 14, kind: input, shape index: {}]   ;;  %s6588_s15 = inlined_call_operand.vmem [shape: bf16[16,72], index: 15, kind: input, shape index: {}]   ;;  %s6589_s16 = inlined_call_operand.vmem [shape: f32[16,1], index: 16, kind: input, shape index: {}]   ;;  %s6590_s17 = inlined_call_operand.vmem [shape: bf16[32,144], index: 17, kind: input, shape index: {}]   ;;  %s6591_s18 = inlined_call_operand.vmem [shape: f32[32,1], index: 18, kind: input, shape index: {}]   ;;  %s6592_s19 = inlined_call_operand.vmem [shape: bf16[16,432], index: 19, kind: input, shape index: {}]   ;;  %s6593_s20 = inlined_call_operand.vmem [shape: f32[16,1], index: 20, kind: input, shape index: {}]   ;;  %s6594_s21 = inlined_call_operand.vmem [shape: bf16[8,216], index: 21, kind: input, shape index: {}]   ;;  %s6595_s22 = inlined_call_operand.vmem [shape: f32[8,1], index: 22, kind: input, shape index: {}]   ;;  %s6596_s23 = inlined_call_operand.vmem [shape: bf16[3,72], index: 23, kind: input, shape index: {}]   ;;  %s6597_s24 = inlined_call_operand.vmem [shape: f32[3,1], index: 24, kind: input, shape index: {}]   ;;  %s6598_s25 = inlined_call_operand.vmem [shape: f32[2,13,256], index: 25, kind: output, shape index: {}]  }
   0x1   :  { %6646 = sst [smem:[#allocation2_spill]] %s6573_s0 }
   0x2   :  { %6647 = sst [smem:[#allocation3_spill]] %s6574_s1 }
   0x3   :  { %6648 = sst [smem:[#allocation4_spill]] %s6575_s2 }
   0x4   :  { %6649 = sst [smem:[#allocation5_spill]] %s6576_s3 }
   0x5   :  { %6650 = sst [smem:[#allocation6_spill]] %s6577_s4 }
   0x6   :  { %6651 = sst [smem:[#allocation7_spill]] %s6578_s5 }
   0x7   :  { %6652 = sst [smem:[#allocation8_spill]] %s6579_s6 }
   0x8   :  { %6653 = sst [smem:[#allocation9_spill]] %s6580_s7 }
   0x9   :  { %6654 = sst [smem:[#allocation10_spill]] %s6581_s8 }
   0xa   :  { %6655 = sst [smem:[#allocation11_spill]] %s6582_s9 }
   0xb   :  { %6656 = sst [smem:[#allocation12_spill]] %s6583_s10 }
   0xc   :  { %6657 = sst [smem:[#allocation13_spill]] %s6584_s11 }
   0xd   :  { %6658 = sst [smem:[#allocation14_spill]] %s6585_s12 }
   0xe   :  { %6659 = sst [smem:[#allocation15_spill]] %s6586_s13 }
   0xf   :  { %6660 = sst [smem:[#allocation16_spill]] %s6587_s14 }
  0x10   :  { %6661 = sst [smem:[#allocation17_spill]] %s6588_s15 }
  0x11   :  { %6662 = sst [smem:[#allocation18_spill]] %s6589_s16 }
  0x12   :  { %6663 = sst [smem:[#allocation19_spill]] %s6598_s25 }
  0x13 LB: > { %s4404_s2 = sadd.s32 4294967295, %s4846_s29   ;;  %p4408_p0 = scmp.ge.s32.totalorder %s4846_s29, 1  ;;  %s4846_s29 = sphi %s5003_s29, %s35_s29  }
  0x14   : > { %p687_p1 = scmp.lt.s32.totalorder %s4846_s29, 3 }
  0x16   : > { %p688_p2 = pnand %p4408_p0, %p687_p1 }
  0x17   : > { %p755_p3 = scmp.lt.s32.totalorder (!%p688_p2), %s4404_s2, 1  ;;  %s6664_s7 = sld [smem:[#allocation3_spill]] (!%p688_p2)  ;;  %v784_v4 = vlaneseq (!%p688_p2)  ;;  %v4848_v13 = vmov (!%p688_p2), 1966171168  }
  0x18   : > { %691 = sbr.rel (%p688_p2) target bundleno = 4539 (0x11bb), region = 120  ;;  %s6665_s8 = sld [smem:[#allocation2_spill]] (!%p688_p2)  ;;  %v973_v14 = vunpack.c.l.s4 (!%p688_p2), %v4848_v13 }
  0x19   : > { %v5026_v7 = vshrl.u32 (!%p688_p2), %v784_v4, 7  ;;  %s6622_s9 = smov (!%p688_p2), 17   ;;  %s6624_s5 = smov (!%p688_p2), 16  }
  0x1a   : > { %v974_v21 = vunpack.c.0.s8 (!%p688_p2), %v973_v14  ;;  %s6620_s0 = smov (!%p688_p2), 15   ;;  %s6613_s6 = smov (!%p688_p2), 1  }
  0x1b   : > { %v5029_v10 = vsub.s32 (!%p688_p2), 1, %v5026_v7  ;;  %v5032_v12 = vsub.s32 (!%p688_p2), 3, %v5026_v7  ;;  %v5035_v16 = vsub.s32 (!%p688_p2), 0, %v5026_v7  ;;  %v5038_v17 = vsub.s32 (!%p688_p2), 2, %v5026_v7  ;;  %s6611_s30 = smov (!%p688_p2), 127   ;;  %s6609_s26 = smov (!%p688_p2), 112  }
  0x1c   : > { %v5043_v23 = vadd.s32 (!%p688_p2), 8, %v5026_v7  ;;  %v5090_v60 = vsub.s32 (!%p688_p2), %v974_v21, %v5026_v7  ;;  %s6618_s1 = smov (!%p688_p2), 111   ;;  %s6666_s10 = sld [smem:[#allocation12_spill]] (!%p688_p2) }
  0x1d   : > { %v768_v0 = vld [vmem:[%s6664_s7 + $0x8] sm:$0xff] (!%p688_p2)  ;;  %s6668_s4 = sld [smem:[#allocation11_spill]] (!%p688_p2)  ;;  %s6669_s28 = smov (!%p688_p2), 1  }
  0x1e   : > { %1358 = vmatprep.mubr.f32.mxu0 (!%p688_p2), %v768_v0  ;;  %s6672_s11 = sld [smem:[#allocation13_spill]] (!%p688_p2)  ;;  %s6674_s12 = sld [smem:[#allocation14_spill]] (!%p688_p2) }
  0x1f   : > { %s6730_s2 = smov (!%p755_p3, %s4404_s2), 1  ;;  %s6675_s25 = sld [smem:[#allocation19_spill]] }
  0x20   : > { %s4454_s3 = sshll.u32 %s6730_s2, 2  ;;  %s6679_s14 = sld [smem:[#allocation16_spill]] }
  0x21   : > { %s5020_s27 = scalar_lea.vmem %s6665_s8, %s4454_s3  ;;  %s6607_s3 = smov 113  }
  0x22   : > { %v5023_v1 = vld [vmem:[%s5020_s27] sm:$0xf]  ;;  %s4455_s8 = sshll.u32 %s6730_s2, 5  ;;  %s6676_s2 = smov 17  }
  0x23   : > { %v775_v2 = vmax.f32 %v5023_v1, 0.0  ;;  %s6687_s13 = sld [smem:[#allocation15_spill]]  ;;  %s6688_s16 = sld [smem:[#allocation18_spill]] }
  0x24   : > { %s6691_s15 = sld [smem:[#allocation17_spill]] }
  0x25   : > { %v776_v3 = vmin.f32 %v775_v2, 1.0 }
  0x27   : > { %v777_v5 = vmul.f32 15.0, %v776_v3 }
  0x29   : > { %v778_v6 = vfloor.f32 %v777_v5 }
  0x2b   : > { %v4774_v8 = vtrunc.f32 %v778_v6  ;;  %v779_v11 = vsub.f32 %v777_v5, %v778_v6 }
  0x2d   : > { %v4775_v9 = vcvt.f32.s32 %v4774_v8  ;;  %v807_v19 = vsub.f32 1.0, %v779_v11  ;;  %v855_v27 = vrot.slane %v779_v11, %v5035_v16  ;;  %v859_v28 = vrot.slane %v779_v11, %v5038_v17 }
  0x2e   : > { %v943_v29 = vrot.slane %v779_v11, %v5029_v10  ;;  %v947_v41 = vrot.slane %v779_v11, %v5032_v12 }
  0x2f   : > { %v781_v15 = vadd.s32 1, %v4775_v9  ;;  %v881_v18 = vrot.slane %v4775_v9, %v5029_v10  ;;  %v885_v20 = vrot.slane %v4775_v9, %v5032_v12  ;;  %v790_v24 = vrot.slane %v4775_v9, %v5035_v16 }
  0x30   : > { %v794_v25 = vrot.slane %v4775_v9, %v5038_v17  ;;  %v812_v26 = vrot.slane %v807_v19, %v5035_v16  ;;  %v901_v34 = vrot.slane %v807_v19, %v5029_v10  ;;  %v905_v35 = vrot.slane %v807_v19, %v5032_v12 }
  0x31   : > { %vm782_vm0 = vcmp.lt.s32.totalorder %v781_v15, 15  ;;  %v889_v32 = vrot.slane %v881_v18, %v5029_v10  ;;  %v893_v33 = vrot.slane %v885_v20, %v5029_v10  ;;  %v798_v38 = vrot.slane %v790_v24, %v5035_v16 }
  0x32   : > { %v783_v22 = vsel %vm782_vm0, %v781_v15, 15  ;;  %v802_v39 = vrot.slane %v794_v25, %v5035_v16  ;;  %v816_v40 = vrot.slane %v807_v19, %v5038_v17  ;;  %v865_v42 = vrot.slane %v855_v27, %v5035_v16 }
  0x33   : > { %v834_v30 = vrot.slane %v783_v22, %v5035_v16  ;;  %v838_v31 = vrot.slane %v783_v22, %v5038_v17  ;;  %v923_v36 = vrot.slane %v783_v22, %v5029_v10  ;;  %v927_v37 = vrot.slane %v783_v22, %v5032_v12 }
  0x34   : > { %v911_v43 = vrot.slane %v901_v34, %v5029_v10  ;;  %vm894_vm1 = vcmp.eq.s32.totalorder %v5026_v7, %v889_v32  ;;  %v915_v47 = vrot.slane %v905_v35, %v5029_v10  ;;  %v953_v48 = vrot.slane %v943_v29, %v5029_v10 }
  0x35   : > { %v931_v44 = vrot.slane %v923_v36, %v5029_v10  ;;  %v935_v45 = vrot.slane %v927_v37, %v5029_v10  ;;  %v842_v46 = vrot.slane %v834_v30, %v5035_v16  ;;  %v822_v49 = vrot.slane %v812_v26, %v5035_v16 }
  0x36   : > { %v846_v50 = vrot.slane %v838_v31, %v5035_v16  ;;  %v869_v51 = vrot.slane %v859_v28, %v5035_v16  ;;  %vm895_vm2 = vcmp.eq.s32.totalorder %v5026_v7, %v893_v33  ;;  %vm803_vm3 = vcmp.eq.s32.totalorder %v5026_v7, %v798_v38 }
  0x37   : > { %vm804_vm4 = vcmp.eq.s32.totalorder %v5026_v7, %v802_v39  ;;  %vm805_vm5 = vcmp.eq.s32.totalorder %v5043_v23, %v798_v38  ;;  %v826_v52 = vrot.slane %v816_v40, %v5035_v16  ;;  %vm806_vm6 = vcmp.eq.s32.totalorder %v5043_v23, %v802_v39 }
  0x38   : > { %v916_v53 = vsel %vm894_vm1, %v911_v43, 0.0  ;;  %vm936_vm7 = vcmp.eq.s32.totalorder %v5026_v7, %v931_v44  ;;  %vm937_vm8 = vcmp.eq.s32.totalorder %v5026_v7, %v935_v45  ;;  %vm847_vm9 = vcmp.eq.s32.totalorder %v5026_v7, %v842_v46 }
  0x39   : > { %v917_v54 = vsel %vm895_vm2, %v915_v47, 0.0  ;;  %v957_v55 = vrot.slane %v947_v41, %v5029_v10  ;;  %v958_v56 = vsel %vm936_vm7, %v953_v48, 0.0  ;;  %vm848_vm10 = vcmp.eq.s32.totalorder %v5026_v7, %v846_v50 }
  0x3a   : > { %vm849_vm11 = vcmp.eq.s32.totalorder %v5043_v23, %v842_v46  ;;  %vm850_vm12 = vcmp.eq.s32.totalorder %v5043_v23, %v846_v50  ;;  %v962_v57 = vadd.f32 %v958_v56, %v916_v53  ;;  %v827_v58 = vsel %vm803_vm3, %v822_v49, 0.0 }
  0x3b   : > { %v959_v59 = vsel %vm937_vm8, %v957_v55, 0.0  ;;  %v828_v61 = vsel %vm804_vm4, %v826_v52, 0.0  ;;  %v829_v62 = vsel %vm805_vm5, %v822_v49, 0.0  ;;  %v830_v63 = vsel %vm806_vm6, %v826_v52, 0.0 }
  0x3c   : > { %v963_v0 = vadd.f32 %v959_v59, %v917_v54  ;;  %v870_v2 = vsel %vm847_vm9, %v865_v42, 0.0  ;;  %v871_v3 = vsel %vm848_vm10, %v869_v51, 0.0  ;;  %v872_v4 = vsel %vm849_vm11, %v865_v42, 0.0 }
  0x3d   : > { %v873_v5 = vsel %vm850_vm12, %v869_v51, 0.0  ;;  %vm896_vm13 = vcmp.eq.s32.totalorder %v5043_v23, %v889_v32  ;;  %vm897_vm14 = vcmp.eq.s32.totalorder %v5043_v23, %v893_v33  ;;  %vm938_vm15 = vcmp.eq.s32.totalorder %v5043_v23, %v931_v44 }
  0x3e   : > { %v970_v6 = vcombine.low %v962_v57, %v963_v0  ;;  %v971_v8 = vcombine.high %v962_v57, %v963_v0  ;;  %vm939_vm0 = vcmp.eq.s32.totalorder %v5043_v23, %v935_v45  ;;  %v5102_v9 = vadd.f32 %v870_v2, %v827_v58 }
  0x3f   : > { %v5104_v11 = vadd.f32 %v871_v3, %v828_v61  ;;  %v5108_v15 = vadd.f32 %v872_v4, %v829_v62  ;;  %v5110_v18 = vadd.f32 %v873_v5, %v830_v63  ;;  %v918_v19 = vsel %vm896_vm13, %v911_v43, 0.0 }
  0x40   : > { %v978_v13 = vrot.slane %v970_v6, %v5090_v60  ;;  %v985_v14 = vrot.slane %v971_v8, %v5090_v60  ;;  %v919_v20 = vsel %vm897_vm14, %v915_v47, 0.0  ;;  %v960_v24 = vsel %vm938_vm15, %v953_v48, 0.0 }
  0x41   : > { %v961_v25 = vsel %vm939_vm0, %v957_v55, 0.0  ;;  %v5117_v32 = vadd.f32 %v960_v24, %v918_v19  ;;  %vm1382_vm1 = vcmask 1041408   ;;  %vm1430_vm2 = vcmask 130048  }
  0x42   : > { %v986_v21 = vcombine.high %v978_v13, %v978_v13  ;;  %v994_v22 = vrot.slane %v978_v13, %v5090_v60  ;;  %v1001_v26 = vrot.slane %v985_v14, %v5090_v60  ;;  %v987_v31 = vcombine.high %v985_v14, %v985_v14 }
  0x43   : > { %v5119_v33 = vadd.f32 %v961_v25, %v919_v20  ;;  %vm1457_vm3 = vcmask 121856   ;;  %vm1397_vm4 = vcmask 138240   ;;  %vm1628_vm5 = vcmask 1044480  }
  0x44   : > { %v1077_v27 = vrot.slane %v994_v22, %v5029_v10  ;;  %v1073_v28 = vrot.slane %v994_v22, %v5035_v16  ;;  %v1008_v29 = vrot.slane %v986_v21, %v5090_v60  ;;  %v1016_v30 = vcombine.high %v994_v22, %v994_v22 }
  0x45   : > { %v1109_v45 = vrot.slane %v1001_v26, %v5029_v10  ;;  %v1015_v59 = vrot.slane %v987_v31, %v5090_v60  ;;  %v1105_v0 = vrot.slane %v1001_v26, %v5035_v16  ;;  %v1020_v2 = vcombine.low %v5117_v32, %v5119_v33 }
  0x46   : > { %v1231_v34 = vmul.f32 %v1077_v27, %v5104_v11  ;;  %v1233_v35 = vmul.f32 %v1077_v27, %v5110_v18  ;;  %v1230_v36 = vmul.f32 %v1073_v28, %v5102_v9  ;;  %v1232_v37 = vmul.f32 %v1073_v28, %v5108_v15 }
  0x47   : > { %v1085_v38 = vrot.slane %v1008_v29, %v5029_v10  ;;  %v1081_v39 = vrot.slane %v1008_v29, %v5035_v16  ;;  %v1093_v40 = vrot.slane %v1016_v30, %v5029_v10  ;;  %v1089_v41 = vrot.slane %v1016_v30, %v5035_v16 }
  0x48   : > { %v4578_v42 = vpack.c.bf16 %v1233_v35, %v1231_v34  ;;  %v4580_v43 = vpack.c.bf16 %v1232_v37, %v1230_v36  ;;  %v1018_v44 = vcombine.high %v1008_v29, %v1008_v29  ;;  %v1247_v63 = vmul.f32 %v1109_v45, %v5104_v11 }
  0x49   : > { %v1235_v46 = vmul.f32 %v1085_v38, %v5104_v11  ;;  %v1237_v47 = vmul.f32 %v1085_v38, %v5110_v18  ;;  %v1234_v48 = vmul.f32 %v1081_v39, %v5102_v9  ;;  %v1236_v49 = vmul.f32 %v1081_v39, %v5108_v15 }
  0x4a   : > { %4579 = vmatprep.subr.bf16.mxu0 %v4578_v42  ;;  %v1239_v50 = vmul.f32 %v1093_v40, %v5104_v11  ;;  %v1241_v51 = vmul.f32 %v1093_v40, %v5110_v18  ;;  %v1238_v52 = vmul.f32 %v1089_v41, %v5102_v9  ;;  %v1240_v53 = vmul.f32 %v1089_v41, %v5108_v15 }
  0x4b   : > { %4581 = vmatpush1.bf16.msra.mxu0 %v4580_v43  ;;  %v4582_v54 = vpack.c.bf16 %v1237_v47, %v1235_v46  ;;  %v4584_v55 = vpack.c.bf16 %v1236_v49, %v1234_v48  ;;  %v1101_v56 = vrot.slane %v1018_v44, %v5029_v10  ;;  %v1097_v57 = vrot.slane %v1018_v44, %v5035_v16 }
  0x4c   : > { %v4586_v58 = vpack.c.bf16 %v1241_v51, %v1239_v50  ;;  %v4588_v3 = vpack.c.bf16 %v1240_v53, %v1238_v52  ;;  %v1249_v6 = vmul.f32 %v1109_v45, %v5110_v18  ;;  %v1117_v13 = vrot.slane %v1015_v59, %v5029_v10 }
  0x4d   : > { %4583 = vmatprep.subr.bf16.mxu0 %v4582_v54  ;;  %v1243_v61 = vmul.f32 %v1101_v56, %v5104_v11  ;;  %v1245_v62 = vmul.f32 %v1101_v56, %v5110_v18  ;;  %v1242_v4 = vmul.f32 %v1097_v57, %v5102_v9  ;;  %v1244_v5 = vmul.f32 %v1097_v57, %v5108_v15 }
  0x4e   : > { %v1017_v14 = vcombine.high %v1001_v26, %v1001_v26  ;;  %v1246_v19 = vmul.f32 %v1105_v0, %v5102_v9  ;;  %v1028_v20 = vrot.slane %v1020_v2, %v5090_v60  ;;  %v4594_v22 = vpack.c.bf16 %v1249_v6, %v1247_v63 }
  0x4f   : > { %4585 = vmatpush1.bf16.msra.mxu0 %v4584_v55  ;;  %v4590_v8 = vpack.c.bf16 %v1245_v62, %v1243_v61  ;;  %v4592_v21 = vpack.c.bf16 %v1244_v5, %v1242_v4  ;;  %v1248_v24 = vmul.f32 %v1105_v0, %v5108_v15  ;;  %v1113_v25 = vrot.slane %v1015_v59, %v5035_v16 }
  0x50   : > { %4587 = vmatprep.subr.bf16.mxu0 %v4586_v58  ;;  %v1251_v27 = vmul.f32 %v1117_v13, %v5104_v11  ;;  %v1253_v28 = vmul.f32 %v1117_v13, %v5110_v18  ;;  %v1125_v29 = vrot.slane %v1017_v14, %v5029_v10  ;;  %v1019_v30 = vcombine.high %v1015_v59, %v1015_v59 }
  0x51   : > { %v1121_v26 = vrot.slane %v1017_v14, %v5035_v16  ;;  %v1044_v31 = vrot.slane %v1028_v20, %v5090_v60  ;;  %v4596_v34 = vpack.c.bf16 %v1248_v24, %v1246_v19  ;;  %v1250_v35 = vmul.f32 %v1113_v25, %v5102_v9 }
  0x52   : > { %v1252_v36 = vmul.f32 %v1113_v25, %v5108_v15  ;;  %v1036_v37 = vcombine.high %v1028_v20, %v1028_v20  ;;  %v4598_v38 = vpack.c.bf16 %v1253_v28, %v1251_v27  ;;  %v1255_v39 = vmul.f32 %v1125_v29, %v5104_v11 }
  0x53   : > { %4589 = vmatpush1.bf16.msra.mxu0 %v4588_v3  ;;  %v1257_v40 = vmul.f32 %v1125_v29, %v5110_v18  ;;  %v1133_v41 = vrot.slane %v1019_v30, %v5029_v10  ;;  %v1254_v42 = vmul.f32 %v1121_v26, %v5102_v9  ;;  %v1256_v43 = vmul.f32 %v1121_v26, %v5108_v15 }
  0x54   : > { %4591 = vmatprep.subr.bf16.mxu0 %v4590_v8  ;;  %v4600_v44 = vpack.c.bf16 %v1252_v36, %v1250_v35  ;;  %v1129_v45 = vrot.slane %v1019_v30, %v5035_v16  ;;  %v1141_v46 = vrot.slane %v1044_v31, %v5029_v10  ;;  %v1058_v50 = vrot.slane %v1036_v37, %v5090_v60 }
  0x55   : > { %v4602_v47 = vpack.c.bf16 %v1257_v40, %v1255_v39  ;;  %v1259_v48 = vmul.f32 %v1133_v41, %v5104_v11  ;;  %v1261_v49 = vmul.f32 %v1133_v41, %v5110_v18  ;;  %v4604_v51 = vpack.c.bf16 %v1256_v43, %v1254_v42 }
  0x56   : > { %v1137_v52 = vrot.slane %v1044_v31, %v5035_v16  ;;  %v1021_v53 = vcombine.high %v5117_v32, %v5119_v33  ;;  %v1258_v54 = vmul.f32 %v1129_v45, %v5102_v9  ;;  %v1260_v55 = vmul.f32 %v1129_v45, %v5108_v15 }
  0x57   : > { %4593 = vmatpush1.bf16.msra.mxu0 %v4592_v21  ;;  %v1263_v56 = vmul.f32 %v1141_v46, %v5104_v11  ;;  %v1265_v57 = vmul.f32 %v1141_v46, %v5110_v18  ;;  %v4606_v58 = vpack.c.bf16 %v1261_v49, %v1259_v48  ;;  %v1149_v59 = vrot.slane %v1058_v50, %v5029_v10 }
  0x58   : > { %4595 = vmatprep.subr.bf16.mxu0 %v4594_v22  ;;  %v1066_v61 = vcombine.high %v1044_v31, %v1044_v31  ;;  %v1262_v62 = vmul.f32 %v1137_v52, %v5102_v9  ;;  %v1035_v63 = vrot.slane %v1021_v53, %v5090_v60  ;;  %v4608_v32 = vpack.c.bf16 %v1260_v55, %v1258_v54 }
  0x59   : > { %v4610_v33 = vpack.c.bf16 %v1265_v57, %v1263_v56  ;;  %v1264_v0 = vmul.f32 %v1137_v52, %v5108_v15  ;;  %v1145_v2 = vrot.slane %v1058_v50, %v5035_v16  ;;  %v1267_v3 = vmul.f32 %v1149_v59, %v5104_v11 }
  0x5a   : > { %v1269_v4 = vmul.f32 %v1149_v59, %v5110_v18  ;;  %v1157_v5 = vrot.slane %v1066_v61, %v5029_v10  ;;  %v1068_v6 = vcombine.high %v1058_v50, %v1058_v50  ;;  %v1051_v8 = vrot.slane %v1035_v63, %v5090_v60 }
  0x5b   : > { %4597 = vmatpush1.bf16.msra.mxu0 %v4596_v34  ;;  %v1037_v13 = vcombine.high %v1035_v63, %v1035_v63  ;;  %v4612_v14 = vpack.c.bf16 %v1264_v0, %v1262_v62  ;;  %v1266_v19 = vmul.f32 %v1145_v2, %v5102_v9  ;;  %v1268_v20 = vmul.f32 %v1145_v2, %v5108_v15 }
  0x5c   : > { %4599 = vmatprep.subr.bf16.mxu0 %v4598_v38  ;;  %v1153_v21 = vrot.slane %v1066_v61, %v5035_v16  ;;  %v4614_v22 = vpack.c.bf16 %v1269_v4, %v1267_v3  ;;  %v1271_v24 = vmul.f32 %v1157_v5, %v5104_v11  ;;  %v1273_v25 = vmul.f32 %v1157_v5, %v5110_v18 }
  0x5d   : > { %v1165_v27 = vrot.slane %v1068_v6, %v5029_v10  ;;  %v1173_v28 = vrot.slane %v1051_v8, %v5029_v10  ;;  %v4616_v29 = vpack.c.bf16 %v1268_v20, %v1266_v19  ;;  %v1161_v31 = vrot.slane %v1068_v6, %v5035_v16 }
  0x5e   : > { %v1270_v30 = vmul.f32 %v1153_v21, %v5102_v9  ;;  %v1272_v26 = vmul.f32 %v1153_v21, %v5108_v15  ;;  %v4618_v34 = vpack.c.bf16 %v1273_v25, %v1271_v24  ;;  %v1065_v37 = vrot.slane %v1037_v13, %v5090_v60  ;;  %v767_v21 = vld [vmem:[%s6664_s7] sm:$0xff] }
  0x5f   : > { %4601 = vmatpush1.bf16.msra.mxu0 %v4600_v44  ;;  %v1275_v35 = vmul.f32 %v1165_v27, %v5104_v11  ;;  %v1277_v36 = vmul.f32 %v1165_v27, %v5110_v18  ;;  %v1279_v38 = vmul.f32 %v1173_v28, %v5104_v11  ;;  %v1281_v39 = vmul.f32 %v1173_v28, %v5110_v18 }
  0x60   : > { %4603 = vmatprep.subr.bf16.mxu0 %v4602_v47  ;;  %v4620_v40 = vpack.c.bf16 %v1272_v26, %v1270_v30  ;;  %v1274_v41 = vmul.f32 %v1161_v31, %v5102_v9  ;;  %v1276_v42 = vmul.f32 %v1161_v31, %v5108_v15  ;;  %v1169_v43 = vrot.slane %v1051_v8, %v5035_v16 }
  0x61   : > { %v4622_v44 = vpack.c.bf16 %v1277_v36, %v1275_v35  ;;  %v1181_v45 = vrot.slane %v1065_v37, %v5029_v10  ;;  %v1067_v46 = vcombine.high %v1051_v8, %v1051_v8  ;;  %v4626_v47 = vpack.c.bf16 %v1281_v39, %v1279_v38  ;;  %v1387_v35 = vld [vmem:[%s6666_s10] sm:$0xff]  ;;  %v1388_v36 = vld [vmem:[%s6666_s10 + $0x8] sm:$0xff]  ;;  %s4872_s10 = smov 124  }
  0x62   : > { %v4624_v48 = vpack.c.bf16 %v1276_v42, %v1274_v41  ;;  %v1278_v49 = vmul.f32 %v1169_v43, %v5102_v9  ;;  %v1280_v50 = vmul.f32 %v1169_v43, %v5108_v15  ;;  %v1069_v55 = vcombine.high %v1065_v37, %v1065_v37 }
  0x63   : > { %4605 = vmatpush1.bf16.msra.mxu0 %v4604_v51  ;;  %v1177_v51 = vrot.slane %v1065_v37, %v5035_v16  ;;  %v1283_v52 = vmul.f32 %v1181_v45, %v5104_v11  ;;  %v1285_v53 = vmul.f32 %v1181_v45, %v5110_v18  ;;  %v1189_v54 = vrot.slane %v1067_v46, %v5029_v10 }
  0x64   : > { %4607 = vmatprep.subr.bf16.mxu0 %v4606_v58  ;;  %v4628_v56 = vpack.c.bf16 %v1280_v50, %v1278_v49  ;;  %v1185_v59 = vrot.slane %v1067_v46, %v5035_v16  ;;  %v1193_v3 = vrot.slane %v1069_v55, %v5035_v16  ;;  %vm1478_vm6 = vcmask 7168  }
  0x65   : > { %v1282_v57 = vmul.f32 %v1177_v51, %v5102_v9  ;;  %v1284_v58 = vmul.f32 %v1177_v51, %v5108_v15  ;;  %v4630_v61 = vpack.c.bf16 %v1285_v53, %v1283_v52  ;;  %v1287_v62 = vmul.f32 %v1189_v54, %v5104_v11 }
  0x66   : > { %v1289_v63 = vmul.f32 %v1189_v54, %v5110_v18  ;;  %v1286_v0 = vmul.f32 %v1185_v59, %v5102_v9  ;;  %v1288_v2 = vmul.f32 %v1185_v59, %v5108_v15  ;;  %v1290_v13 = vmul.f32 %v1193_v3, %v5102_v9 }
  0x67   : > { %4609 = vmatpush1.bf16.msra.mxu0 %v4608_v32  ;;  %v1197_v32 = vrot.slane %v1069_v55, %v5029_v10  ;;  %vm6644_vm7 = vcmask 1039360   ;;  %vm1641_vm8 = vcmask 1046528   ;;  %vm6616_vm9 = vcmask 924672  }
  0x68   : > { %4611 = vmatprep.subr.bf16.mxu0 %v4610_v33  ;;  %v4632_v33 = vpack.c.bf16 %v1284_v58, %v1282_v57  ;;  %v4634_v4 = vpack.c.bf16 %v1289_v63, %v1287_v62  ;;  %v4636_v8 = vpack.c.bf16 %v1288_v2, %v1286_v0  ;;  %vm1648_vm10 = vcmask 1043456  }
  0x69   : > { %v1291_v5 = vmul.f32 %v1197_v32, %v5104_v11  ;;  %v1293_v6 = vmul.f32 %v1197_v32, %v5110_v18  ;;  %v4849_v11 = vmov 1983009808   ;;  %vm6617_vm11 = vcmask 916480  }
  0x6a   : > { %vm1655_vm12 = vcmask 1040384   ;;  %vm1660_vm13 = vcmask 1045504   ;;  %vm6615_vm14 = vcmask 908288   ;;  %vm6642_vm15 = vcmask 1042432  }
  0x6b   : > { %4613 = vmatpush1.bf16.msra.mxu0 %v4612_v14  ;;  %v1292_v14 = vmul.f32 %v1193_v3, %v5108_v15  ;;  %v4638_v19 = vpack.c.bf16 %v1293_v6, %v1291_v5  ;;  %vm1689_vm0 = vcmask 736256  }
  0x6c   : > { %4615 = vmatprep.subr.bf16.mxu0 %v4614_v22  ;;  %v1367_v22 = vunpack.c.l.s4 %v4849_v11 }
  0x6d   : > { %v4640_v20 = vpack.c.bf16 %v1292_v14, %v1290_v13 }
  0x6e   : > { %v1368_v18 = vunpack.c.0.s8 %v1367_v22 }
  0x6f   : > { %4617 = vmatpush1.bf16.msra.mxu0 %v4616_v29 }
  0x70   : > { %4619 = vmatprep.subr.bf16.mxu0 %v4618_v34  ;;  %v5230_v24 = vsub.s32 %v1368_v18, %v5026_v7  ;;  %v4856_v34 = vmov 0  }
  0x71   : > { %1731 = vmatprep.mubr.bf16.mxu1 %v4856_v34  ;;  %4811 = vset.pattern.permute.xlu0 %v4856_v34 }
  0x72   : > { %v1372_v9 = vrot.slane %v5023_v1, %v5230_v24  ;;  %4812 = vset.pattern.permute.xlu1 %v4856_v34 }
  0x73   : > { %4621 = vmatpush1.bf16.msra.mxu0 %v4620_v40 }
  0x74   : > { %4623 = vmatprep.subr.bf16.mxu0 %v4622_v44  ;;  %v1373_v28 = vcombine.high %v1372_v9, %v1372_v9 }
  0x77   : > { %4625 = vmatpush1.bf16.msra.mxu0 %v4624_v48 }
  0x78   : > { %4627 = vmatprep.subr.bf16.mxu0 %v4626_v47 }
  0x7b   : > { %4629 = vmatpush1.bf16.msra.mxu0 %v4628_v56 }
  0x7c   : > { %4631 = vmatprep.subr.bf16.mxu0 %v4630_v61 }
  0x7f   : > { %4633 = vmatpush1.bf16.msra.mxu0 %v4632_v33 }
  0x80   : > { %4635 = vmatprep.subr.bf16.mxu0 %v4634_v4 }
  0x83   : > { %4637 = vmatpush1.bf16.msra.mxu0 %v4636_v8 }
  0x84   : > { %4639 = vmatprep.subr.bf16.mxu0 %v4638_v19 }
  0x87   : > { %4641 = vmatpush1.bf16.msra.mxu0 %v4640_v20 }
  0x8a   : > { %1359 = vmatmul.mubr.f32.vlgmr.msra.gmra.mrb[0].mxu0 %v767_v21 }
  0x8b   : > { %2707 = vmatprep.mubr.bf16.mxu0 %v4856_v34 }
 0x15d   : > { %v1360_v15 = vpop.f32.mrb[0].mxu0 }
 0x15e   : > { %v1378_v25 = vrot.slane %v1360_v15, 6  ;;  %v1362_v27 = vpop.f32.mrb[1].mxu0 }
 0x15f   : > { %v1379_v29 = vrot.slane %v1362_v27, 6 }
 0x160   : > { %v1383_v30 = vsel %vm1382_vm1, %v1372_v9, %v1378_v25 }
 0x161   : > { %v5235_v26 = vpack.c.bf16 %v1378_v25, %v1383_v30  ;;  %v1384_v31 = vsel %vm1382_vm1, %v1373_v28, %v1379_v29 }
 0x162   : > { %v5242_v1 = vpack.c.bf16 %v1379_v29, %v1384_v31 }
 0x163   : > { %1393 = vrot.lane.b32.xlu1 %v5235_v26, %s6622_s9  ;;  %1426 = vrot.lane.b32.xlu0 %v5235_v26, %s6624_s5 }
 0x167   : > { %1453 = vrot.lane.b32.xlu0 %v5235_v26, %s6620_s0  ;;  %1395 = vrot.lane.b32.xlu1 %v5242_v1, %s6622_s9 }
 0x16b   : > { %1455 = vrot.lane.b32.xlu1 %v5242_v1, %s6620_s0  ;;  %1428 = vrot.lane.b32.xlu0 %v5242_v1, %s6624_s5 }
 0x16f   : > { %1476 = vrot.lane.b32.xlu1 %v5242_v1, %s6613_s6  ;;  %1474 = vrot.lane.b32.xlu0 %v5235_v26, %s6613_s6  ;;  %s6667_s6 = sld [smem:[#allocation4_spill]] }
 0x173   : > { %1505 = vrot.lane.b32.xlu1 %v5235_v26, %s6611_s30  ;;  %1507 = vrot.lane.b32.xlu0 %v5242_v1, %s6611_s30  ;;  %s6670_s30 = smov 127  }
 0x175   : > { %v769_v37 = vld [vmem:[%s6667_s6] sm:$0xff]  ;;  %v770_v30 = vld [vmem:[%s6667_s6 + $0x8] sm:$0x11]  ;;  %s6639_s6 = smov 121  }
 0x176   : > { %v4413_v38 = vcombine.low %v769_v37, %v769_v37  ;;  %v4414_v40 = vcombine.high %v769_v37, %v769_v37 }
 0x177   : > { %1526 = vrot.lane.b32.xlu1 %v5235_v26, %s6607_s3  ;;  %1528 = vrot.lane.b32.xlu0 %v5242_v1, %s6607_s3  ;;  %s6671_s3 = smov 113  }
 0x178   : > { %v1437_v39 = vshrl.u32 %v4413_v38, 16  ;;  %v1444_v41 = vshrl.u32 %v4414_v40, 16  ;;  %v1418_v45 = vpack.i.b16 %v4414_v40, %v4414_v40  ;;  %v1411_v46 = vpack.i.b16 %v4413_v38, %v4413_v38 }
 0x17a   : > { %v5285_v42 = vpack.i.b16 %v1437_v39, %v1437_v39  ;;  %v5287_v47 = vpack.i.b16 %v1444_v41, %v1444_v41  ;;  %v5295_v52 = vrot.slane %v1411_v46, %v5029_v10  ;;  %v5298_v53 = vrot.slane %v1418_v45, %v5038_v17 }
 0x17b   : > { %1547 = vrot.lane.b32.xlu1 %v5235_v26, %s6609_s26  ;;  %1549 = vrot.lane.b32.xlu0 %v5242_v1, %s6609_s26  ;;  %v5302_v55 = vrot.slane %v1418_v45, %v5029_v10  ;;  %v5309_v57 = vrot.slane %v1411_v46, %v5038_v17  ;;  %v5312_v58 = vrot.slane %v1411_v46, %v5035_v16  ;;  %s6684_s26 = sld [smem:[#allocation7_spill]] }
 0x17c   : > { %v5291_v48 = vrot.slane %v5285_v42, %v5035_v16  ;;  %v5306_v56 = vrot.slane %v5287_v47, %v5035_v16  ;;  %v5316_v61 = vrot.slane %v1418_v45, %v5035_v16  ;;  %v5321_v33 = vrot.slane %v5285_v42, %v5029_v10 }
 0x17d   : > { %v5325_v0 = vrot.slane %v5287_v47, %v5029_v10  ;;  %v1504_v13 = vmul.bf16 %v5298_v53, %v5242_v1  ;;  %v1503_v14 = vmul.bf16 %v5309_v57, %v5235_v26  ;;  %v5339_v20 = vrot.slane %v5285_v42, %v5038_v17 }
 0x17e   : > { %v5343_v21 = vrot.slane %v5287_v47, %v5038_v17  ;;  %v5357_v37 = vrot.slane %v1411_v46, %v5032_v12 }
 0x17f   : > { %1570 = vrot.lane.b32.xlu1 %v5242_v1, %s6618_s1  ;;  %1568 = vrot.lane.b32.xlu0 %v5235_v26, %s6618_s1 }
 0x183   : > { %1676 = vperm.xlu0 %4811, %v1387_v35   ;;  %1681 = vperm.xlu1 %4812, %v1388_v36   ;;  %v1615_v35 = vrot.slane %v1504_v13, 4 }
 0x1d5   : > { %v1394_v43 = vpop.permute.xlu1 %1393  ;;  %v1427_v44 = vpop.permute.xlu0 %1426 }
 0x1d6   : > { %v1435_v49 = vsel %vm1430_vm2, 0, %v1427_v44  ;;  %v1403_v62 = vsel %vm1397_vm4, 0, %v1394_v43 }
 0x1d7   : > { %v1451_v59 = vmul.bf16 %v5291_v48, %v1435_v49  ;;  %v1424_v11 = vmul.bf16 %v5312_v58, %v1403_v62 }
 0x1d9   : > { %v1454_v50 = vpop.permute.xlu0 %1453  ;;  %v1396_v51 = vpop.permute.xlu1 %1395  ;;  %v1602_v19 = vrot.slane %v1451_v59, 3 }
 0x1da   : > { %v1462_v54 = vsel %vm1457_vm3, 0, %v1454_v50  ;;  %v1398_v3 = vsel %vm1397_vm4, %v1394_v43, %v1396_v51  ;;  %v5360_v43 = vrot.slane %v1418_v45, %v5032_v12  ;;  %v1614_v45 = vrot.slane %v1503_v14, 4 }
 0x1db   : > { %v1472_v2 = vmul.bf16 %v5295_v52, %v1462_v54  ;;  %v1425_v22 = vmul.bf16 %v5316_v61, %v1398_v3  ;;  %v1631_v36 = vsel %vm1628_vm5, %v1424_v11, %v1602_v19 }
 0x1dd   : > { %v1456_v63 = vpop.permute.xlu1 %1455  ;;  %v1429_v32 = vpop.permute.xlu0 %1428  ;;  %v1606_v25 = vrot.slane %v1472_v2, 6 }
 0x1de   : > { %v1458_v4 = vsel %vm1457_vm3, %v1454_v50, %v1456_v63  ;;  %v1431_v5 = vsel %vm1430_vm2, %v1427_v44, %v1429_v32  ;;  %v4416_v44 = vcombine.high %v770_v30, %v770_v30  ;;  %v4415_v32 = vcombine.low %v770_v30, %v770_v30 }
 0x1df   : > { %v1473_v6 = vmul.bf16 %v5302_v55, %v1458_v4  ;;  %v1452_v8 = vmul.bf16 %v5306_v56, %v1431_v5  ;;  %v1638_v54 = vsel %vm1382_vm1, %v1602_v19, %v1606_v25 }
 0x1e0   : > { %v1592_v5 = vpack.i.b16 %v4416_v44, %v4416_v44 }
 0x1e1   : > { %v1603_v18 = vrot.slane %v1452_v8, 3  ;;  %v1477_v9 = vpop.permute.xlu1 %1476  ;;  %v1475_v15 = vpop.permute.xlu0 %1474  ;;  %v1607_v27 = vrot.slane %v1473_v6, 6 }
 0x1e2   : > { %v1479_v28 = vsel %vm1478_vm6, %v1475_v15, %v1477_v9  ;;  %v1483_v29 = vsel %vm1478_vm6, 0, %v1475_v15  ;;  %v1585_v15 = vpack.i.b16 %v4415_v32, %v4415_v32  ;;  %v5385_v30 = vrot.slane %v1592_v5, %v5035_v16 }
 0x1e3   : > { %v1493_v26 = vmul.bf16 %v5321_v33, %v1483_v29  ;;  %v1494_v31 = vmul.bf16 %v5325_v0, %v1479_v28  ;;  %v1635_v1 = vsel %vm1628_vm5, %v1425_v22, %v1603_v18  ;;  %v1640_v51 = vsel %vm1382_vm1, %v1603_v18, %v1607_v27 }
 0x1e4   : > { %1699 = vmatprep.subr.bf16.mxu1 %v1635_v1  ;;  %v5377_v22 = vrot.slane %v5285_v42, %v5032_v12  ;;  %v5381_v18 = vrot.slane %v5287_v47, %v5032_v12 }
 0x1e5   : > { %v1610_v38 = vrot.slane %v1493_v26, 1  ;;  %v1611_v39 = vrot.slane %v1494_v31, 1  ;;  %v1506_v40 = vpop.permute.xlu1 %1505  ;;  %1700 = vmatpush1.bf16.msra.mxu1 %v1631_v36  ;;  %v1508_v41 = vpop.permute.xlu0 %1507 }
 0x1e6   : > { %v1510_v49 = vsel %vm6644_vm7, %v1506_v40, %v1508_v41  ;;  %v1514_v50 = vsel %vm6644_vm7, %v1508_v41, 0  ;;  %v5396_v40 = vrot.slane %v1585_v15, %v5035_v16 }
 0x1e7   : > { %v1524_v46 = vmul.bf16 %v5339_v20, %v1510_v49  ;;  %v1525_v59 = vmul.bf16 %v5343_v21, %v1514_v50  ;;  %v1646_v62 = vsel %vm1641_vm8, %v1640_v51, %v1611_v39  ;;  %v1643_v63 = vsel %vm1641_vm8, %v1638_v54, %v1610_v38 }
 0x1e8   : > { %1701 = vmatprep.subr.bf16.mxu1 %v1646_v62  ;;  %v1653_v4 = vsel %vm1648_vm10, %v1611_v39, %v1615_v35  ;;  %v1650_v9 = vsel %vm1648_vm10, %v1610_v38, %v1614_v45 }
 0x1e9   : > { %v1527_v2 = vpop.permute.xlu1 %1526  ;;  %1702 = vmatpush1.bf16.msra.mxu1 %v1643_v63  ;;  %v1529_v3 = vpop.permute.xlu0 %1528  ;;  %v1618_v6 = vrot.slane %v1524_v46, 7  ;;  %v1619_v8 = vrot.slane %v1525_v59, 7 }
 0x1ea   : > { %v1531_v13 = vsel %vm6616_vm9, %v1527_v2, %v1529_v3  ;;  %v1535_v19 = vsel %vm6616_vm9, %v1529_v3, 0  ;;  %1703 = vmatprep.subr.bf16.mxu1 %v1653_v4 }
 0x1eb   : > { %v1545_v11 = vmul.bf16 %v5357_v37, %v1531_v13  ;;  %v1546_v14 = vmul.bf16 %v5360_v43, %v1535_v19  ;;  %v1659_v47 = vsel %vm1655_vm12, %v1615_v35, %v1619_v8  ;;  %v1657_v31 = vsel %vm1655_vm12, %v1614_v45, %v1618_v6  ;;  %v4817_v45 = vld [vmem:[%s6668_s4] sm:$0xff]   ;;  %s6673_s4 = smov 112  }
 0x1ed   : > { %v1622_v25 = vrot.slane %v1545_v11, 2  ;;  %v1623_v27 = vrot.slane %v1546_v14, 2  ;;  %v1548_v28 = vpop.permute.xlu1 %1547  ;;  %v1550_v29 = vpop.permute.xlu0 %1549  ;;  %1704 = vmatpush1.bf16.msra.mxu1 %v1650_v9 }
 0x1ee   : > { %v1552_v42 = vsel %vm6617_vm11, %v1548_v28, %v1550_v29  ;;  %v1556_v26 = vsel %vm6617_vm11, %v1550_v29, 0  ;;  %v5432_v29 = vld.sshfl [vmem:[%s6672_s11] sm:$0x11 pattern:$0x75316420]  ;;  %s6628_s11 = smov 8  }
 0x1ef   : > { %v1566_v1 = vmul.bf16 %v5377_v22, %v1552_v42  ;;  %v1567_v36 = vmul.bf16 %v5381_v18, %v1556_v26  ;;  %v1665_v38 = vsel %vm1660_vm13, %v1659_v47, %v1623_v27  ;;  %v1662_v39 = vsel %vm1660_vm13, %v1657_v31, %v1622_v25  ;;  %v1747_v47 = vld [vmem:[%s6674_s12] sm:$0x3]  ;;  %s6630_s12 = smov 120  }
 0x1f0   : > { %1705 = vmatprep.subr.bf16.mxu1 %v1665_v38  ;;  %v1855_v42 = vcombine.high %v5432_v29, %v5432_v29 }
 0x1f1   : > { %v1626_v41 = vrot.slane %v1566_v1, 5  ;;  %v1627_v44 = vrot.slane %v1567_v36, 5  ;;  %v1571_v49 = vpop.permute.xlu1 %1570  ;;  %v1569_v50 = vpop.permute.xlu0 %1568  ;;  %1706 = vmatpush1.bf16.msra.mxu1 %v1662_v39 }
 0x1f2   : > { %v1577_v35 = vsel %vm6615_vm14, %v1571_v49, 0  ;;  %v1573_v51 = vsel %vm6615_vm14, %v1569_v50, %v1571_v49  ;;  %v1869_v26 = vrot.slane %v1855_v42, %v5090_v60 }
 0x1f3   : > { %v1599_v54 = vmul.bf16 %v5385_v30, %v1577_v35  ;;  %v1672_v46 = vsel %vm6642_vm15, %v1623_v27, %v1627_v44  ;;  %v1669_v59 = vsel %vm6642_vm15, %v1622_v25, %v1626_v41  ;;  %v1598_v62 = vmul.bf16 %v5396_v40, %v1573_v51 }
 0x1f4   : > { %1707 = vmatprep.subr.bf16.mxu1 %v1672_v46 }
 0x1f5   : > { %1708 = vmatpush1.bf16.msra.mxu1 %v1669_v59  ;;  %v1694_v63 = vsel %vm1628_vm5, %v1598_v62, 0 }
 0x1f6   : > { %4418 = vmatprep.subr.msk.bf16.mxu1 %vm1628_vm5, %v1599_v54 }
 0x1f9   : > { %1710 = vmatpush1.bf16.msra.mxu1 %v1694_v63 }
 0x1fc   : > { %4419 = vmatmul.mubr.msk.bf16.vlgmr.msra.gmra.mrb[0].mxu1 %vm1689_vm0, %v4817_v45 }
 0x1fd   : > { %4421 = vmatprep.mubr.msk.bf16.mxu1 %vm1430_vm2, %v1869_v26 }
 0x202   : > { %v1677_v32 = vpop.permute.xlu0 %1676  ;;  %v1682_v3 = vpop.permute.xlu1 %1681 }
 0x2cf   : > { %v1733_v2 = vpop.f32.mrb[0].mxu1 }
 0x2d0   : > { %v1734_v4 = vadd.f32 %v1733_v2, %v1677_v32  ;;  %v1735_v5 = vpop.f32.mrb[1].mxu1 }
 0x2d1   : > { %v1736_v6 = vadd.f32 %v1735_v5, %v1677_v32  ;;  %v1737_v8 = vpop.f32.mrb[2].mxu1 }
 0x2d2   : > { %v1738_v13 = vadd.f32 %v1737_v8, %v1682_v3  ;;  %v1739_v19 = vpop.f32.mrb[3].mxu1  ;;  %v1742_v14 = vmax.f32 %v1734_v4, 0.0 }
 0x2d3   : > { %v1740_v11 = vadd.f32 %v1739_v19, %v1682_v3  ;;  %v1743_v15 = vmax.f32 %v1736_v6, 0.0 }
 0x2d4   : > { %v1744_v9 = vmax.f32 %v1738_v13, 0.0 }
 0x2d5   : > { %v1745_v25 = vmax.f32 %v1740_v11, 0.0 }
 0x2d6   : > { %v5409_v27 = vpack.c.bf16 %v1744_v9, %v1742_v14 }
 0x2d7   : > { %v1749_v28 = vpack.c.bf16 %v1745_v25, %v1743_v15 }
 0x2d8   : > { %1752 = vrot.lane.b32.xlu1 %v5409_v27, %s6622_s9  ;;  %v1796_v15 = vmul.bf16 %v5409_v27, %v5309_v57 }
 0x2d9   : > { %1754 = vrot.lane.b32.xlu0 %v1749_v28, %s6622_s9  ;;  %v1797_v11 = vmul.bf16 %v1749_v28, %v5298_v53  ;;  %s5705_s9 = scalar_lea.vmem %s6675_s25, %s4455_s8  ;;  %s6634_s25 = smov 7  }
 0x2da   : > { %s4870_s8 = smov 125  }
 0x2dc   : > { %1763 = vrot.lane.b32.xlu1 %v5409_v27, %s6624_s5 }
 0x2dd   : > { %1765 = vrot.lane.b32.xlu0 %v1749_v28, %s6624_s5 }
 0x2e0   : > { %1774 = vrot.lane.b32.xlu1 %v5409_v27, %s6620_s0 }
 0x2e1   : > { %1776 = vrot.lane.b32.xlu0 %v1749_v28, %s6620_s0  ;;  %s6677_s0 = smov 15  }
 0x2e4   : > { %1785 = vrot.lane.b32.xlu1 %v5409_v27, %s6669_s28 }
 0x2e5   : > { %1787 = vrot.lane.b32.xlu0 %v1749_v28, %s6669_s28 }
 0x2e8   : > { %1800 = vrot.lane.b32.xlu1 %v1749_v28, %s6670_s30 }
 0x2e9   : > { %1798 = vrot.lane.b32.xlu0 %v5409_v27, %s6670_s30 }
 0x2ec   : > { %1811 = vrot.lane.b32.xlu1 %v1749_v28, %s6671_s3 }
 0x2ed   : > { %1809 = vrot.lane.b32.xlu0 %v5409_v27, %s6671_s3 }
 0x2f0   : > { %1822 = vrot.lane.b32.xlu1 %v1749_v28, %s6673_s4 }
 0x2f1   : > { %1820 = vrot.lane.b32.xlu0 %v5409_v27, %s6673_s4 }
 0x2f4   : > { %1833 = vrot.lane.b32.xlu1 %v1749_v28, %s6618_s1 }
 0x2f5   : > { %1831 = vrot.lane.b32.xlu0 %v5409_v27, %s6618_s1  ;;  %s6678_s1 = smov 111  }
 0x2f8   : > { %1844 = vperm.xlu1 %4812, %v1747_v47  }
 0x34a   : > { %v1753_v31 = vpop.permute.xlu1 %1752 }
 0x34b   : > { %v1759_v1 = vsel %vm1397_vm4, 0, %v1753_v31  ;;  %v1755_v36 = vpop.permute.xlu0 %1754 }
 0x34c   : > { %v1756_v38 = vsel %vm1397_vm4, %v1753_v31, %v1755_v36  ;;  %v1761_v41 = vmul.bf16 %v1759_v1, %v5312_v58 }
 0x34d   : > { %v1762_v39 = vmul.bf16 %v1756_v38, %v5316_v61 }
 0x34e   : > { %v1764_v44 = vpop.permute.xlu1 %1763 }
 0x34f   : > { %v1770_v49 = vsel %vm1430_vm2, 0, %v1764_v44  ;;  %v1766_v50 = vpop.permute.xlu0 %1765  ;;  %1874 = vmatprep.subr.bf16.mxu1 %v1762_v39 }
 0x350   : > { %v1767_v35 = vsel %vm1430_vm2, %v1764_v44, %v1766_v50  ;;  %1875 = vmatpush1.bf16.msra.mxu1 %v1761_v41  ;;  %v1772_v54 = vmul.bf16 %v1770_v49, %v5291_v48 }
 0x351   : > { %v1773_v51 = vmul.bf16 %v1767_v35, %v5306_v56 }
 0x352   : > { %v1775_v46 = vpop.permute.xlu1 %1774 }
 0x353   : > { %v1781_v59 = vsel %vm1457_vm3, 0, %v1775_v46  ;;  %v1777_v62 = vpop.permute.xlu0 %1776  ;;  %1876 = vmatprep.subr.bf16.mxu1 %v1773_v51 }
 0x354   : > { %v1778_v63 = vsel %vm1457_vm3, %v1775_v46, %v1777_v62  ;;  %1877 = vmatpush1.bf16.msra.mxu1 %v1772_v54  ;;  %v1783_v32 = vmul.bf16 %v1781_v59, %v5295_v52  ;;  %v1862_v62 = vrot.slane %v5432_v29, %v5090_v60 }
 0x355   : > { %v1784_v45 = vmul.bf16 %v1778_v63, %v5302_v55  ;;  %v4837_v63 = vld [vmem:[%s6664_s7 + $0x8] sm:$0xff] }
 0x356   : > { %v1786_v2 = vpop.permute.xlu1 %1785 }
 0x357   : > { %v1792_v3 = vsel %vm1478_vm6, 0, %v1786_v2  ;;  %v1788_v4 = vpop.permute.xlu0 %1787  ;;  %1878 = vmatprep.subr.bf16.mxu1 %v1784_v45 }
 0x358   : > { %v1789_v5 = vsel %vm1478_vm6, %v1786_v2, %v1788_v4  ;;  %1879 = vmatpush1.bf16.msra.mxu1 %v1783_v32  ;;  %v1794_v8 = vmul.bf16 %v1792_v3, %v5321_v33 }
 0x359   : > { %v1795_v6 = vmul.bf16 %v1789_v5, %v5325_v0 }
 0x35a   : > { %v1801_v13 = vpop.permute.xlu1 %1800 }
 0x35b   : > { %v1799_v19 = vpop.permute.xlu0 %1798  ;;  %1880 = vmatprep.subr.bf16.mxu1 %v1795_v6  ;;  %v1805_v14 = vsel %vm6644_vm7, %v1801_v13, 0 }
 0x35c   : > { %1881 = vmatpush1.bf16.msra.mxu1 %v1794_v8  ;;  %v1802_v25 = vsel %vm6644_vm7, %v1799_v19, %v1801_v13  ;;  %v1808_v26 = vmul.bf16 %v1805_v14, %v5343_v21  ;;  %v4838_v19 = vld [vmem:[%s5020_s27] sm:$0xf]  ;;  %s4871_s27 = smov 123  }
 0x35d   : > { %1882 = vmatprep.subr.bf16.mxu1 %v1797_v11  ;;  %v1807_v31 = vmul.bf16 %v1802_v25, %v5339_v20 }
 0x35e   : > { %v1812_v9 = vpop.permute.xlu1 %1811 }
 0x35f   : > { %v1810_v42 = vpop.permute.xlu0 %1809  ;;  %v1816_v47 = vsel %vm6616_vm9, %v1812_v9, 0 }
 0x360   : > { %1883 = vmatpush1.bf16.msra.mxu1 %v1796_v15  ;;  %v1813_v1 = vsel %vm6616_vm9, %v1810_v42, %v1812_v9  ;;  %v1819_v38 = vmul.bf16 %v1816_v47, %v5360_v43 }
 0x361   : > { %1884 = vmatprep.subr.bf16.mxu1 %v1808_v26  ;;  %v1818_v27 = vmul.bf16 %v1813_v1, %v5357_v37 }
 0x362   : > { %v1823_v28 = vpop.permute.xlu1 %1822 }
 0x363   : > { %v1821_v36 = vpop.permute.xlu0 %1820  ;;  %v1827_v39 = vsel %vm6617_vm11, %v1823_v28, 0 }
 0x364   : > { %1885 = vmatpush1.bf16.msra.mxu1 %v1807_v31  ;;  %v1824_v44 = vsel %vm6617_vm11, %v1821_v36, %v1823_v28  ;;  %v1830_v49 = vmul.bf16 %v1827_v39, %v5381_v18 }
 0x365   : > { %1886 = vmatprep.subr.bf16.mxu1 %v1819_v38  ;;  %v1829_v51 = vmul.bf16 %v1824_v44, %v5377_v22 }
 0x366   : > { %v1834_v41 = vpop.permute.xlu1 %1833 }
 0x367   : > { %v1838_v50 = vsel %vm6615_vm14, %v1834_v41, 0  ;;  %v1832_v35 = vpop.permute.xlu0 %1831 }
 0x368   : > { %1887 = vmatpush1.bf16.msra.mxu1 %v1818_v27  ;;  %v1835_v54 = vsel %vm6615_vm14, %v1832_v35, %v1834_v41  ;;  %v1841_v46 = vmul.bf16 %v1838_v50, %v5385_v30 }
 0x369   : > { %1888 = vmatprep.subr.bf16.mxu1 %v1830_v49  ;;  %v1840_v59 = vmul.bf16 %v1835_v54, %v5396_v40 }
 0x36c   : > { %1889 = vmatpush1.bf16.msra.mxu1 %v1829_v51 }
 0x36d   : > { %1890 = vmatprep.subr.bf16.mxu1 %v1841_v46 }
 0x370   : > { %1891 = vmatpush1.bf16.msra.mxu1 %v1840_v59 }
 0x373   : > { %1907 = vmatmul.mubr.bf16.vlgmr.msra.gmra.mrb[4].mxu1 %v1862_v62 }
 0x374   : > { %2509 = vmatprep.mubr.f32.mxu1 %v4837_v63 }
 0x377   : > { %v1845_v45 = vpop.permute.xlu1 %1844 }
 0x446   : > { %v1908_v32 = vpop.f32.mrb[4].mxu1 }
 0x447   : > { %v1909_v2 = vadd.f32 %v1908_v32, %v1845_v45  ;;  %v1910_v3 = vpop.f32.mrb[5].mxu1 }
 0x448   : > { %v1911_v4 = vadd.f32 %v1910_v3, %v1845_v45  ;;  %v1912_v5 = vpop.f32.mrb[6].mxu1 }
 0x449   : > { %v1913_v6 = vpop.f32.mrb[7].mxu1 }
 0x44a   : > { %v1917_v8 = vcombine.low %v1909_v2, %v1911_v4 }
 0x44c   : > { %v1924_v13 = vrot.slane %v1917_v8, %v5230_v24 }
 0x44e   : > { %v5489_v11 = vadd.f32 %v4838_v19, %v1924_v13 }
 0x450   : > { %v4422_v29 = vclamp-gez-f32 %v5489_v11, 1.0 }
 0x452   : > { %v1931_v14 = vmul.f32 15.0, %v4422_v29 }
 0x454   : > { %v1932_v9 = vfloor.f32 %v1931_v14 }
 0x456   : > { %v4776_v15 = vtrunc.f32 %v1932_v9  ;;  %v1933_v42 = vsub.f32 %v1931_v14, %v1932_v9 }
 0x458   : > { %v4777_v25 = vcvt.f32.s32 %v4776_v15  ;;  %v1958_v47 = vsub.f32 1.0, %v1933_v42  ;;  %v2094_v50 = vrot.slane %v1933_v42, %v5029_v10  ;;  %v2006_v62 = vrot.slane %v1933_v42, %v5035_v16 }
 0x459   : > { %v2098_v45 = vrot.slane %v1933_v42, %v5032_v12  ;;  %v2010_v3 = vrot.slane %v1933_v42, %v5038_v17 }
 0x45a   : > { %v1935_v26 = vadd.s32 1, %v4777_v25  ;;  %v2032_v31 = vrot.slane %v4777_v25, %v5029_v10  ;;  %v2036_v1 = vrot.slane %v4777_v25, %v5032_v12  ;;  %v2052_v38 = vrot.slane %v1958_v47, %v5029_v10 }
 0x45b   : > { %v1941_v41 = vrot.slane %v4777_v25, %v5035_v16  ;;  %v2056_v49 = vrot.slane %v1958_v47, %v5032_v12  ;;  %v1945_v35 = vrot.slane %v4777_v25, %v5038_v17  ;;  %v1963_v32 = vrot.slane %v1958_v47, %v5035_v16 }
 0x45c   : > { %vm1936_vm1 = vcmp.lt.s32.totalorder %v1935_v26, 15  ;;  %v5495_v36 = vrot.slane %v2032_v31, %v5029_v10  ;;  %v5506_v51 = vrot.slane %v2036_v1, %v5029_v10  ;;  %v5517_v63 = vrot.slane %v2052_v38, %v5029_v10 }
 0x45d   : > { %v1937_v28 = vsel %vm1936_vm1, %v1935_v26, 15  ;;  %v1967_v2 = vrot.slane %v1958_v47, %v5038_v17  ;;  %v1949_v4 = vrot.slane %v1941_v41, %v5035_v16  ;;  %v5528_v6 = vrot.slane %v2056_v49, %v5029_v10 }
 0x45e   : > { %v2074_v39 = vrot.slane %v1937_v28, %v5029_v10  ;;  %v2078_v27 = vrot.slane %v1937_v28, %v5032_v12  ;;  %v1985_v44 = vrot.slane %v1937_v28, %v5035_v16  ;;  %v1989_v59 = vrot.slane %v1937_v28, %v5038_v17 }
 0x45f   : > { %vm2045_vm5 = vcmp.eq.s32.totalorder %v5026_v7, %v5495_v36  ;;  %v2104_v8 = vrot.slane %v2094_v50, %v5029_v10  ;;  %v1953_v13 = vrot.slane %v1945_v35, %v5035_v16  ;;  %vm2046_vm8 = vcmp.eq.s32.totalorder %v5026_v7, %v5506_v51 }
 0x460   : > { %v5509_v54 = vrot.slane %v2074_v39, %v5029_v10  ;;  %v5512_v46 = vrot.slane %v2078_v27, %v5029_v10  ;;  %v1993_v5 = vrot.slane %v1985_v44, %v5035_v16  ;;  %v1997_v19 = vrot.slane %v1989_v59, %v5035_v16 }
 0x461   : > { %v2067_v29 = vsel %vm2045_vm5, %v5517_v63, 0.0  ;;  %v2108_v14 = vrot.slane %v2098_v45, %v5029_v10  ;;  %v2016_v15 = vrot.slane %v2006_v62, %v5035_v16  ;;  %v1973_v42 = vrot.slane %v1963_v32, %v5035_v16 }
 0x462   : > { %vm2087_vm12 = vcmp.eq.s32.totalorder %v5026_v7, %v5509_v54  ;;  %vm2088_vm13 = vcmp.eq.s32.totalorder %v5026_v7, %v5512_v46  ;;  %vm1998_vm0 = vcmp.eq.s32.totalorder %v5026_v7, %v1993_v5  ;;  %v2068_v26 = vsel %vm2046_vm8, %v5528_v6, 0.0 }
 0x463   : > { %v2109_v9 = vsel %vm2087_vm12, %v2104_v8, 0.0  ;;  %v2110_v47 = vsel %vm2088_vm13, %v2108_v14, 0.0  ;;  %vm1954_vm1 = vcmp.eq.s32.totalorder %v5026_v7, %v1949_v4  ;;  %v1977_v31 = vrot.slane %v1967_v2, %v5035_v16 }
 0x464   : > { %v2113_v25 = vadd.f32 %v2109_v9, %v2067_v29  ;;  %v2020_v28 = vrot.slane %v2010_v3, %v5035_v16  ;;  %v2114_v1 = vadd.f32 %v2110_v47, %v2068_v26  ;;  %vm1955_vm5 = vcmp.eq.s32.totalorder %v5026_v7, %v1953_v13 }
 0x465   : > { %vm1999_vm12 = vcmp.eq.s32.totalorder %v5026_v7, %v1997_v19  ;;  %vm2000_vm14 = vcmp.eq.s32.totalorder %v5043_v23, %v1993_v5  ;;  %vm2001_vm9 = vcmp.eq.s32.totalorder %v5043_v23, %v1997_v19  ;;  %vm1956_vm11 = vcmp.eq.s32.totalorder %v5043_v23, %v1949_v4 }
 0x466   : > { %vm1957_vm8 = vcmp.eq.s32.totalorder %v5043_v23, %v1953_v13  ;;  %v2021_v38 = vsel %vm1998_vm0, %v2016_v15, 0.0  ;;  %v2121_v39 = vcombine.low %v2113_v25, %v2114_v1  ;;  %v1978_v27 = vsel %vm1954_vm1, %v1973_v42, 0.0 }
 0x467   : > { %v2122_v41 = vcombine.high %v2113_v25, %v2114_v1  ;;  %v2022_v44 = vsel %vm1999_vm12, %v2020_v28, 0.0  ;;  %v2023_v49 = vsel %vm2000_vm14, %v2016_v15, 0.0  ;;  %v2024_v50 = vsel %vm2001_vm9, %v2020_v28, 0.0 }
 0x468   : > { %v2129_v35 = vrot.slane %v2121_v39, %v5090_v60  ;;  %v1979_v59 = vsel %vm1955_vm5, %v1977_v31, 0.0  ;;  %v1980_v62 = vsel %vm1956_vm11, %v1973_v42, 0.0  ;;  %v1981_v7 = vsel %vm1957_vm8, %v1977_v31, 0.0 }
 0x469   : > { %v5555_v45 = vadd.f32 %v2021_v38, %v1978_v27  ;;  %vm2089_vm13 = vcmp.eq.s32.totalorder %v5043_v23, %v5509_v54  ;;  %vm2090_vm0 = vcmp.eq.s32.totalorder %v5043_v23, %v5512_v46  ;;  %v5562_v3 = vadd.f32 %v2022_v44, %v1979_v59 }
 0x46a   : > { %v2145_v32 = vrot.slane %v2129_v35, %v5090_v60  ;;  %v2137_v2 = vcombine.high %v2129_v35, %v2129_v35  ;;  %v5564_v4 = vadd.f32 %v2023_v49, %v1980_v62  ;;  %v5566_v5 = vadd.f32 %v2024_v50, %v1981_v7 }
 0x46b   : > { %v2136_v13 = vrot.slane %v2122_v41, %v5090_v60  ;;  %vm2047_vm9 = vcmp.eq.s32.totalorder %v5043_v23, %v5495_v36  ;;  %vm2048_vm11 = vcmp.eq.s32.totalorder %v5043_v23, %v5506_v51  ;;  %v2111_v54 = vsel %vm2089_vm13, %v2104_v8, 0.0 }
 0x46c   : > { %v2228_v19 = vrot.slane %v2145_v32, %v5029_v10  ;;  %v2224_v29 = vrot.slane %v2145_v32, %v5035_v16  ;;  %v2159_v9 = vrot.slane %v2137_v2, %v5090_v60  ;;  %v2167_v15 = vcombine.high %v2145_v32, %v2145_v32 }
 0x46d   : > { %v2112_v46 = vsel %vm2090_vm0, %v2108_v14, 0.0  ;;  %v2152_v38 = vrot.slane %v2136_v13, %v5090_v60  ;;  %v2138_v62 = vcombine.high %v2136_v13, %v2136_v13  ;;  %v2069_v2 = vsel %vm2047_vm9, %v5517_v63, 0.0 }
 0x46e   : > { %v2382_v25 = vmul.f32 %v2228_v19, %v5562_v3  ;;  %v2384_v42 = vmul.f32 %v2228_v19, %v5566_v5  ;;  %v2381_v26 = vmul.f32 %v2224_v29, %v5555_v45  ;;  %v2383_v47 = vmul.f32 %v2224_v29, %v5564_v4 }
 0x46f   : > { %v2236_v31 = vrot.slane %v2159_v9, %v5029_v10  ;;  %v2232_v28 = vrot.slane %v2159_v9, %v5035_v16  ;;  %v2244_v1 = vrot.slane %v2167_v15, %v5029_v10  ;;  %v2240_v8 = vrot.slane %v2167_v15, %v5035_v16 }
 0x470   : > { %v4642_v39 = vpack.c.bf16 %v2384_v42, %v2382_v25  ;;  %v4644_v27 = vpack.c.bf16 %v2383_v47, %v2381_v26  ;;  %v2169_v14 = vcombine.high %v2159_v9, %v2159_v9  ;;  %v2070_v19 = vsel %vm2048_vm11, %v5528_v6, 0.0 }
 0x471   : > { %v2386_v41 = vmul.f32 %v2236_v31, %v5562_v3  ;;  %v2388_v44 = vmul.f32 %v2236_v31, %v5566_v5  ;;  %v2385_v49 = vmul.f32 %v2232_v28, %v5555_v45  ;;  %v2387_v50 = vmul.f32 %v2232_v28, %v5564_v4 }
 0x472   : > { %4643 = vmatprep.subr.bf16.mxu1 %v4642_v39  ;;  %v2390_v35 = vmul.f32 %v2244_v1, %v5562_v3  ;;  %v2392_v59 = vmul.f32 %v2244_v1, %v5566_v5  ;;  %v2252_v32 = vrot.slane %v2169_v14, %v5029_v10  ;;  %v2260_v29 = vrot.slane %v2152_v38, %v5029_v10 }
 0x473   : > { %4645 = vmatpush1.bf16.msra.mxu1 %v4644_v27  ;;  %v4646_v7 = vpack.c.bf16 %v2388_v44, %v2386_v41  ;;  %v5601_v9 = vadd.f32 %v2111_v54, %v2069_v2  ;;  %v5603_v15 = vadd.f32 %v2112_v46, %v2070_v19  ;;  %v4648_v13 = vpack.c.bf16 %v2387_v50, %v2385_v49 }
 0x474   : > { %v2389_v25 = vmul.f32 %v2240_v8, %v5555_v45  ;;  %v2391_v42 = vmul.f32 %v2240_v8, %v5564_v4  ;;  %v2248_v36 = vrot.slane %v2169_v14, %v5035_v16  ;;  %v4650_v63 = vpack.c.bf16 %v2392_v59, %v2390_v35 }
 0x475   : > { %4647 = vmatprep.subr.bf16.mxu1 %v4646_v7  ;;  %v2394_v26 = vmul.f32 %v2252_v32, %v5562_v3  ;;  %v2396_v23 = vmul.f32 %v2252_v32, %v5566_v5  ;;  %v2166_v51 = vrot.slane %v2138_v62, %v5090_v60  ;;  %v2398_v6 = vmul.f32 %v2260_v29, %v5562_v3 }
 0x476   : > { %v2256_v54 = vrot.slane %v2152_v38, %v5035_v16  ;;  %v2171_v46 = vcombine.low %v5601_v9, %v5603_v15  ;;  %v4652_v47 = vpack.c.bf16 %v2391_v42, %v2389_v25  ;;  %v2393_v31 = vmul.f32 %v2248_v36, %v5555_v45 }
 0x477   : > { %4649 = vmatpush1.bf16.msra.mxu1 %v4648_v13  ;;  %v2395_v28 = vmul.f32 %v2248_v36, %v5564_v4  ;;  %v2400_v1 = vmul.f32 %v2260_v29, %v5566_v5  ;;  %v4654_v39 = vpack.c.bf16 %v2396_v23, %v2394_v26  ;;  %v2268_v27 = vrot.slane %v2166_v51, %v5029_v10 }
 0x478   : > { %4651 = vmatprep.subr.bf16.mxu1 %v4650_v63  ;;  %v2168_v8 = vcombine.high %v2152_v38, %v2152_v38  ;;  %v2397_v14 = vmul.f32 %v2256_v54, %v5555_v45  ;;  %v2179_v41 = vrot.slane %v2171_v46, %v5090_v60  ;;  %v2399_v50 = vmul.f32 %v2256_v54, %v5564_v4 }
 0x479   : > { %v4656_v44 = vpack.c.bf16 %v2395_v28, %v2393_v31  ;;  %v4658_v49 = vpack.c.bf16 %v2400_v1, %v2398_v6  ;;  %v2264_v35 = vrot.slane %v2166_v51, %v5035_v16  ;;  %v2402_v59 = vmul.f32 %v2268_v27, %v5562_v3 }
 0x47a   : > { %v2404_v62 = vmul.f32 %v2268_v27, %v5566_v5  ;;  %v2276_v7 = vrot.slane %v2168_v8, %v5029_v10  ;;  %v2170_v32 = vcombine.high %v2166_v51, %v2166_v51  ;;  %v2272_v38 = vrot.slane %v2168_v8, %v5035_v16 }
 0x47b   : > { %4653 = vmatpush1.bf16.msra.mxu1 %v4652_v47  ;;  %v2195_v2 = vrot.slane %v2179_v41, %v5090_v60  ;;  %v4660_v19 = vpack.c.bf16 %v2399_v50, %v2397_v14  ;;  %v2401_v29 = vmul.f32 %v2264_v35, %v5555_v45  ;;  %v2403_v13 = vmul.f32 %v2264_v35, %v5564_v4 }
 0x47c   : > { %4655 = vmatprep.subr.bf16.mxu1 %v4654_v39  ;;  %v2187_v25 = vcombine.high %v2179_v41, %v2179_v41  ;;  %v4662_v42 = vpack.c.bf16 %v2404_v62, %v2402_v59  ;;  %v2406_v36 = vmul.f32 %v2276_v7, %v5562_v3  ;;  %v2408_v63 = vmul.f32 %v2276_v7, %v5566_v5 }
 0x47d   : > { %v2284_v26 = vrot.slane %v2170_v32, %v5029_v10  ;;  %v2405_v23 = vmul.f32 %v2272_v38, %v5555_v45  ;;  %v2407_v51 = vmul.f32 %v2272_v38, %v5564_v4  ;;  %v4664_v6 = vpack.c.bf16 %v2403_v13, %v2401_v29 }
 0x47e   : > { %v2280_v54 = vrot.slane %v2170_v32, %v5035_v16  ;;  %v2292_v46 = vrot.slane %v2195_v2, %v5029_v10  ;;  %v4666_v47 = vpack.c.bf16 %v2408_v63, %v2406_v36  ;;  %v2209_v1 = vrot.slane %v2187_v25, %v5090_v60 }
 0x47f   : > { %4657 = vmatpush1.bf16.msra.mxu1 %v4656_v44  ;;  %v2410_v31 = vmul.f32 %v2284_v26, %v5562_v3  ;;  %v2412_v28 = vmul.f32 %v2284_v26, %v5566_v5  ;;  %v4668_v39 = vpack.c.bf16 %v2407_v51, %v2405_v23  ;;  %v2288_v27 = vrot.slane %v2195_v2, %v5035_v16 }
 0x480   : > { %4659 = vmatprep.subr.bf16.mxu1 %v4658_v49  ;;  %v2172_v8 = vcombine.high %v5601_v9, %v5603_v15  ;;  %v2409_v14 = vmul.f32 %v2280_v54, %v5555_v45  ;;  %v2411_v41 = vmul.f32 %v2280_v54, %v5564_v4  ;;  %v2414_v44 = vmul.f32 %v2292_v46, %v5562_v3 }
 0x481   : > { %v2416_v49 = vmul.f32 %v2292_v46, %v5566_v5  ;;  %v4670_v50 = vpack.c.bf16 %v2412_v28, %v2410_v31  ;;  %v2300_v35 = vrot.slane %v2209_v1, %v5029_v10  ;;  %v2217_v59 = vcombine.high %v2195_v2, %v2195_v2 }
 0x482   : > { %v2413_v62 = vmul.f32 %v2288_v27, %v5555_v45  ;;  %v2186_v7 = vrot.slane %v2172_v8, %v5090_v60  ;;  %v4672_v32 = vpack.c.bf16 %v2411_v41, %v2409_v14  ;;  %v2415_v15 = vmul.f32 %v2288_v27, %v5564_v4 }
 0x483   : > { %4661 = vmatpush1.bf16.msra.mxu1 %v4660_v19  ;;  %v4674_v9 = vpack.c.bf16 %v2416_v49, %v2414_v44  ;;  %v2296_v38 = vrot.slane %v2209_v1, %v5035_v16  ;;  %v2418_v19 = vmul.f32 %v2300_v35, %v5562_v3  ;;  %v2420_v29 = vmul.f32 %v2300_v35, %v5566_v5 }
 0x484   : > { %4663 = vmatprep.subr.bf16.mxu1 %v4662_v42  ;;  %v2308_v13 = vrot.slane %v2217_v59, %v5029_v10  ;;  %v2219_v25 = vcombine.high %v2209_v1, %v2209_v1  ;;  %v2202_v2 = vrot.slane %v2186_v7, %v5090_v60  ;;  %v2188_v42 = vcombine.high %v2186_v7, %v2186_v7 }
 0x485   : > { %v4676_v36 = vpack.c.bf16 %v2415_v15, %v2413_v62  ;;  %v2417_v63 = vmul.f32 %v2296_v38, %v5555_v45  ;;  %v2419_v26 = vmul.f32 %v2296_v38, %v5564_v4  ;;  %v2304_v23 = vrot.slane %v2217_v59, %v5035_v16 }
 0x486   : > { %v4678_v51 = vpack.c.bf16 %v2420_v29, %v2418_v19  ;;  %v2424_v54 = vmul.f32 %v2308_v13, %v5566_v5  ;;  %v2316_v46 = vrot.slane %v2219_v25, %v5029_v10  ;;  %v2216_v41 = vrot.slane %v2188_v42, %v5090_v60 }
 0x487   : > { %4665 = vmatpush1.bf16.msra.mxu1 %v4664_v6  ;;  %v2422_v6 = vmul.f32 %v2308_v13, %v5562_v3  ;;  %v4680_v31 = vpack.c.bf16 %v2419_v26, %v2417_v63  ;;  %v2421_v28 = vmul.f32 %v2304_v23, %v5555_v45  ;;  %v2423_v1 = vmul.f32 %v2304_v23, %v5564_v4 }
 0x488   : > { %4667 = vmatprep.subr.bf16.mxu1 %v4666_v47  ;;  %v2324_v47 = vrot.slane %v2202_v2, %v5029_v10  ;;  %v2426_v8 = vmul.f32 %v2316_v46, %v5562_v3  ;;  %v2428_v14 = vmul.f32 %v2316_v46, %v5566_v5  ;;  %v2320_v62 = vrot.slane %v2202_v2, %v5035_v16 }
 0x489   : > { %v4682_v27 = vpack.c.bf16 %v2424_v54, %v2422_v6  ;;  %v2328_v29 = vrot.slane %v2216_v41, %v5035_v16  ;;  %vm6680_vm14 = vcmask 916480   ;;  %vm6682_vm5 = vcmask 924672  }
 0x48a   : > { %v2430_v44 = vmul.f32 %v2324_v47, %v5562_v3  ;;  %v2432_v49 = vmul.f32 %v2324_v47, %v5566_v5  ;;  %v4686_v7 = vpack.c.bf16 %v2428_v14, %v2426_v8  ;;  %v2429_v38 = vmul.f32 %v2320_v62, %v5555_v45  ;;  %vm6681_vm1 = vmmov %vm6680_vm14 }
 0x48b   : > { %4669 = vmatpush1.bf16.msra.mxu1 %v4668_v39  ;;  %v2312_v39 = vrot.slane %v2219_v25, %v5035_v16  ;;  %v2431_v19 = vmul.f32 %v2320_v62, %v5564_v4  ;;  %v2433_v63 = vmul.f32 %v2328_v29, %v5555_v45  ;;  %v2435_v26 = vmul.f32 %v2328_v29, %v5564_v4  ;;  %vm6683_vm12 = vmmov %vm6682_vm5 }
 0x48c   : > { %4671 = vmatprep.subr.bf16.mxu1 %v4670_v50  ;;  %v4684_v50 = vpack.c.bf16 %v2423_v1, %v2421_v28  ;;  %v4690_v60 = vpack.c.bf16 %v2432_v49, %v2430_v44  ;;  %vm6685_vm8 = vcmask 908288   ;;  %vm6643_vm0 = vcmask 588800  }
 0x48d   : > { %v2425_v35 = vmul.f32 %v2312_v39, %v5555_v45  ;;  %v2427_v59 = vmul.f32 %v2312_v39, %v5564_v4  ;;  %v4696_v47 = vpack.c.bf16 %v2435_v26, %v2433_v63  ;;  %vm6686_vm13 = vmmov %vm6685_vm8  ;;  %vm4864_vm9 = vmmov 0  }
 0x48e   : > { %vm2828_vm11 = vcmask 72704  }
 0x48f   : > { %4673 = vmatpush1.bf16.msra.mxu1 %v4672_v32  ;;  %v2332_v32 = vrot.slane %v2216_v41, %v5029_v10  ;;  %v4688_v15 = vpack.c.bf16 %v2427_v59, %v2425_v35  ;;  %v4839_v35 = vld [vmem:[%s6664_s7] sm:$0xff]  ;;  %s6632_s7 = smov 9  }
 0x490   : > { %4675 = vmatprep.subr.bf16.mxu1 %v4674_v9  ;;  %v2218_v9 = vcombine.high %v2202_v2, %v2202_v2  ;;  %v4692_v2 = vpack.c.bf16 %v2431_v19, %v2429_v38  ;;  %v2517_v19 = vld [vmem:[%s6679_s14] sm:$0xff]  ;;  %s4869_s14 = smov 3  }
 0x491   : > { %v2434_v13 = vmul.f32 %v2332_v32, %v5562_v3  ;;  %v2436_v25 = vmul.f32 %v2332_v32, %v5566_v5 }
 0x492   : > { %v2340_v42 = vrot.slane %v2218_v9, %v5029_v10  ;;  %v2336_v23 = vrot.slane %v2218_v9, %v5035_v16 }
 0x493   : > { %4677 = vmatpush1.bf16.msra.mxu1 %v4676_v36  ;;  %v2220_v36 = vcombine.high %v2216_v41, %v2216_v41 }
 0x494   : > { %4679 = vmatprep.subr.bf16.mxu1 %v4678_v51  ;;  %v4694_v51 = vpack.c.bf16 %v2436_v25, %v2434_v13  ;;  %v2438_v6 = vmul.f32 %v2340_v42, %v5562_v3  ;;  %v2440_v54 = vmul.f32 %v2340_v42, %v5566_v5  ;;  %v2439_v28 = vmul.f32 %v2336_v23, %v5564_v4 }
 0x495   : > { %v2348_v46 = vrot.slane %v2220_v36, %v5029_v10  ;;  %v2344_v1 = vrot.slane %v2220_v36, %v5035_v16 }
 0x496   : > { %v4698_v39 = vpack.c.bf16 %v2440_v54, %v2438_v6 }
 0x497   : > { %4681 = vmatpush1.bf16.msra.mxu1 %v4680_v31  ;;  %v2437_v31 = vmul.f32 %v2336_v23, %v5555_v45  ;;  %v2444_v8 = vmul.f32 %v2348_v46, %v5566_v5  ;;  %v2441_v41 = vmul.f32 %v2344_v1, %v5555_v45  ;;  %v2443_v44 = vmul.f32 %v2344_v1, %v5564_v4 }
 0x498   : > { %4683 = vmatprep.subr.bf16.mxu1 %v4682_v27  ;;  %v2442_v27 = vmul.f32 %v2348_v46, %v5562_v3  ;;  %v1927_v3 = vmax.f32 %v5489_v11, 0.0 }
 0x499   : > { %v4700_v14 = vpack.c.bf16 %v2439_v28, %v2437_v31 }
 0x49a   : > { %v4702_v49 = vpack.c.bf16 %v2444_v8, %v2442_v27  ;;  %v1928_v5 = vmin.f32 %v1927_v3, 1.0 }
 0x49b   : > { %4685 = vmatpush1.bf16.msra.mxu1 %v4684_v50  ;;  %v4704_v50 = vpack.c.bf16 %v2443_v44, %v2441_v41 }
 0x49c   : > { %4687 = vmatprep.subr.bf16.mxu1 %v4686_v7  ;;  %v4335_v59 = vrot.slane %v1928_v5, %v5230_v24 }
 0x49e   : > { %v4336_v62 = vcombine.high %v4335_v59, %v4335_v59  ;;  %v4337_v7 = vrot.slane %v4335_v59, 5 }
 0x49f   : > { %4689 = vmatpush1.bf16.msra.mxu1 %v4688_v15 }
 0x4a0   : > { %4691 = vmatprep.subr.bf16.mxu1 %v4690_v60  ;;  %v4338_v60 = vrot.slane %v4336_v62, 5 }
 0x4a3   : > { %4693 = vmatpush1.bf16.msra.mxu1 %v4692_v2 }
 0x4a4   : > { %4695 = vmatprep.subr.bf16.mxu1 %v4694_v51 }
 0x4a7   : > { %4697 = vmatpush1.bf16.msra.mxu1 %v4696_v47 }
 0x4a8   : > { %4699 = vmatprep.subr.bf16.mxu1 %v4698_v39 }
 0x4ab   : > { %4701 = vmatpush1.bf16.msra.mxu1 %v4700_v14 }
 0x4ac   : > { %4703 = vmatprep.subr.bf16.mxu1 %v4702_v49 }
 0x4af   : > { %4705 = vmatpush1.bf16.msra.mxu1 %v4704_v50 }
 0x4b2   : > { %2510 = vmatmul.mubr.f32.vlgmr.msra.gmra.mrb[8].mxu1 %v4839_v35 }
 0x585   : > { %v5700_v45 = vpop.f32.mrb[8].mxu1 }
 0x586   : > { %v5709_v4 = vpack.c.bf16 %v5700_v45, %v5700_v45  ;;  %v4324_v11 = vrot.slane %v5700_v45, 5  ;;  %v5712_v32 = vpop.f32.mrb[9].mxu1 }
 0x587   : > { %v5716_v24 = vpack.c.bf16 %v5712_v32, %v5712_v32  ;;  %v4325_v9 = vrot.slane %v5712_v32, 5 }
 0x588   : > { %v4343_v15 = vsel %vm6642_vm15, %v4324_v11, %v4337_v7  ;;  %2533 = vrot.lane.b32.xlu0 %v5709_v4, %s6624_s5 }
 0x589   : > { %4347 = vst [vmem:[%s5705_s9 + $0x10] sm:$0x1f] %v4343_v15  ;;  %v4344_v38 = vsel %vm6642_vm15, %v4325_v9, %v4338_v60  ;;  %2535 = vrot.lane.b32.xlu1 %v5716_v24, %s6624_s5  ;;  %s6636_s5 = smov 119   ;;  %vm3117_vm15 = vcmask 39936  }
 0x58a   : > { %4348 = vst [vmem:[%s5705_s9 + $0x18] sm:$0x1f] %v4344_v38 }
 0x58c   : > { %2522 = vrot.lane.b32.xlu0 %v5709_v4, %s6676_s2 }
 0x58d   : > { %2524 = vrot.lane.b32.xlu1 %v5716_v24, %s6676_s2 }
 0x590   : > { %2555 = vrot.lane.b32.xlu0 %v5709_v4, %s6669_s28 }
 0x591   : > { %2557 = vrot.lane.b32.xlu1 %v5716_v24, %s6669_s28 }
 0x594   : > { %2544 = vrot.lane.b32.xlu0 %v5709_v4, %s6677_s0 }
 0x595   : > { %2546 = vrot.lane.b32.xlu1 %v5716_v24, %s6677_s0 }
 0x598   : > { %2570 = vrot.lane.b32.xlu0 %v5716_v24, %s6670_s30 }
 0x599   : > { %2568 = vrot.lane.b32.xlu1 %v5709_v4, %s6670_s30 }
 0x59c   : > { %2592 = vrot.lane.b32.xlu0 %v5716_v24, %s6673_s4 }
 0x59d   : > { %2590 = vrot.lane.b32.xlu1 %v5709_v4, %s6673_s4 }
 0x5a0   : > { %2581 = vrot.lane.b32.xlu0 %v5716_v24, %s6671_s3 }
 0x5a1   : > { %2579 = vrot.lane.b32.xlu1 %v5709_v4, %s6671_s3 }
 0x5a4   : > { %2601 = vrot.lane.b32.xlu0 %v5709_v4, %s6678_s1 }
 0x5a5   : > { %2603 = vrot.lane.b32.xlu1 %v5716_v24, %s6678_s1 }
 0x5a8   : > { %2662 = vperm.xlu0 %4811, %v2517_v19  }
 0x5fa   : > { %v2534_v29 = vpop.permute.xlu0 %2533 }
 0x5fb   : > { %v2540_v13 = vsel %vm1430_vm2, 0, %v2534_v29  ;;  %v2536_v25 = vpop.permute.xlu1 %2535 }
 0x5fc   : > { %v2537_v42 = vsel %vm1430_vm2, %v2534_v29, %v2536_v25  ;;  %v2542_v2 = vmul.bf16 %v2540_v13, %v5291_v48 }
 0x5fd   : > { %v2543_v36 = vmul.bf16 %v2537_v42, %v5306_v56 }
 0x5fe   : > { %v2523_v63 = vpop.permute.xlu0 %2522  ;;  %v2614_v47 = vrot.slane %v2542_v2, 4  ;;  %v2567_v2 = vmul.bf16 %v5716_v24, %v5298_v53 }
 0x5ff   : > { %v2529_v26 = vsel %vm1397_vm4, 0, %v2523_v63  ;;  %v2525_v23 = vpop.permute.xlu1 %2524  ;;  %v2615_v54 = vrot.slane %v2543_v36, 4 }
 0x600   : > { %v2531_v51 = vmul.bf16 %v2529_v26, %v5312_v58  ;;  %v2526_v6 = vsel %vm1397_vm4, %v2523_v63, %v2525_v23 }
 0x601   : > { %v2532_v46 = vmul.bf16 %v2526_v6, %v5316_v61 }
 0x602   : > { %v2556_v31 = vpop.permute.xlu0 %2555  ;;  %v2630_v8 = vsel %vm1648_vm10, %v2531_v51, %v2614_v47  ;;  %v2566_v51 = vmul.bf16 %v5709_v4, %v5309_v57 }
 0x603   : > { %v2562_v28 = vsel %vm1478_vm6, 0, %v2556_v31  ;;  %v2558_v1 = vpop.permute.xlu1 %2557  ;;  %v2634_v39 = vsel %vm1648_vm10, %v2532_v46, %v2615_v54 }
 0x604   : > { %v2559_v27 = vsel %vm1478_vm6, %v2556_v31, %v2558_v1  ;;  %2675 = vmatprep.subr.bf16.mxu0 %v2634_v39  ;;  %v2564_v41 = vmul.bf16 %v2562_v28, %v5321_v33 }
 0x605   : > { %v2565_v14 = vmul.bf16 %v2559_v27, %v5325_v0  ;;  %2676 = vmatpush1.bf16.msra.mxu0 %v2630_v8 }
 0x606   : > { %v2545_v44 = vpop.permute.xlu0 %2544  ;;  %v2618_v62 = vrot.slane %v2564_v41, 4 }
 0x607   : > { %v2551_v49 = vsel %vm1457_vm3, 0, %v2545_v44  ;;  %v2547_v50 = vpop.permute.xlu1 %2546  ;;  %v2619_v5 = vrot.slane %v2565_v14, 4 }
 0x608   : > { %v2553_v35 = vmul.bf16 %v2551_v49, %v5295_v52  ;;  %v2548_v3 = vsel %vm1457_vm3, %v2545_v44, %v2547_v50  ;;  %v2734_v49 = vld [vmem:[%s6684_s26 + $0x80] sm:$0xff]  ;;  %v2735_v50 = vld [vmem:[%s6684_s26 + $0x88] sm:$0xff] }
 0x609   : > { %v2554_v59 = vmul.bf16 %v2548_v3, %v5302_v55 }
 0x60a   : > { %v2571_v7 = vpop.permute.xlu0 %2570  ;;  %v2638_v13 = vsel %vm1648_vm10, %v2553_v35, %v2618_v62 }
 0x60b   : > { %v2575_v60 = vsel %vm6644_vm7, %v2571_v7, 0  ;;  %v2569_v15 = vpop.permute.xlu1 %2568  ;;  %v2642_v38 = vsel %vm1648_vm10, %v2554_v59, %v2619_v5 }
 0x60c   : > { %v2578_v19 = vmul.bf16 %v2575_v60, %v5343_v21  ;;  %v2572_v29 = vsel %vm6644_vm7, %v2569_v15, %v2571_v7  ;;  %2677 = vmatprep.subr.bf16.mxu0 %v2642_v38  ;;  %v4706_v60 = vpack.c.bf16 %v2735_v50, %v2734_v49  ;;  %v2718_v15 = vld [vmem:[%s6684_s26] sm:$0xff]  ;;  %v2719_v38 = vld [vmem:[%s6684_s26 + $0x8] sm:$0xff]  ;;  %v2744_v49 = vld [vmem:[%s6684_s26 + $0xd0] sm:$0xff]  ;;  %vm3145_vm7 = vcmask 23552  }
 0x60d   : > { %v2577_v25 = vmul.bf16 %v2572_v29, %v5339_v20  ;;  %2678 = vmatpush1.bf16.msra.mxu0 %v2638_v13  ;;  %v2737_v29 = vld [vmem:[%s6684_s26 + $0x98] sm:$0xff] }
 0x60e   : > { %v2623_v42 = vrot.slane %v2578_v19, 4  ;;  %v2593_v36 = vpop.permute.xlu0 %2592  ;;  %v2736_v19 = vld [vmem:[%s6684_s26 + $0x90] sm:$0xff]  ;;  %v2745_v50 = vld [vmem:[%s6684_s26 + $0xd8] sm:$0xff] }
 0x60f   : > { %v2622_v63 = vrot.slane %v2577_v25, 4  ;;  %v2597_v26 = vsel %vm6680_vm14, %v2593_v36, 0  ;;  %v2591_v23 = vpop.permute.xlu1 %2590  ;;  %v2516_v25 = vld [vmem:[%s6687_s13] sm:$0xf]  ;;  %vm2842_vm14 = vcmask 64512   ;;  %s6698_s13 = smov 8  }
 0x610   : > { %v2600_v6 = vmul.bf16 %v2597_v26, %v5381_v18  ;;  %v2594_v54 = vsel %vm6681_vm1, %v2591_v23, %v2593_v36  ;;  %v2650_v46 = vsel %vm1648_vm10, %v2567_v2, %v2623_v42  ;;  %v4708_v42 = vpack.c.bf16 %v2719_v38, %v2718_v15  ;;  %v2720_v2 = vld [vmem:[%s6684_s26 + $0x10] sm:$0xff]  ;;  %v2738_v26 = vld [vmem:[%s6684_s26 + $0xa0] sm:$0xff]  ;;  %v2739_v23 = vld [vmem:[%s6684_s26 + $0xa8] sm:$0xff] }
 0x611   : > { %v2599_v47 = vmul.bf16 %v2594_v54, %v5377_v22  ;;  %2679 = vmatprep.subr.bf16.mxu0 %v2650_v46  ;;  %v2646_v31 = vsel %vm1648_vm10, %v2566_v51, %v2622_v63  ;;  %v4710_v36 = vpack.c.bf16 %v2737_v29, %v2736_v19  ;;  %v2721_v63 = vld [vmem:[%s6684_s26 + $0x18] sm:$0xff]  ;;  %v2722_v54 = vld [vmem:[%s6684_s26 + $0x20] sm:$0xff]  ;;  %v2723_v46 = vld [vmem:[%s6684_s26 + $0x28] sm:$0xff]  ;;  %vm2856_vm1 = vcmask 56320  }
 0x612   : > { %v2582_v28 = vpop.permute.xlu0 %2581  ;;  %2680 = vmatpush1.bf16.msra.mxu0 %v2646_v31  ;;  %v2627_v39 = vrot.slane %v2600_v6, 4  ;;  %v4712_v51 = vpack.c.bf16 %v2721_v63, %v2720_v2  ;;  %v4714_v6 = vpack.c.bf16 %v2739_v23, %v2738_v26  ;;  %v2741_v31 = vld [vmem:[%s6684_s26 + $0xb8] sm:$0xff]  ;;  %v2730_v38 = vld [vmem:[%s6684_s26 + $0x60] sm:$0xff]  ;;  %v2731_v19 = vld [vmem:[%s6684_s26 + $0x68] sm:$0xff] }
 0x613   : > { %v2586_v24 = vsel %vm6682_vm5, %v2582_v28, 0  ;;  %v2580_v1 = vpop.permute.xlu1 %2579  ;;  %v2626_v8 = vrot.slane %v2599_v47, 4  ;;  %v2740_v47 = vld [vmem:[%s6684_s26 + $0xb0] sm:$0xff]  ;;  %v4732_v29 = vpack.c.bf16 %v2731_v19, %v2730_v38  ;;  %v2733_v2 = vld [vmem:[%s6684_s26 + $0x78] sm:$0xff]  ;;  %vm2904_vm5 = vcmask 457728  }
 0x614   : > { %v2589_v27 = vmul.bf16 %v2586_v24, %v5360_v43  ;;  %v2583_v4 = vsel %vm6683_vm12, %v2580_v1, %v2582_v28  ;;  %v4716_v28 = vpack.c.bf16 %v2723_v46, %v2722_v54  ;;  %v4718_v24 = vpack.c.bf16 %v2741_v31, %v2740_v47  ;;  %v2724_v1 = vld [vmem:[%s6684_s26 + $0x30] sm:$0xff] }
 0x615   : > { %v2588_v14 = vmul.bf16 %v2583_v4, %v5357_v37  ;;  %v2743_v4 = vld [vmem:[%s6684_s26 + $0xc8] sm:$0xff]  ;;  %vm2882_vm12 = vcmask 515072  }
 0x616   : > { %v2602_v41 = vpop.permute.xlu0 %2601  ;;  %v2658_v44 = vsel %vm1648_vm10, %v2589_v27, %v2627_v39  ;;  %v2725_v39 = vld [vmem:[%s6684_s26 + $0x38] sm:$0xff]  ;;  %v2742_v27 = vld [vmem:[%s6684_s26 + $0xc0] sm:$0xff] }
 0x617   : > { %v2604_v35 = vpop.permute.xlu1 %2603  ;;  %2681 = vmatprep.subr.bf16.mxu0 %v2658_v44  ;;  %v2654_v3 = vsel %vm1648_vm10, %v2588_v14, %v2626_v8  ;;  %v4720_v8 = vpack.c.bf16 %v2725_v39, %v2724_v1  ;;  %v4722_v14 = vpack.c.bf16 %v2743_v4, %v2742_v27  ;;  %v2727_v44 = vld [vmem:[%s6684_s26 + $0x48] sm:$0xff]  ;;  %v4859_v39 = vmov 0.0  }
 0x618   : > { %v2605_v5 = vsel %vm6685_vm8, %v2602_v41, %v2604_v35  ;;  %v2608_v59 = vsel %vm6686_vm13, %v2604_v35, 0  ;;  %2682 = vmatpush1.bf16.msra.mxu0 %v2654_v3  ;;  %v2726_v41 = vld [vmem:[%s6684_s26 + $0x40] sm:$0xff]  ;;  %v4726_v3 = vpack.c.bf16 %v2745_v50, %v2744_v49  ;;  %vm2893_vm8 = vcmask 465920  }
 0x619   : > { %v2610_v62 = vmul.bf16 %v2605_v5, %v5396_v40  ;;  %v2611_v7 = vmul.bf16 %v2608_v59, %v5385_v30  ;;  %v4724_v35 = vpack.c.bf16 %v2727_v44, %v2726_v41  ;;  %v2728_v5 = vld [vmem:[%s6684_s26 + $0x50] sm:$0xff]  ;;  %v2729_v59 = vld [vmem:[%s6684_s26 + $0x58] sm:$0xff]  ;;  %vm2915_vm13 = vcmask 449536  }
 0x61b   : > { %4423 = vmatprep.subr.msk.bf16.mxu0 %vm1648_vm10, %v2611_v7  ;;  %v2670_v13 = vsel %vm1648_vm10, %v2610_v62, 0  ;;  %v2746_v62 = vld [vmem:[%s6684_s26 + $0xe0] sm:$0xff]  ;;  %v2747_v7 = vld [vmem:[%s6684_s26 + $0xe8] sm:$0xff] }
 0x61c   : > { %2684 = vmatpush1.bf16.msra.mxu0 %v2670_v13  ;;  %v4730_v15 = vpack.c.bf16 %v2747_v7, %v2746_v62  ;;  %v2748_v13 = vld [vmem:[%s6684_s26 + $0xf0] sm:$0xff] }
 0x61d   : > { %4707 = vmatprep.subr.bf16.mxu0 %v4706_v60  ;;  %v4728_v60 = vpack.c.bf16 %v2729_v59, %v2728_v5 }
 0x61f   : > { %4424 = vmatmul.mubr.msk.bf16.vlgmr.msra.gmra.mrb[4].mxu0 %vm6643_vm0, %v2516_v25  ;;  %v2749_v25 = vld [vmem:[%s6684_s26 + $0xf8] sm:$0xff] }
 0x620   : > { %4709 = vmatpush3.bf16.msra.mxu0 %v4708_v42  ;;  %v2732_v42 = vld [vmem:[%s6684_s26 + $0x70] sm:$0xff]  ;;  %s4867_s26 = smov 4  }
 0x621   : > { %4711 = vmatprep.subr.bf16.mxu0 %v4710_v36  ;;  %v4734_v36 = vpack.c.bf16 %v2749_v25, %v2748_v13  ;;  %v4736_v63 = vpack.c.bf16 %v2733_v2, %v2732_v42 }
 0x624   : > { %4713 = vmatpush3.bf16.msra.mxu0 %v4712_v51 }
 0x625   : > { %4715 = vmatprep.subr.bf16.mxu0 %v4714_v6 }
 0x627   : > { %v2663_v26 = vpop.permute.xlu0 %2662 }
 0x628   : > { %4717 = vmatpush3.bf16.msra.mxu0 %v4716_v28 }
 0x629   : > { %4719 = vmatprep.subr.bf16.mxu0 %v4718_v24 }
 0x62c   : > { %4721 = vmatpush3.bf16.msra.mxu0 %v4720_v8  ;;  %v2823_v8 = vld [vmem:[%s6688_s16 + $0x8] sm:$0xff] }
 0x62d   : > { %4723 = vmatprep.subr.bf16.mxu0 %v4722_v14  ;;  %v2822_v14 = vld [vmem:[%s6688_s16] sm:$0xff] }
 0x630   : > { %4725 = vmatpush3.bf16.msra.mxu0 %v4724_v35 }
 0x631   : > { %4727 = vmatprep.subr.bf16.mxu0 %v4726_v3 }
 0x634   : > { %4729 = vmatpush3.bf16.msra.mxu0 %v4728_v60 }
 0x635   : > { %4731 = vmatprep.subr.bf16.mxu0 %v4730_v15 }
 0x638   : > { %4733 = vmatpush3.bf16.msra.mxu0 %v4732_v29 }
 0x639   : > { %4735 = vmatprep.subr.bf16.mxu0 %v4734_v36 }
 0x63c   : > { %4737 = vmatpush3.bf16.msra.mxu0 %v4736_v63 }
 0x63d   : > { %4535 = vmatprep.subr.bf16.mxu0 %v4859_v39 }
 0x6f2   : > { %v2709_v23 = vpop.f32.mrb[4].mxu0 }
 0x6f3   : > { %v2710_v51 = vadd.f32 %v2709_v23, %v2663_v26  ;;  %v2711_v6 = vpop.f32.mrb[5].mxu0 }
 0x6f4   : > { %v2712_v54 = vadd.f32 %v2711_v6, %v2663_v26  ;;  %v2713_v46 = vpop.f32.mrb[6].mxu0 }
 0x6f5   : > { %v2714_v47 = vpop.f32.mrb[7].mxu0  ;;  %v5910_v28 = vmax.f32 %v2710_v51, 0.0 }
 0x6f6   : > { %v5908_v31 = vmax.f32 %v2712_v54, 0.0 }
 0x6f8   : > { %2814 = vmatprep.mubr.f32.mxu0 %v5908_v31 }
 0x6f9   : > { %2815 = vmatmul.mubr.f32.vlgmr.msra.gmra.mrb[2].mxu0 %v5910_v28 }
 0x6fa   : > { %4545 = vmatprep.mubr.msk.bf16.mxu0 %vm4864_vm9, %v4859_v39  ;;  %vm3023_vm9 = vcmask 523264  }
 0x7cc   : > { %v4488_v24 = vpop.f32.mrb[2].mxu0 }
 0x7cd   : > { %v4489_v1 = vpop.f32.mrb[3].mxu0 }
 0x7ce   : > { %v4490_v27 = vadd.f32 %v4489_v1, %v4488_v24 }
 0x7d0   : > { %v5915_v4 = vpack.c.bf16 %v4490_v27, %v4490_v27 }
 0x7d2   : > { %2826 = vrot.lane.b32.xlu0 %v5915_v4, %s6632_s7  ;;  %2840 = vrot.lane.b32.xlu1 %v5915_v4, %s6628_s11  ;;  %s6689_s7 = sld [smem:[#allocation8_spill]]  ;;  %s6696_s11 = smov 121  }
 0x7d6   : > { %2854 = vrot.lane.b32.xlu0 %v5915_v4, %s6634_s25  ;;  %2865 = vrot.lane.b32.xlu1 %v5915_v4, %s6669_s28  ;;  %s6690_s25 = sld [smem:[#allocation5_spill]] }
 0x7d8   : > { %v3015_v41 = vld [vmem:[%s6689_s7] sm:$0xff]  ;;  %v3016_v44 = vld [vmem:[%s6689_s7 + $0x8] sm:$0xff]  ;;  %v3017_v49 = vld [vmem:[%s6689_s7 + $0x10] sm:$0xff] }
 0x7d9   : > { %v4738_v50 = vpack.c.bf16 %v3016_v44, %v3015_v41  ;;  %v3018_v35 = vld [vmem:[%s6689_s7 + $0x18] sm:$0xff]  ;;  %v3019_v5 = vld [vmem:[%s6689_s7 + $0x20] sm:$0xff]  ;;  %v3020_v59 = vld [vmem:[%s6689_s7 + $0x28] sm:$0xff] }
 0x7da   : > { %2902 = vrot.lane.b32.xlu0 %v5915_v4, %s6630_s12  ;;  %2880 = vrot.lane.b32.xlu1 %v5915_v4, %s6670_s30  ;;  %v4742_v3 = vpack.c.bf16 %v3018_v35, %v3017_v49  ;;  %v4746_v62 = vpack.c.bf16 %v3020_v59, %v3019_v5  ;;  %s6697_s12 = smov 120  }
 0x7db   : > { %4739 = vmatprep.subr.bf16.mxu1 %v4738_v50 }
 0x7dc   : > { %4741 = vmatpush3.bf16.msra.mxu1 %v4738_v50  ;;  %v771_v7 = vld [vmem:[%s6690_s25] sm:$0xf] }
 0x7dd   : > { %4743 = vmatprep.subr.bf16.mxu1 %v4742_v3  ;;  %v2846_v60 = vshrl.u32 %v771_v7, 16  ;;  %v2833_v38 = vpack.i.b16 %v771_v7, %v771_v7 }
 0x7de   : > { %2913 = vrot.lane.b32.xlu0 %v5915_v4, %s6636_s5  ;;  %2891 = vrot.lane.b32.xlu1 %v5915_v4, %s6639_s6  ;;  %s4868_s5 = smov 5   ;;  %s6694_s6 = smov 9  }
 0x7df   : > { %v2847_v15 = vpack.i.b16 %v2846_v60, %v2846_v60  ;;  %v5965_v29 = vrot.slane %v2833_v38, %v5035_v16  ;;  %v5975_v51 = vrot.slane %v2833_v38, %v5029_v10  ;;  %v5993_v35 = vrot.slane %v2833_v38, %v5038_v17 }
 0x7e0   : > { %4745 = vmatpush3.bf16.msra.mxu1 %v4742_v3  ;;  %v6000_v60 = vrot.slane %v2833_v38, %v5032_v12 }
 0x7e1   : > { %4747 = vmatprep.subr.bf16.mxu1 %v4746_v62  ;;  %v5962_v19 = vrot.slane %v2847_v15, %v5035_v16  ;;  %v5971_v63 = vrot.slane %v2847_v15, %v5029_v10  ;;  %v5982_v27 = vrot.slane %v2847_v15, %v5038_v17  ;;  %v5989_v44 = vrot.slane %v2847_v15, %v5032_v12 }
 0x7e2   : > { %2958 = vperm.xlu0 %4811, %v2823_v8   ;;  %2953 = vperm.xlu1 %4812, %v2822_v14   ;;  %v772_v8 = vld [vmem:[%s6690_s25 + $0x4] sm:$0x1] }
 0x7e3   : > { %v2920_v59 = vpack.i.b16 %v772_v8, %v772_v8  ;;  %v3022_v8 = vld [vmem:[%s6689_s7 + $0x38] sm:$0xff] }
 0x7e4   : > { %4749 = vmatpush3.bf16.msra.mxu1 %v4746_v62 }
 0x844   : > { %v2827_v13 = vpop.permute.xlu0 %2826  ;;  %v2841_v25 = vpop.permute.xlu1 %2840 }
 0x845   : > { %v2830_v42 = vsel %vm2828_vm11, 0, %v2827_v13  ;;  %v2844_v36 = vsel %vm2842_vm14, 0, %v2841_v25 }
 0x846   : > { %v2853_v2 = vmul.bf16 %v5962_v19, %v2844_v36  ;;  %v2839_v26 = vmul.bf16 %v5965_v29, %v2830_v42  ;;  %v2879_v36 = vmul.bf16 %v5993_v35, %v5915_v4 }
 0x848   : > { %v2928_v23 = vrot.slane %v2853_v2, 4  ;;  %v2855_v6 = vpop.permute.xlu0 %2854  ;;  %v2866_v54 = vpop.permute.xlu1 %2865 }
 0x849   : > { %v2858_v46 = vsel %vm2856_vm1, 0, %v2855_v6  ;;  %v2868_v47 = vsel %vm1478_vm6, 0, %v2866_v54 }
 0x84a   : > { %v2874_v24 = vmul.bf16 %v5971_v63, %v2868_v47  ;;  %v2937_v1 = vsel %vm1648_vm10, %v2839_v26, %v2928_v23  ;;  %v2864_v14 = vmul.bf16 %v5975_v51, %v2858_v46  ;;  %v6008_v26 = vrot.slane %v2920_v59, %v5035_v16 }
 0x84b   : > { %4536 = vmatpush3.bf16.msra.mxu0 %v2937_v1  ;;  %v3021_v1 = vld [vmem:[%s6689_s7 + $0x30] sm:$0xff] }
 0x84c   : > { %v2930_v41 = vrot.slane %v2874_v24, 4  ;;  %v2903_v49 = vpop.permute.xlu0 %2902  ;;  %v2881_v50 = vpop.permute.xlu1 %2880  ;;  %4537 = vmatprep.subr.bf16.mxu0 %v4859_v39  ;;  %v4818_v24 = vld [vmem:[%s6691_s15] sm:$0xff]  }
 0x84d   : > { %v2906_v3 = vsel %vm2904_vm5, %v2903_v49, 0  ;;  %v2884_v5 = vsel %vm2882_vm12, %v2881_v50, 0 }
 0x84e   : > { %v2890_v62 = vmul.bf16 %v5982_v27, %v2884_v5  ;;  %v2941_v7 = vsel %vm1648_vm10, %v2864_v14, %v2930_v41  ;;  %v2912_v15 = vmul.bf16 %v5989_v44, %v2906_v3  ;;  %v4750_v14 = vpack.c.bf16 %v3022_v8, %v3021_v1 }
 0x84f   : > { %4538 = vmatpush3.bf16.msra.mxu0 %v2941_v7 }
 0x850   : > { %v2932_v13 = vrot.slane %v2890_v62, 4  ;;  %v2914_v25 = vpop.permute.xlu0 %2913  ;;  %v2892_v42 = vpop.permute.xlu1 %2891  ;;  %4539 = vmatprep.subr.bf16.mxu0 %v4859_v39  ;;  %v2934_v54 = vrot.slane %v2912_v15, 4  ;;  %4751 = vmatprep.subr.bf16.mxu1 %v4750_v14 }
 0x851   : > { %v2895_v2 = vsel %vm2893_vm8, %v2892_v42, 0  ;;  %v2917_v6 = vsel %vm2915_vm13, %v2914_v25, 0  ;;  %4753 = vmatpush3.bf16.msra.mxu1 %v4750_v14 }
 0x852   : > { %v2901_v38 = vmul.bf16 %v6000_v60, %v2895_v2  ;;  %v2945_v23 = vsel %vm1648_vm10, %v2879_v36, %v2932_v13  ;;  %v2926_v46 = vmul.bf16 %v6008_v26, %v2917_v6  ;;  %v3112_v6 = vld [vmem:[%s6591_s18 + $0x18] sm:$0xff] }
 0x853   : > { %4540 = vmatpush3.bf16.msra.mxu0 %v2945_v23  ;;  %v3109_v23 = vld [vmem:[%s6591_s18] sm:$0xff] }
 0x854   : > { %4541 = vmatprep.subr.bf16.mxu0 %v4859_v39  ;;  %v2949_v47 = vsel %vm1648_vm10, %v2901_v38, %v2934_v54  ;;  %v2970_v4 = vsel %vm1648_vm10, %v2926_v46, 0  ;;  %v3110_v38 = vld [vmem:[%s6591_s18 + $0x8] sm:$0xff]  ;;  %v3111_v54 = vld [vmem:[%s6591_s18 + $0x10] sm:$0xff] }
 0x855   : > { %v4819_v46 = vld [vmem:[%s6590_s17 + $0x4] ss:$8 sps:$4 sm:$0xff]  }
 0x857   : > { %4542 = vmatpush3.bf16.msra.mxu0 %v2949_v47 }
 0x858   : > { %4543 = vmatprep.subr.bf16.mxu0 %v4859_v39 }
 0x85b   : > { %4544 = vmatpush3.bf16.msra.mxu0 %v2970_v4 }
 0x85c   : > { %3259 = vmatprep.subr.bf16.mxu0 %v4856_v34 }
 0x85e   : > { %4546 = vmatmul.mubr.msk.bf16.vlgmr.msra.gmra.mrb[8].mxu0 %vm6643_vm0, %v4818_v24  ;;  %vm3131_vm0 = vcmask 31744  }
 0x85f   : > { %4433 = vmatprep.mubr.msk.bf16.mxu0 %vm1430_vm2, %v4819_v46 }
 0x861   : > { %v2954_v41 = vpop.permute.xlu1 %2953  ;;  %v2959_v5 = vpop.permute.xlu0 %2958 }
 0x931   : > { %v3006_v49 = vpop.f32.mrb[8].mxu0 }
 0x932   : > { %v3007_v50 = vadd.f32 %v3006_v49, %v2954_v41  ;;  %v4547_v3 = vpop.f32.mrb[9].mxu0 }
 0x933   : > { %v3009_v59 = vpop.f32.mrb[10].mxu0 }
 0x934   : > { %v3013_v62 = vmax.f32 %v3007_v50, 0.0  ;;  %v3010_v7 = vadd.f32 %v3009_v59, %v2959_v5  ;;  %v4548_v15 = vpop.f32.mrb[11].mxu0 }
 0x936   : > { %v3014_v13 = vmax.f32 %v3010_v7, 0.0  ;;  %4565 = vmatprep.mubr.msk.f32.mxu1 %vm3023_vm9, %v3013_v62 }
 0x938   : > { %v6030_v25 = vpack.c.bf16 %v3014_v13, %v3013_v62  ;;  %4566 = vmatmul.mubr.msk.f32.vlgmr.msra.gmra.mrb[10].mxu1 %vm3023_vm9, %v3014_v13 }
 0xa0b   : > { %v4567_v42 = vpop.f32.mrb[10].mxu1 }
 0xa0c   : > { %v3096_v36 = vpop.f32.mrb[11].mxu1 }
 0xa0d   : > { %v6033_v2 = vpack.c.bf16 %v4567_v42, %v3096_v36 }
 0xa0f   : > { %3129 = vrot.lane.b32.xlu0 %v6033_v2, %s4867_s26  ;;  %3115 = vrot.lane.b32.xlu1 %v6033_v2, %s4868_s5  ;;  %s6693_s26 = sld [smem:[#allocation9_spill]]  ;;  %s6699_s5 = smov 119  }
 0xa13   : > { %3154 = vrot.lane.b32.xlu0 %v6033_v2, %s6669_s28  ;;  %3143 = vrot.lane.b32.xlu1 %v6033_v2, %s4869_s14 }
 0xa15   : > { %v3312_v47 = vld [vmem:[%s6693_s26] sm:$0xff]  ;;  %v3313_v4 = vld [vmem:[%s6693_s26 + $0x8] sm:$0xff] }
 0xa16   : > { %v4754_v24 = vpack.c.bf16 %v3313_v4, %v3312_v47 }
 0xa17   : > { %3179 = vrot.lane.b32.xlu0 %v6033_v2, %s4870_s8  ;;  %3169 = vrot.lane.b32.xlu1 %v6033_v2, %s6670_s30  ;;  %s6701_s8 = sld [smem:[#allocation10_spill]] }
 0xa18   : > { %4755 = vmatprep.subr.bf16.mxu1 %v4754_v24 }
 0xa19   : > { %4757 = vmatpush3.bf16.msra.mxu1 %v4754_v24 }
 0xa1b   : > { %3201 = vrot.lane.b32.xlu0 %v6033_v2, %s4871_s27  ;;  %3190 = vrot.lane.b32.xlu1 %v6033_v2, %s4872_s10  ;;  %s6692_s27 = smov 7   ;;  %s6695_s10 = sld [smem:[#allocation6_spill]] }
 0xa1f   : > { %3222 = vperm.xlu0 %4811, %v3110_v38   ;;  %3217 = vperm.xlu1 %4812, %v3109_v23  }
 0xa21   : > { %v773_v1 = vld [vmem:[%s6695_s10] sm:$0xf] }
 0xa22   : > { %v3135_v8 = vshrl.u32 %v773_v1, 16  ;;  %v3122_v14 = vpack.i.b16 %v773_v1, %v773_v1 }
 0xa23   : > { %3232 = vperm.xlu0 %4811, %v3112_v6   ;;  %3227 = vperm.xlu1 %4812, %v3111_v54  }
 0xa24   : > { %v3136_v41 = vpack.i.b16 %v3135_v8, %v3135_v8  ;;  %v3127_v49 = vrot.slane %v3122_v14, %v5035_v16  ;;  %v3152_v42 = vrot.slane %v3122_v14, %v5029_v10  ;;  %v3167_v47 = vrot.slane %v3122_v14, %v5038_v17 }
 0xa26   : > { %v3141_v59 = vrot.slane %v3136_v41, %v5035_v16  ;;  %v3162_v23 = vrot.slane %v3136_v41, %v5029_v10  ;;  %v3177_v24 = vrot.slane %v3136_v41, %v5038_v17  ;;  %v3168_v1 = vmul.bf16 %v3167_v47, %v6033_v2 }
 0xa27   : > { %3502 = vrot.lane.b32.xlu0 %v6030_v25, %s6670_s30  ;;  %3463 = vrot.lane.b32.xlu1 %v6030_v25, %s6692_s27 }
 0xa2b   : > { %3427 = vrot.lane.b32.xlu0 %v6030_v25, %s6694_s6 }
 0xa81   : > { %v3130_v50 = vpop.permute.xlu0 %3129  ;;  %v3116_v3 = vpop.permute.xlu1 %3115 }
 0xa82   : > { %v3119_v5 = vsel %vm3117_vm15, 0, %v3116_v3  ;;  %v3133_v7 = vsel %vm3131_vm0, 0, %v3130_v50  ;;  %vm3192_vm15 = vcmask 97280   ;;  %vm3203_vm0 = vcmask 89088  }
 0xa83   : > { %v3128_v62 = vmul.bf16 %v3127_v49, %v3119_v5  ;;  %v3142_v13 = vmul.bf16 %v3141_v59, %v3133_v7  ;;  %v3188_v49 = vrot.slane %v3122_v14, %v5032_v12  ;;  %v774_v5 = vld [vmem:[%s6695_s10 + $0x4] sm:$0x1] }
 0xa84   : > { %v3208_v2 = vpack.i.b16 %v774_v5, %v774_v5 }
 0xa85   : > { %3260 = vmatpush1.bf16.msra.mxu0 %v3128_v62  ;;  %v3144_v15 = vpop.permute.xlu1 %3143  ;;  %v3155_v38 = vpop.permute.xlu0 %3154  ;;  %v3199_v62 = vrot.slane %v3136_v41, %v5032_v12  ;;  %v4821_v12 = vld [vmem:[%s6590_s17] ss:$8 sps:$4 sm:$0xff]   ;;  %v4822_v41 = vld [vmem:[%s6590_s17 + $0x14] ss:$8 sps:$4 sm:$0xff]  }
 0xa86   : > { %3261 = vmatprep.subr.bf16.mxu0 %v4856_v34  ;;  %v3147_v36 = vsel %vm3145_vm7, 0, %v3144_v15  ;;  %v3157_v54 = vsel %vm1478_vm6, 0, %v3155_v38  ;;  %vm3181_vm7 = vcmask 105472  }
 0xa87   : > { %v3153_v6 = vmul.bf16 %v3152_v42, %v3147_v36  ;;  %v3163_v46 = vmul.bf16 %v3162_v23, %v3157_v54 }
 0xa89   : > { %3262 = vmatpush1.bf16.msra.mxu0 %v3142_v13  ;;  %v3170_v4 = vpop.permute.xlu1 %3169  ;;  %v3180_v10 = vpop.permute.xlu0 %3179  ;;  %v3213_v13 = vrot.slane %v3208_v2, %v5035_v16 }
 0xa8a   : > { %3263 = vmatprep.subr.bf16.mxu0 %v4856_v34  ;;  %v3172_v8 = vsel %vm1457_vm3, %v3170_v4, 0  ;;  %v3183_v3 = vsel %vm3181_vm7, %v3180_v10, 0  ;;  %vm3599_vm7 = vcmask 392192  }
 0xa8b   : > { %v3178_v50 = vmul.bf16 %v3177_v24, %v3172_v8  ;;  %v3189_v17 = vmul.bf16 %v3188_v49, %v3183_v3 }
 0xa8d   : > { %3264 = vmatpush1.bf16.msra.mxu0 %v3153_v6  ;;  %v3191_v59 = vpop.permute.xlu1 %3190  ;;  %v3202_v15 = vpop.permute.xlu0 %3201 }
 0xa8e   : > { %3265 = vmatprep.subr.bf16.mxu0 %v4856_v34  ;;  %v3194_v7 = vsel %vm3192_vm15, %v3191_v59, 0  ;;  %v3205_v36 = vsel %vm3203_vm0, %v3202_v15, 0  ;;  %vm6709_vm15 = vcmask 916480  }
 0xa8f   : > { %v3200_v42 = vmul.bf16 %v3199_v62, %v3194_v7  ;;  %v3214_v23 = vmul.bf16 %v3213_v13, %v3205_v36  ;;  %vm6710_vm0 = vmmov %vm6709_vm15 }
 0xa91   : > { %3266 = vmatpush1.bf16.msra.mxu0 %v3163_v46  ;;  %v4824_v46 = vld [vmem:[%s6590_s17 + $0x10] ss:$8 sps:$4 sm:$0xff]  }
 0xa92   : > { %3267 = vmatprep.subr.bf16.mxu0 %v4856_v34 }
 0xa95   : > { %3268 = vmatpush1.bf16.msra.mxu0 %v3168_v1 }
 0xa96   : > { %3269 = vmatprep.subr.bf16.mxu0 %v4856_v34 }
 0xa99   : > { %3270 = vmatpush1.bf16.msra.mxu0 %v3178_v50 }
 0xa9a   : > { %3271 = vmatprep.subr.bf16.mxu0 %v4856_v34 }
 0xa9d   : > { %3272 = vmatpush1.bf16.msra.mxu0 %v3189_v17 }
 0xa9e   : > { %v3218_v14 = vpop.permute.xlu1 %3217  ;;  %3273 = vmatprep.subr.bf16.mxu0 %v4856_v34  ;;  %v3223_v1 = vpop.permute.xlu0 %3222 }
 0xaa1   : > { %3274 = vmatpush1.bf16.msra.mxu0 %v3200_v42 }
 0xaa2   : > { %v3228_v38 = vpop.permute.xlu1 %3227  ;;  %3275 = vmatprep.subr.bf16.mxu0 %v4856_v34  ;;  %v3233_v2 = vpop.permute.xlu0 %3232 }
 0xaa5   : > { %3276 = vmatpush1.bf16.msra.mxu0 %v3214_v23 }
 0xaa6   : > { %v3464_v6 = vpop.permute.xlu1 %3463  ;;  %3644 = vmatprep.subr.bf16.mxu0 %v4856_v34 }
 0xaa7   : > { %v3472_v16 = vsel %vm2856_vm1, 0, %v3464_v6  ;;  %v4827_v6 = vld [vmem:[%s6592_s19 + $0x4] ss:$16 sps:$4 sm:$0xff]  }
 0xaa8   : > { %v3476_v54 = vmul.bf16 %v3472_v16, %v5975_v51  ;;  %3292 = vmatmul.mubr.bf16.vlgmr.msra.gmra.mrb[12].mxu0 %v4821_v12  ;;  %v3416_v16 = vld [vmem:[%s6593_s20 + $0x8] sm:$0xff] }
 0xaa9   : > { %4434 = vmatprep.mubr.msk.bf16.mxu0 %vm1430_vm2, %v4822_v41 }
 0xaaa   : > { %4513 = vmatprep.subr.bf16.mxu1 %v3476_v54  ;;  %v4830_v54 = vld [vmem:[%s6592_s19 + $0xc] ss:$16 sps:$4 sm:$0xff]  }
 0xab0   : > { %3300 = vmatmul.mubr.bf16.gmra.mrb[16].mxu0 %v4824_v46  ;;  %v6171_v46 = vpack.c.bf16 %v5908_v31, %v5908_v31  ;;  %v3503_v31 = vpop.permute.xlu0 %3502 }
 0xab1   : > { %4443 = vmatprep.mubr.msk.bf16.mxu0 %vm3599_vm7, %v4830_v54 }
 0xb7b   : > { %v3293_v47 = vpop.f32.mrb[12].mxu0 }
 0xb7c   : > { %v3294_v4 = vadd.f32 %v3293_v47, %v3218_v14  ;;  %v3295_v24 = vpop.f32.mrb[13].mxu0  ;;  %v3415_v47 = vld [vmem:[%s6593_s20] sm:$0xff] }
 0xb7d   : > { %v3296_v8 = vpop.f32.mrb[14].mxu0  ;;  %v3428_v24 = vpop.permute.xlu0 %3427 }
 0xb7e   : > { %v3308_v10 = vmax.f32 %v3294_v4, 0.0  ;;  %v3297_v49 = vadd.f32 %v3296_v8, %v3223_v1  ;;  %v3298_v50 = vpop.f32.mrb[15].mxu0  ;;  %v6184_v4 = vpack.c.bf16 %v5910_v28, %v5910_v28  ;;  %v3436_v54 = vsel %vm2828_vm11, 0, %v3428_v24 }
 0xb80   : > { %v3309_v3 = vmax.f32 %v3297_v49, 0.0  ;;  %4572 = vmatprep.mubr.msk.f32.mxu1 %vm1430_vm2, %v3308_v10 }
 0xb82   : > { %4573 = vmatmul.mubr.msk.f32.vlgmr.msra.gmra.mrb[12].mxu1 %vm1430_vm2, %v3309_v3 }
 0xb83   : > { %v3301_v5 = vpop.f32.mrb[16].mxu0 }
 0xb84   : > { %v3302_v59 = vadd.f32 %v3301_v5, %v3228_v38  ;;  %v3303_v17 = vpop.f32.mrb[17].mxu0 }
 0xb85   : > { %v3304_v62 = vpop.f32.mrb[18].mxu0 }
 0xb86   : > { %v3310_v7 = vmax.f32 %v3302_v59, 0.0  ;;  %v3305_v15 = vadd.f32 %v3304_v62, %v3233_v2  ;;  %v3306_v13 = vpop.f32.mrb[19].mxu0  ;;  %v3511_v62 = vsel %vm2882_vm12, %v3503_v31, 0 }
 0xb87   : > { %v3515_v13 = vmul.bf16 %v3511_v62, %v5982_v27 }
 0xb88   : > { %v3311_v14 = vmax.f32 %v3305_v15, 0.0  ;;  %4575 = vmatprep.mubr.msk.f32.mxu1 %vm1430_vm2, %v3310_v7 }
 0xb8a   : > { %4576 = vmatmul.mubr.msk.f32.gmra.mrb[14].mxu1 %vm1430_vm2, %v3311_v14 }
 0xb8b   : > { %3635 = vmatprep.mubr.bf16.mxu1 %v4827_v6 }
 0xc55   : > { %v4574_v42 = vpop.f32.mrb[12].mxu1 }
 0xc56   : > { %v3392_v36 = vpop.f32.mrb[13].mxu1 }
 0xc57   : > { %v6116_v23 = vpack.c.bf16 %v4574_v42, %v3392_v36 }
 0xc59   : > { %3516 = vrot.lane.b32.xlu1 %v6116_v23, %s6696_s11  ;;  %3423 = vrot.lane.b32.xlu0 %v6116_v23, %s6694_s6 }
 0xc5d   : > { %3477 = vrot.lane.b32.xlu0 %v6116_v23, %s6669_s28  ;;  %v4577_v38 = vpop.f32.mrb[14].mxu1 }
 0xc5e   : > { %v3402_v12 = vpop.f32.mrb[15].mxu1 }
 0xc5f   : > { %v6124_v41 = vpack.c.bf16 %v4577_v38, %v3402_v12 }
 0xc61   : > { %3518 = vrot.lane.b32.xlu0 %v6124_v41, %s6696_s11  ;;  %3500 = vrot.lane.b32.xlu1 %v6124_v41, %s6670_s30 }
 0xc65   : > { %3481 = vrot.lane.b32.xlu0 %v6030_v25, %s6669_s28  ;;  %3520 = vrot.lane.b32.xlu1 %v6030_v25, %s6696_s11 }
 0xc69   : > { %3534 = vrot.lane.b32.xlu0 %v6116_v23, %s6697_s12  ;;  %3425 = vrot.lane.b32.xlu1 %v6124_v41, %s6694_s6  ;;  %s6700_s6 = smov 16  }
 0xc6d   : > { %3536 = vrot.lane.b32.xlu0 %v6124_v41, %s6697_s12  ;;  %3479 = vrot.lane.b32.xlu1 %v6124_v41, %s6669_s28 }
 0xc71   : > { %3538 = vrot.lane.b32.xlu0 %v6030_v25, %s6697_s12  ;;  %3441 = vrot.lane.b32.xlu1 %v6116_v23, %s6698_s13 }
 0xc75   : > { %3552 = vrot.lane.b32.xlu0 %v6116_v23, %s6699_s5  ;;  %3443 = vrot.lane.b32.xlu1 %v6124_v41, %s6698_s13 }
 0xc79   : > { %3461 = vrot.lane.b32.xlu0 %v6124_v41, %s6692_s27  ;;  %3445 = vrot.lane.b32.xlu1 %v6030_v25, %s6698_s13 }
 0xc7d   : > { %3556 = vrot.lane.b32.xlu0 %v6030_v25, %s6699_s5  ;;  %3459 = vrot.lane.b32.xlu1 %v6116_v23, %s6692_s27 }
 0xc81   : > { %3577 = vperm.xlu0 %4811, %v3416_v16   ;;  %3498 = vrot.lane.b32.xlu1 %v6116_v23, %s6670_s30 }
 0xc85   : > { %3802 = vrot.lane.b32.xlu0 %v6171_v46, %s6676_s2  ;;  %3554 = vrot.lane.b32.xlu1 %v6124_v41, %s6699_s5 }
 0xc89   : > { %3824 = vrot.lane.b32.xlu0 %v6171_v46, %s6700_s6  ;;  %3572 = vperm.xlu1 %4812, %v3415_v47  }
 0xc8d   : > { %3800 = vrot.lane.b32.xlu1 %v6184_v4, %s6676_s2 }
 0xc91   : > { %3822 = vrot.lane.b32.xlu1 %v6184_v4, %s6700_s6 }
 0xccb   : > { %v3424_v1 = vpop.permute.xlu0 %3423  ;;  %v3517_v49 = vpop.permute.xlu1 %3516 }
 0xccc   : > { %v3430_v8 = vsel %vm2828_vm11, 0, %v3424_v1  ;;  %v3523_v14 = vsel %vm2893_vm8, %v3517_v49, 0 }
 0xccd   : > { %v3438_v10 = vmul.bf16 %v3430_v8, %v5965_v29  ;;  %v3531_v12 = vmul.bf16 %v3523_v14, %v6000_v60 }
 0xccf   : > { %4514 = vmatpush3.bf16.msra.mxu1 %v3438_v10  ;;  %v3478_v50 = vpop.permute.xlu0 %3477 }
 0xcd0   : > { %v3484_v3 = vsel %vm1478_vm6, 0, %v3478_v50  ;;  %v3440_v50 = vmul.bf16 %v3436_v54, %v5965_v29  ;;  %v3497_v54 = vmul.bf16 %v6030_v25, %v5993_v35 }
 0xcd1   : > { %v3492_v28 = vmul.bf16 %v3484_v3, %v5971_v63 }
 0xcd3   : > { %4515 = vmatprep.subr.bf16.mxu1 %v3492_v28  ;;  %v3519_v5 = vpop.permute.xlu0 %3518  ;;  %v3501_v59 = vpop.permute.xlu1 %3500 }
 0xcd4   : > { %v3508_v17 = vsel %vm2882_vm12, %v3501_v59, 0  ;;  %v3526_v16 = vsel %vm2893_vm8, %v3519_v5, 0 }
 0xcd5   : > { %v3514_v2 = vmul.bf16 %v3508_v17, %v5982_v27  ;;  %v3532_v10 = vmul.bf16 %v3526_v16, %v6000_v60 }
 0xcd7   : > { %v3482_v7 = vpop.permute.xlu0 %3481  ;;  %3645 = vmatpush1.bf16.msra.mxu0 %v3514_v2  ;;  %v3521_v15 = vpop.permute.xlu1 %3520 }
 0xcd8   : > { %3646 = vmatprep.subr.bf16.mxu0 %v4856_v34  ;;  %v3490_v1 = vsel %vm1478_vm6, 0, %v3482_v7  ;;  %v3529_v3 = vsel %vm2893_vm8, %v3521_v15, 0  ;;  %vm6706_vm8 = vcmask 924672  }
 0xcd9   : > { %v3494_v24 = vmul.bf16 %v3490_v1, %v5971_v63  ;;  %v3533_v17 = vmul.bf16 %v3529_v3, %v6000_v60  ;;  %vm6711_vm7 = vmmov %vm6706_vm8 }
 0xcdb   : > { %v3535_v42 = vpop.permute.xlu0 %3534  ;;  %3647 = vmatpush1.bf16.msra.mxu0 %v3515_v13  ;;  %v3426_v36 = vpop.permute.xlu1 %3425 }
 0xcdc   : > { %v3433_v38 = vsel %vm2828_vm11, 0, %v3426_v36  ;;  %3648 = vmatprep.subr.bf16.mxu0 %v4856_v34  ;;  %v3496_v36 = vmul.bf16 %v6124_v41, %v5993_v35  ;;  %vm4068_vm11 = vcmask 719872  }
 0xcdd   : > { %v3439_v6 = vmul.bf16 %v3433_v38, %v5965_v29  ;;  %v3541_v29 = vsel %vm2904_vm5, %v3535_v42, 0 }
 0xcde   : > { %v3549_v15 = vmul.bf16 %v3541_v29, %v5989_v44 }
 0xcdf   : > { %v3537_v47 = vpop.permute.xlu0 %3536  ;;  %4516 = vmatpush3.bf16.msra.mxu1 %v3439_v6  ;;  %3649 = vmatpush1.bf16.msra.mxu0 %v3531_v12  ;;  %v3480_v31 = vpop.permute.xlu1 %3479 }
 0xce0   : > { %v3487_v8 = vsel %vm1478_vm6, 0, %v3480_v31  ;;  %3650 = vmatprep.subr.bf16.mxu0 %v4856_v34  ;;  %v3544_v60 = vsel %vm2904_vm5, %v3537_v47, 0 }
 0xce1   : > { %v3493_v49 = vmul.bf16 %v3487_v8, %v5971_v63  ;;  %v3495_v63 = vmul.bf16 %v6116_v23, %v5993_v35  ;;  %v3550_v38 = vmul.bf16 %v3544_v60, %v5989_v44  ;;  %v3688_v8 = vld [vmem:[%s6701_s8 + $0x8] sm:$0xff]  ;;  %v3690_v35 = vld [vmem:[%s6701_s8 + $0x18] sm:$0xff] }
 0xce2   : > { %v4758_v3 = vpack.c.bf16 %v3690_v35, %v3688_v8 }
 0xce3   : > { %4517 = vmatprep.subr.bf16.mxu1 %v3493_v49  ;;  %3651 = vmatpush1.bf16.msra.mxu0 %v3532_v10  ;;  %v3442_v28 = vpop.permute.xlu1 %3441  ;;  %v3539_v5 = vpop.permute.xlu0 %3538 }
 0xce4   : > { %v3448_v59 = vsel %vm2842_vm14, 0, %v3442_v28  ;;  %4518 = vmatpush3.bf16.msra.mxu1 %v3440_v50  ;;  %3652 = vmatprep.subr.bf16.mxu0 %v4856_v34  ;;  %v3547_v6 = vsel %vm2904_vm5, %v3539_v5, 0  ;;  %v3689_v28 = vld [vmem:[%s6701_s8 + $0x10] sm:$0xff] }
 0xce5   : > { %v3456_v2 = vmul.bf16 %v3448_v59, %v5962_v19  ;;  %4519 = vmatprep.subr.bf16.mxu1 %v3494_v24  ;;  %v3551_v31 = vmul.bf16 %v3547_v6, %v5989_v44  ;;  %v3687_v24 = vld [vmem:[%s6701_s8] sm:$0xff] }
 0xce6   : > { %v4760_v29 = vpack.c.bf16 %v3689_v28, %v3687_v24 }
 0xce7   : > { %3653 = vmatpush1.bf16.msra.mxu0 %v3533_v17  ;;  %v3444_v62 = vpop.permute.xlu1 %3443  ;;  %v3553_v14 = vpop.permute.xlu0 %3552 }
 0xce8   : > { %v3451_v7 = vsel %vm2842_vm14, 0, %v3444_v62  ;;  %4520 = vmatpush3.bf16.msra.mxu1 %v3456_v2  ;;  %3654 = vmatprep.subr.bf16.mxu0 %v4856_v34  ;;  %v4825_v2 = vld [vmem:[%s6592_s19] ss:$16 sps:$4 sm:$0xff]  }
 0xce9   : > { %v3457_v13 = vmul.bf16 %v3451_v7, %v5962_v19  ;;  %4521 = vmatprep.subr.bf16.mxu1 %v3495_v63  ;;  %v4828_v7 = vld [vmem:[%s6592_s19 + $0x8] ss:$16 sps:$4 sm:$0xff]  }
 0xceb   : > { %3655 = vmatpush1.bf16.msra.mxu0 %v3549_v15  ;;  %v3446_v42 = vpop.permute.xlu1 %3445  ;;  %v3462_v47 = vpop.permute.xlu0 %3461  ;;  %v3692_v15 = vld [vmem:[%s6701_s8 + $0x28] sm:$0xff] }
 0xcec   : > { %v3454_v23 = vsel %vm2842_vm14, 0, %v3446_v42  ;;  %4522 = vmatpush3.bf16.msra.mxu1 %v3457_v13  ;;  %3656 = vmatprep.subr.bf16.mxu0 %v4856_v34  ;;  %v3469_v25 = vsel %vm2856_vm1, 0, %v3462_v47  ;;  %v3694_v13 = vld [vmem:[%s6701_s8 + $0x38] sm:$0xff]  ;;  %vm6702_vm14 = vcmask 1039360  }
 0xced   : > { %v3458_v12 = vmul.bf16 %v3454_v23, %v5962_v19  ;;  %4523 = vmatprep.subr.bf16.mxu1 %v3496_v36  ;;  %v3559_v19 = vsel %vm2915_vm13, %v3553_v14, 0  ;;  %v3475_v5 = vmul.bf16 %v3469_v25, %v5975_v51  ;;  %v4762_v60 = vpack.c.bf16 %v3694_v13, %v3692_v15  ;;  %v3693_v14 = vld [vmem:[%s6701_s8 + $0x30] sm:$0xff]  ;;  %v3698_v36 = vld [vmem:[%s6701_s8 + $0x58] sm:$0xff]  ;;  %v3695_v23 = vld [vmem:[%s6701_s8 + $0x40] sm:$0xff] }
 0xcee   : > { %v3567_v44 = vmul.bf16 %v3559_v19, %v6008_v26 }
 0xcef   : > { %3657 = vmatpush1.bf16.msra.mxu0 %v3550_v38  ;;  %v3460_v16 = vpop.permute.xlu1 %3459  ;;  %v3557_v59 = vpop.permute.xlu0 %3556 }
 0xcf0   : > { %v3466_v41 = vsel %vm2856_vm1, 0, %v3460_v16  ;;  %4524 = vmatpush3.bf16.msra.mxu1 %v3458_v12  ;;  %3658 = vmatprep.subr.bf16.mxu0 %v4856_v34  ;;  %v3565_v63 = vsel %vm2915_vm13, %v3557_v59, 0  ;;  %v3697_v12 = vld [vmem:[%s6701_s8 + $0x50] sm:$0xff]  ;;  %v3700_v16 = vld [vmem:[%s6701_s8 + $0x68] sm:$0xff]  ;;  %vm6703_vm1 = vmmov %vm6702_vm14 }
 0xcf1   : > { %v3474_v1 = vmul.bf16 %v3466_v41, %v5975_v51  ;;  %4525 = vmatprep.subr.bf16.mxu1 %v3497_v54  ;;  %v3569_v51 = vmul.bf16 %v3565_v63, %v6008_v26  ;;  %v4768_v6 = vpack.c.bf16 %v3697_v12, %v3695_v23  ;;  %v3702_v54 = vld [vmem:[%s6701_s8 + $0x78] sm:$0xff]  ;;  %v3699_v41 = vld [vmem:[%s6701_s8 + $0x60] sm:$0xff]  ;;  %vm6704_vm5 = vmmov %vm6703_vm1 }
 0xcf2   : > { %v4770_v47 = vpack.c.bf16 %v3702_v54, %v3700_v16 }
 0xcf3   : > { %3659 = vmatpush1.bf16.msra.mxu0 %v3551_v31  ;;  %v3499_v10 = vpop.permute.xlu1 %3498  ;;  %v3701_v31 = vld [vmem:[%s6701_s8 + $0x70] sm:$0xff] }
 0xcf4   : > { %v3505_v49 = vsel %vm2882_vm12, %v3499_v10, 0  ;;  %4526 = vmatpush3.bf16.msra.mxu1 %v3474_v1  ;;  %3660 = vmatprep.subr.bf16.mxu0 %v4856_v34  ;;  %v4772_v1 = vpack.c.bf16 %v3701_v31, %v3699_v41  ;;  %vm6705_vm12 = vmmov %vm6703_vm1 }
 0xcf5   : > { %v3513_v50 = vmul.bf16 %v3505_v49, %v5982_v27 }
 0xcf7   : > { %3661 = vmatpush1.bf16.msra.mxu0 %v3567_v44  ;;  %v3555_v17 = vpop.permute.xlu1 %3554  ;;  %4527 = vmatprep.subr.bf16.mxu1 %v3513_v50 }
 0xcf8   : > { %v3562_v27 = vsel %vm2915_vm13, %v3555_v17, 0  ;;  %4528 = vmatpush3.bf16.msra.mxu1 %v3475_v5  ;;  %3662 = vmatprep.subr.bf16.mxu0 %v4856_v34  ;;  %vm6707_vm13 = vmmov %vm6706_vm8 }
 0xcf9   : > { %v3568_v62 = vmul.bf16 %v3562_v27, %v6008_v26  ;;  %4759 = vmatprep.subr.bf16.mxu1 %v4758_v3  ;;  %v3691_v26 = vld [vmem:[%s6701_s8 + $0x20] sm:$0xff] }
 0xcfa   : > { %v4764_v42 = vpack.c.bf16 %v3693_v14, %v3691_v26  ;;  %v3787_v14 = vld [vmem:[%s6595_s22] sm:$0xff] }
 0xcfb   : > { %3636 = vmatmul.mubr.bf16.vlgmr.msra.gmra.mrb[16].mxu1 %v4825_v2  ;;  %3663 = vmatpush1.bf16.msra.mxu0 %v3568_v62 }
 0xcfc   : > { %3664 = vmatprep.subr.bf16.mxu0 %v4856_v34  ;;  %4761 = vmatpush1.bf16.msra.mxu1 %v4760_v29 }
 0xcfd   : > { %3773 = vmatprep.mubr.f32.mxu1 %v4859_v39  ;;  %4763 = vmatprep.subr.bf16.mxu1 %v4762_v60 }
 0xcff   : > { %3665 = vmatpush1.bf16.msra.mxu0 %v3569_v51 }
 0xd00   : > { %4765 = vmatpush1.bf16.msra.mxu1 %v4764_v42  ;;  %v3578_v3 = vpop.permute.xlu0 %3577 }
 0xd02   : > { %3677 = vmatmul.mubr.bf16.vlgmr.msra.gmra.mrb[20].mxu0 %v4828_v7 }
 0xd03   : > { %4311 = vmatprep.mubr.bf16.mxu0 %v4856_v34  ;;  %v3696_v34 = vld [vmem:[%s6701_s8 + $0x48] sm:$0xff] }
 0xd04   : > { %v4766_v38 = vpack.c.bf16 %v3698_v36, %v3696_v34  ;;  %v3803_v34 = vpop.permute.xlu0 %3802 }
 0xd06   : > { %4767 = vmatprep.subr.bf16.mxu1 %v4766_v38 }
 0xd07   : > { %4769 = vmatpush1.bf16.msra.mxu1 %v4768_v6 }
 0xd08   : > { %4771 = vmatprep.subr.bf16.mxu1 %v4770_v47  ;;  %v3573_v44 = vpop.permute.xlu1 %3572  ;;  %v3825_v23 = vpop.permute.xlu0 %3824 }
 0xd0b   : > { %4773 = vmatpush1.bf16.msra.mxu1 %v4772_v1 }
 0xd0c   : > { %v3801_v42 = vpop.permute.xlu1 %3800 }
 0xd10   : > { %v3823_v36 = vpop.permute.xlu1 %3822 }
 0xd11   : > { %v3827_v47 = vsel %vm1430_vm2, %v3823_v36, %v3825_v23 }
 0xdce   : > { %v4529_v19 = vpop.f32.mrb[16].mxu1 }
 0xdcf   : > { %v4530_v8 = vpop.f32.mrb[17].mxu1 }
 0xdd0   : > { %v4531_v35 = vadd.f32 %v4530_v8, %v4529_v19  ;;  %v4532_v25 = vpop.f32.mrb[18].mxu1  ;;  %v3805_v8 = vsel %vm1397_vm4, %v3801_v42, %v3803_v34 }
 0xdd1   : > { %v4533_v10 = vpop.f32.mrb[19].mxu1 }
 0xdd2   : > { %v4534_v49 = vadd.f32 %v4533_v10, %v4532_v25  ;;  %v3638_v50 = vadd.f32 %v4531_v35, %v3573_v44  ;;  %v3812_v10 = vsel %vm1397_vm4, 0, %v3801_v42  ;;  %v3839_v44 = vmul.bf16 %v3827_v47, %v5306_v56 }
 0xdd4   : > { %v3641_v59 = vadd.f32 %v4534_v49, %v3578_v3  ;;  %v3834_v49 = vsel %vm1430_vm2, 0, %v3823_v36 }
 0xdd5   : > { %v3678_v24 = vpop.f32.mrb[20].mxu0 }
 0xdd6   : > { %v3679_v28 = vadd.f32 %v3678_v24, %v3638_v50  ;;  %v3680_v5 = vpop.f32.mrb[21].mxu0 }
 0xdd7   : > { %v3681_v17 = vpop.f32.mrb[22].mxu0 }
 0xdd8   : > { %v3685_v2 = vmax.f32 %v3679_v28, 0.0  ;;  %v3682_v27 = vadd.f32 %v3681_v17, %v3641_v59  ;;  %v3683_v29 = vpop.f32.mrb[23].mxu0  ;;  %v3817_v28 = vmul.bf16 %v3805_v8, %v5316_v61  ;;  %v3816_v17 = vmul.bf16 %v3812_v10, %v5312_v58 }
 0xdda   : > { %4444 = vmatmul.mubr.msk.f32.vlgmr.msra.gmra.mrb[20].mxu1 %vm3023_vm9, %v3685_v2  ;;  %v3686_v62 = vmax.f32 %v3682_v27, 0.0  ;;  %v3838_v2 = vmul.bf16 %v3834_v49, %v5291_v48  ;;  %v3985_v27 = vrot.slane %v3839_v44, 4 }
 0xddb   : > { %3779 = vmatprep.mubr.f32.mxu1 %v4859_v39  ;;  %v6366_v39 = vld [vmem:[%s6594_s21] sm:$0xff] }
 0xddc   : > { %v4447_v26 = vcombine.high %v6366_v39, %v6366_v39 }
 0xdde   : > { %4445 = vmatmul.mubr.msk.f32.gmra.mrb[22].mxu1 %vm3023_vm9, %v3686_v62  ;;  %vm6708_vm9 = vmmov %vm6706_vm8 }
 0xddf   : > { %4449 = vmatprep.mubr.msk.bf16.mxu1 %vm4068_vm11, %v4447_v26  ;;  %vm6712_vm11 = vmmov %vm6710_vm0 }
 0xead   : > { %v3775_v63 = vpop.f32.mrb[20].mxu1 }
 0xeae   : > { %v3777_v51 = vpop.f32.mrb[21].mxu1 }
 0xeb1   : > { %v3781_v7 = vpop.f32.mrb[22].mxu1 }
 0xeb2   : > { %v6311_v15 = vpack.c.bf16 %v3781_v7, %v3775_v63  ;;  %v3783_v13 = vpop.f32.mrb[23].mxu1 }
 0xeb3   : > { %v6313_v60 = vpack.c.bf16 %v3783_v13, %v3777_v51  ;;  %v3983_v13 = vrot.slane %v3838_v2, 4 }
 0xeb4   : > { %3796 = vrot.lane.b32.xlu1 %v6311_v15, %s6676_s2 }
 0xeb5   : > { %3798 = vrot.lane.b32.xlu0 %v6313_v60, %s6676_s2 }
 0xeb8   : > { %3818 = vrot.lane.b32.xlu1 %v6311_v15, %s6700_s6 }
 0xeb9   : > { %3820 = vrot.lane.b32.xlu0 %v6313_v60, %s6700_s6 }
 0xebc   : > { %3844 = vrot.lane.b32.xlu1 %v6184_v4, %s6677_s0 }
 0xebd   : > { %3846 = vrot.lane.b32.xlu0 %v6171_v46, %s6677_s0 }
 0xec0   : > { %3840 = vrot.lane.b32.xlu1 %v6311_v15, %s6677_s0 }
 0xec1   : > { %3842 = vrot.lane.b32.xlu0 %v6313_v60, %s6677_s0 }
 0xec4   : > { %3862 = vrot.lane.b32.xlu1 %v6311_v15, %s6669_s28 }
 0xec5   : > { %3864 = vrot.lane.b32.xlu0 %v6313_v60, %s6669_s28 }
 0xec8   : > { %3866 = vrot.lane.b32.xlu1 %v6184_v4, %s6669_s28 }
 0xec9   : > { %3868 = vrot.lane.b32.xlu0 %v6171_v46, %s6669_s28 }
 0xecc   : > { %3894 = vrot.lane.b32.xlu1 %v6171_v46, %s6670_s30 }
 0xecd   : > { %3888 = vrot.lane.b32.xlu0 %v6311_v15, %s6670_s30 }
 0xed0   : > { %3890 = vrot.lane.b32.xlu1 %v6313_v60, %s6670_s30 }
 0xed1   : > { %3892 = vrot.lane.b32.xlu0 %v6184_v4, %s6670_s30 }
 0xed4   : > { %3916 = vrot.lane.b32.xlu1 %v6171_v46, %s6671_s3 }
 0xed5   : > { %3910 = vrot.lane.b32.xlu0 %v6311_v15, %s6671_s3 }
 0xed8   : > { %3912 = vrot.lane.b32.xlu1 %v6313_v60, %s6671_s3 }
 0xed9   : > { %3932 = vrot.lane.b32.xlu0 %v6311_v15, %s6673_s4 }
 0xedc   : > { %3934 = vrot.lane.b32.xlu1 %v6313_v60, %s6673_s4 }
 0xedd   : > { %3914 = vrot.lane.b32.xlu0 %v6184_v4, %s6671_s3 }
 0xee0   : > { %3938 = vrot.lane.b32.xlu1 %v6171_v46, %s6673_s4 }
 0xee1   : > { %3936 = vrot.lane.b32.xlu0 %v6184_v4, %s6673_s4 }
 0xee4   : > { %3956 = vrot.lane.b32.xlu1 %v6313_v60, %s6678_s1 }
 0xee5   : > { %3954 = vrot.lane.b32.xlu0 %v6311_v15, %s6678_s1 }
 0xee8   : > { %3958 = vrot.lane.b32.xlu1 %v6184_v4, %s6678_s1 }
 0xee9   : > { %3960 = vrot.lane.b32.xlu0 %v6171_v46, %s6678_s1 }
 0xeec   : > { %4059 = vperm.xlu1 %4812, %v3787_v14  }
 0xf26   : > { %v3797_v38 = vpop.permute.xlu1 %3796 }
 0xf27   : > { %v3809_v12 = vsel %vm1397_vm4, 0, %v3797_v38  ;;  %v3799_v6 = vpop.permute.xlu0 %3798 }
 0xf28   : > { %v3804_v16 = vsel %vm1397_vm4, %v3797_v38, %v3799_v6  ;;  %v3814_v41 = vmul.bf16 %v3809_v12, %v5312_v58 }
 0xf29   : > { %v3815_v54 = vmul.bf16 %v3804_v16, %v5316_v61 }
 0xf2a   : > { %v3819_v31 = vpop.permute.xlu1 %3818 }
 0xf2b   : > { %v3831_v1 = vsel %vm1430_vm2, 0, %v3819_v31  ;;  %4078 = vmatprep.subr.bf16.mxu1 %v3815_v54  ;;  %v3821_v19 = vpop.permute.xlu0 %3820 }
 0xf2c   : > { %v3836_v35 = vmul.bf16 %v3831_v1, %v5291_v48  ;;  %v3826_v25 = vsel %vm1430_vm2, %v3819_v31, %v3821_v19  ;;  %4079 = vmatpush1.bf16.msra.mxu1 %v3814_v41 }
 0xf2d   : > { %v3837_v50 = vmul.bf16 %v3826_v25, %v5306_v56 }
 0xf2e   : > { %v3981_v3 = vrot.slane %v3836_v35, 4  ;;  %v3845_v24 = vpop.permute.xlu1 %3844 }
 0xf2f   : > { %v3982_v5 = vrot.slane %v3837_v50, 4  ;;  %v3847_v59 = vpop.permute.xlu0 %3846  ;;  %v3856_v54 = vsel %vm1457_vm3, 0, %v3845_v24 }
 0xf30   : > { %v4027_v63 = vsel %vm1648_vm10, %v3816_v17, %v3981_v3  ;;  %v3984_v36 = vsel %vm1648_vm10, %v3981_v3, %v3983_v13  ;;  %v3849_v12 = vsel %vm1457_vm3, %v3845_v24, %v3847_v59  ;;  %v3860_v10 = vmul.bf16 %v3856_v54, %v5295_v52 }
 0xf31   : > { %v4031_v29 = vsel %vm1648_vm10, %v3817_v28, %v3982_v5  ;;  %v3986_v7 = vsel %vm1648_vm10, %v3982_v5, %v3985_v27  ;;  %v3861_v19 = vmul.bf16 %v3849_v12, %v5302_v55 }
 0xf32   : > { %v3841_v62 = vpop.permute.xlu1 %3840  ;;  %4080 = vmatprep.subr.bf16.mxu1 %v4031_v29 }
 0xf33   : > { %4081 = vmatpush1.bf16.msra.mxu1 %v4027_v63  ;;  %v3843_v51 = vpop.permute.xlu0 %3842  ;;  %v3853_v42 = vsel %vm1457_vm3, 0, %v3841_v62  ;;  %v3885_v63 = vmul.bf16 %v6313_v60, %v5298_v53 }
 0xf34   : > { %v3848_v26 = vsel %vm1457_vm3, %v3841_v62, %v3843_v51  ;;  %4082 = vmatprep.subr.bf16.mxu1 %v3986_v7  ;;  %v3858_v47 = vmul.bf16 %v3853_v42, %v5295_v52 }
 0xf35   : > { %v3859_v14 = vmul.bf16 %v3848_v26, %v5302_v55 }
 0xf36   : > { %v3863_v34 = vpop.permute.xlu1 %3862 }
 0xf37   : > { %v3875_v23 = vsel %vm1478_vm6, 0, %v3863_v34  ;;  %4083 = vmatpush1.bf16.msra.mxu1 %v3984_v36  ;;  %v3865_v38 = vpop.permute.xlu0 %3864  ;;  %v3884_v36 = vmul.bf16 %v6311_v15, %v5309_v57 }
 0xf38   : > { %v3880_v6 = vmul.bf16 %v3875_v23, %v5321_v33  ;;  %v3870_v16 = vsel %vm1478_vm6, %v3863_v34, %v3865_v38  ;;  %4084 = vmatprep.subr.bf16.mxu1 %v3859_v14 }
 0xf39   : > { %v3881_v41 = vmul.bf16 %v3870_v16, %v5325_v0 }
 0xf3a   : > { %v3993_v31 = vrot.slane %v3880_v6, 4  ;;  %v3867_v1 = vpop.permute.xlu1 %3866  ;;  %v3887_v6 = vmul.bf16 %v6171_v46, %v5298_v53 }
 0xf3b   : > { %v3994_v8 = vrot.slane %v3881_v41, 4  ;;  %v3878_v35 = vsel %vm1478_vm6, 0, %v3867_v1  ;;  %4085 = vmatpush1.bf16.msra.mxu1 %v3858_v47  ;;  %v3869_v25 = vpop.permute.xlu0 %3868  ;;  %v3886_v47 = vmul.bf16 %v6184_v4, %v5309_v57 }
 0xf3c   : > { %v3882_v49 = vmul.bf16 %v3878_v35, %v5321_v33  ;;  %v3871_v44 = vsel %vm1478_vm6, %v3867_v1, %v3869_v25  ;;  %v4035_v5 = vsel %vm1648_vm10, %v3860_v10, %v3993_v31 }
 0xf3d   : > { %v3883_v50 = vmul.bf16 %v3871_v44, %v5325_v0  ;;  %v4039_v3 = vsel %vm1648_vm10, %v3861_v19, %v3994_v8 }
 0xf3e   : > { %v3995_v24 = vrot.slane %v3882_v49, 4  ;;  %v3895_v28 = vpop.permute.xlu1 %3894  ;;  %4086 = vmatprep.subr.bf16.mxu1 %v4039_v3 }
 0xf3f   : > { %v3997_v59 = vrot.slane %v3883_v50, 4  ;;  %4087 = vmatpush1.bf16.msra.mxu1 %v4035_v5  ;;  %v3889_v17 = vpop.permute.xlu0 %3888  ;;  %v3904_v27 = vsel %vm6702_vm14, %v3895_v28, 0  ;;  %vm6713_vm14 = vmmov %vm6710_vm0 }
 0xf40   : > { %v3996_v62 = vsel %vm1648_vm10, %v3993_v31, %v3995_v24  ;;  %v3909_v34 = vmul.bf16 %v3904_v27, %v5343_v21 }
 0xf41   : > { %v3998_v2 = vsel %vm1648_vm10, %v3994_v8, %v3997_v59 }
 0xf42   : > { %v3891_v29 = vpop.permute.xlu1 %3890  ;;  %4088 = vmatprep.subr.bf16.mxu1 %v3998_v2  ;;  %v4009_v41 = vrot.slane %v3909_v34, 4 }
 0xf43   : > { %v3896_v51 = vsel %vm6703_vm1, %v3889_v17, %v3891_v29  ;;  %v3901_v7 = vsel %vm6704_vm5, %v3891_v29, 0  ;;  %4089 = vmatpush1.bf16.msra.mxu1 %v3996_v62  ;;  %v3893_v13 = vpop.permute.xlu0 %3892  ;;  %vm6714_vm1 = vcmask 908288  }
 0xf44   : > { %v3906_v26 = vmul.bf16 %v3896_v51, %v5339_v20  ;;  %v3907_v14 = vmul.bf16 %v3901_v7, %v5343_v21  ;;  %v3897_v42 = vsel %vm6705_vm12, %v3893_v13, %v3895_v28  ;;  %4090 = vmatprep.subr.bf16.mxu1 %v3885_v63  ;;  %vm6715_vm5 = vmmov %vm6714_vm1 }
 0xf45   : > { %v3908_v38 = vmul.bf16 %v3897_v42, %v5339_v20  ;;  %vm6716_vm12 = vmmov %vm6714_vm1 }
 0xf46   : > { %v4005_v23 = vrot.slane %v3906_v26, 4  ;;  %v4006_v60 = vrot.slane %v3907_v14, 4  ;;  %v3917_v12 = vpop.permute.xlu1 %3916 }
 0xf47   : > { %v3911_v16 = vpop.permute.xlu0 %3910  ;;  %4091 = vmatpush1.bf16.msra.mxu1 %v3884_v36  ;;  %v4007_v31 = vrot.slane %v3908_v38, 4  ;;  %v3926_v49 = vsel %vm6708_vm9, %v3917_v12, 0  ;;  %vm6723_vm9 = vmmov %vm6711_vm7 }
 0xf48   : > { %v4047_v54 = vsel %vm1648_vm10, %v3887_v6, %v4006_v60  ;;  %v4043_v15 = vsel %vm1648_vm10, %v3886_v47, %v4005_v23  ;;  %v4010_v35 = vsel %vm1648_vm10, %v4006_v60, %v4009_v41  ;;  %v3931_v17 = vmul.bf16 %v3926_v49, %v5360_v43 }
 0xf49   : > { %4092 = vmatprep.subr.bf16.mxu1 %v4047_v54  ;;  %v4008_v4 = vsel %vm1648_vm10, %v4005_v23, %v4007_v31 }
 0xf4a   : > { %v3913_v1 = vpop.permute.xlu1 %3912 }
 0xf4b   : > { %v3923_v19 = vsel %vm6706_vm8, %v3913_v1, 0  ;;  %v3933_v8 = vpop.permute.xlu0 %3932  ;;  %4093 = vmatpush1.bf16.msra.mxu1 %v4043_v15  ;;  %v3918_v46 = vsel %vm6707_vm13, %v3911_v16, %v3913_v1  ;;  %vm6717_vm8 = vmmov %vm6714_vm1 }
 0xf4c   : > { %4094 = vmatprep.subr.bf16.mxu1 %v4010_v35  ;;  %v3929_v25 = vmul.bf16 %v3923_v19, %v5360_v43  ;;  %v3928_v59 = vmul.bf16 %v3918_v46, %v5357_v37  ;;  %v4446_v46 = vcombine.low %v6366_v39, %v6366_v39  ;;  %v4122_v39 = vld [vmem:[%s6597_s24] sm:$0x7]  ;;  %vm6722_vm13 = vmmov %vm6711_vm7 }
 0xf4e   : > { %v3935_v10 = vpop.permute.xlu1 %3934 }
 0xf4f   : > { %v3940_v44 = vsel %vm6709_vm15, %v3933_v8, %v3935_v10  ;;  %v3945_v50 = vsel %vm6710_vm0, %v3935_v10, 0  ;;  %v3915_v3 = vpop.permute.xlu0 %3914  ;;  %4095 = vmatpush1.bf16.msra.mxu1 %v4008_v4  ;;  %vm6724_vm15 = vmmov %vm6714_vm1 }
 0xf50   : > { %v3950_v24 = vmul.bf16 %v3940_v44, %v5377_v22  ;;  %v3951_v28 = vmul.bf16 %v3945_v50, %v5381_v18  ;;  %v3919_v5 = vsel %vm6711_vm7, %v3915_v3, %v3917_v12  ;;  %4096 = vmatprep.subr.bf16.mxu1 %v3929_v25  ;;  %vm6726_vm7 = vcmask 588800  }
 0xf51   : > { %v3930_v29 = vmul.bf16 %v3919_v5, %v5357_v37 }
 0xf52   : > { %v4017_v2 = vrot.slane %v3950_v24, 4  ;;  %v4018_v27 = vrot.slane %v3951_v28, 4  ;;  %v3939_v62 = vpop.permute.xlu1 %3938 }
 0xf53   : > { %v3948_v63 = vsel %vm6712_vm11, %v3939_v62, 0  ;;  %v3937_v51 = vpop.permute.xlu0 %3936  ;;  %4097 = vmatpush1.bf16.msra.mxu1 %v3928_v59 }
 0xf54   : > { %v3953_v7 = vmul.bf16 %v3948_v63, %v5381_v18  ;;  %v3941_v13 = vsel %vm6713_vm14, %v3937_v51, %v3939_v62  ;;  %v4055_v26 = vsel %vm1648_vm10, %v3931_v17, %v4018_v27  ;;  %v4051_v36 = vsel %vm1648_vm10, %v3930_v29, %v4017_v2 }
 0xf55   : > { %v3952_v14 = vmul.bf16 %v3941_v13, %v5377_v22  ;;  %4098 = vmatprep.subr.bf16.mxu1 %v4055_v26 }
 0xf56   : > { %v4021_v42 = vrot.slane %v3953_v7, 4  ;;  %v3957_v34 = vpop.permute.xlu1 %3956 }
 0xf57   : > { %v4019_v23 = vrot.slane %v3952_v14, 4  ;;  %v3967_v60 = vsel %vm6714_vm1, %v3957_v34, 0  ;;  %v3955_v38 = vpop.permute.xlu0 %3954  ;;  %4099 = vmatpush1.bf16.msra.mxu1 %v4051_v36 }
 0xf58   : > { %v4022_v12 = vsel %vm1648_vm10, %v4018_v27, %v4021_v42  ;;  %v3973_v16 = vmul.bf16 %v3967_v60, %v5385_v30  ;;  %v3962_v54 = vsel %vm6715_vm5, %v3955_v38, %v3957_v34 }
 0xf59   : > { %4100 = vmatprep.subr.bf16.mxu1 %v4022_v12  ;;  %v4020_v6 = vsel %vm1648_vm10, %v4017_v2, %v4019_v23  ;;  %v3972_v15 = vmul.bf16 %v3962_v54, %v5396_v40 }
 0xf5a   : > { %v3959_v47 = vpop.permute.xlu1 %3958 }
 0xf5b   : > { %v3961_v41 = vpop.permute.xlu0 %3960  ;;  %4101 = vmatpush1.bf16.msra.mxu1 %v4020_v6 }
 0xf5c   : > { %v3963_v31 = vsel %vm6716_vm12, %v3959_v47, %v3961_v41  ;;  %v3970_v1 = vsel %vm6717_vm8, %v3961_v41, 0  ;;  %4102 = vmatprep.subr.bf16.mxu1 %v3973_v16 }
 0xf5d   : > { %v3975_v19 = vmul.bf16 %v3970_v1, %v5385_v30  ;;  %v3974_v8 = vmul.bf16 %v3963_v31, %v5396_v40 }
 0xf5f   : > { %4103 = vmatpush1.bf16.msra.mxu1 %v3972_v15  ;;  %v4073_v35 = vsel %vm1648_vm10, %v3974_v8, 0 }
 0xf60   : > { %4448 = vmatprep.subr.msk.bf16.mxu1 %vm1648_vm10, %v3975_v19 }
 0xf63   : > { %4105 = vmatpush1.bf16.msra.mxu1 %v4073_v35 }
 0xf66   : > { %4111 = vmatmul.mubr.bf16.vlgmr.msra.gmra.mrb[24].mxu1 %v4446_v46 }
 0xf6b   : > { %v4060_v25 = vpop.permute.xlu1 %4059 }
0x1039   : > { %v4112_v10 = vpop.f32.mrb[24].mxu1 }
0x103a   : > { %v4113_v4 = vadd.f32 %v4112_v10, %v4060_v25  ;;  %v4114_v49 = vpop.f32.mrb[25].mxu1 }
0x103b   : > { %v4115_v44 = vadd.f32 %v4114_v49, %v4060_v25  ;;  %v4116_v50 = vpop.f32.mrb[26].mxu1 }
0x103c   : > { %v4119_v3 = vmax.f32 %v4113_v4, 0.0  ;;  %v4117_v24 = vpop.f32.mrb[27].mxu1 }
0x103d   : > { %v4120_v28 = vmax.f32 %v4115_v44, 0.0 }
0x103e   : > { %v6473_v5 = vpack.c.bf16 %v4119_v3, %v4119_v3 }
0x103f   : > { %v6475_v59 = vpack.c.bf16 %v4120_v28, %v4120_v28 }
0x1040   : > { %4138 = vrot.lane.b32.xlu0 %v6473_v5, %s6700_s6 }
0x1041   : > { %4140 = vrot.lane.b32.xlu1 %v6475_v59, %s6700_s6 }
0x1044   : > { %4127 = vrot.lane.b32.xlu0 %v6473_v5, %s6676_s2 }
0x1045   : > { %4129 = vrot.lane.b32.xlu1 %v6475_v59, %s6676_s2 }
0x1048   : > { %4160 = vrot.lane.b32.xlu0 %v6473_v5, %s6669_s28 }
0x1049   : > { %4162 = vrot.lane.b32.xlu1 %v6475_v59, %s6669_s28 }
0x104c   : > { %4149 = vrot.lane.b32.xlu0 %v6473_v5, %s6677_s0 }
0x104d   : > { %4151 = vrot.lane.b32.xlu1 %v6475_v59, %s6677_s0 }
0x1050   : > { %4175 = vrot.lane.b32.xlu0 %v6475_v59, %s6670_s30 }
0x1051   : > { %4173 = vrot.lane.b32.xlu1 %v6473_v5, %s6670_s30 }
0x1054   : > { %4197 = vrot.lane.b32.xlu0 %v6475_v59, %s6673_s4 }
0x1055   : > { %4195 = vrot.lane.b32.xlu1 %v6473_v5, %s6673_s4 }
0x1058   : > { %4186 = vrot.lane.b32.xlu0 %v6475_v59, %s6671_s3 }
0x1059   : > { %4184 = vrot.lane.b32.xlu1 %v6473_v5, %s6671_s3 }
0x105c   : > { %4206 = vrot.lane.b32.xlu0 %v6473_v5, %s6678_s1 }
0x105d   : > { %4208 = vrot.lane.b32.xlu1 %v6475_v59, %s6678_s1 }
0x1060   : > { %4267 = vperm.xlu0 %4811, %v4122_v39  }
0x10b2   : > { %v4139_v17 = vpop.permute.xlu0 %4138 }
0x10b3   : > { %v4145_v2 = vsel %vm1430_vm2, 0, %v4139_v17  ;;  %v4141_v27 = vpop.permute.xlu1 %4140 }
0x10b4   : > { %v4142_v29 = vsel %vm1430_vm2, %v4139_v17, %v4141_v27  ;;  %v4147_v63 = vmul.bf16 %v4145_v2, %v5291_v48  ;;  %vm6718_vm2 = vcmask 1039360  }
0x10b5   : > { %v4148_v62 = vmul.bf16 %v4142_v29, %v5306_v56 }
0x10b6   : > { %v4128_v51 = vpop.permute.xlu0 %4127  ;;  %v4219_v36 = vrot.slane %v4147_v63, 4 }
0x10b7   : > { %v4134_v7 = vsel %vm1397_vm4, 0, %v4128_v51  ;;  %v4130_v13 = vpop.permute.xlu1 %4129  ;;  %v4220_v42 = vrot.slane %v4148_v62, 4 }
0x10b8   : > { %v4136_v26 = vmul.bf16 %v4134_v7, %v5312_v58  ;;  %v4131_v14 = vsel %vm1397_vm4, %v4128_v51, %v4130_v13  ;;  %vm6719_vm4 = vmmov %vm6718_vm2 }
0x10b9   : > { %v4137_v34 = vmul.bf16 %v4131_v14, %v5316_v61 }
0x10ba   : > { %v4161_v23 = vpop.permute.xlu0 %4160  ;;  %v4235_v12 = vsel %vm1648_vm10, %v4136_v26, %v4219_v36  ;;  %v4121_v26 = vld [vmem:[%s6596_s23] sm:$0x3] }
0x10bb   : > { %v4167_v60 = vsel %vm1478_vm6, 0, %v4161_v23  ;;  %v4163_v38 = vpop.permute.xlu1 %4162  ;;  %v4239_v56 = vsel %vm1648_vm10, %v4137_v34, %v4220_v42 }
0x10bc   : > { %v4164_v48 = vsel %vm1478_vm6, %v4161_v23, %v4163_v38  ;;  %4279 = vmatprep.subr.bf16.mxu0 %v4239_v56  ;;  %v4169_v58 = vmul.bf16 %v4167_v60, %v5321_v33  ;;  %vm6721_vm6 = vmmov %vm6710_vm0 }
0x10bd   : > { %v4170_v6 = vmul.bf16 %v4164_v48, %v5325_v0  ;;  %4280 = vmatpush1.bf16.msra.mxu0 %v4235_v12 }
0x10be   : > { %v4150_v16 = vpop.permute.xlu0 %4149  ;;  %v4223_v15 = vrot.slane %v4169_v58, 4 }
0x10bf   : > { %v4156_v61 = vsel %vm1457_vm3, 0, %v4150_v16  ;;  %v4152_v54 = vpop.permute.xlu1 %4151  ;;  %v4224_v31 = vrot.slane %v4170_v6, 4 }
0x10c0   : > { %v4158_v47 = vmul.bf16 %v4156_v61, %v5295_v52  ;;  %v4153_v41 = vsel %vm1457_vm3, %v4150_v16, %v4152_v54  ;;  %vm6720_vm3 = vmmov %vm6710_vm0 }
0x10c1   : > { %v4159_v1 = vmul.bf16 %v4153_v41, %v5302_v55  ;;  %v4172_v55 = vmul.bf16 %v6475_v59, %v5298_v53  ;;  %vm6725_vm0 = vmmov %vm6714_vm1 }
0x10c2   : > { %v4176_v19 = vpop.permute.xlu0 %4175  ;;  %v4243_v25 = vsel %vm1648_vm10, %v4158_v47, %v4223_v15 }
0x10c3   : > { %v4180_v8 = vsel %vm6718_vm2, %v4176_v19, 0  ;;  %v4174_v35 = vpop.permute.xlu1 %4173  ;;  %v4247_v0 = vsel %vm1648_vm10, %v4159_v1, %v4224_v31 }
0x10c4   : > { %v4183_v33 = vmul.bf16 %v4180_v8, %v5343_v21  ;;  %v4177_v46 = vsel %vm6719_vm4, %v4174_v35, %v4176_v19  ;;  %4281 = vmatprep.subr.bf16.mxu0 %v4247_v0  ;;  %v4171_v21 = vmul.bf16 %v6473_v5, %v5309_v57 }
0x10c5   : > { %v4182_v52 = vmul.bf16 %v4177_v46, %v5339_v20  ;;  %4282 = vmatpush1.bf16.msra.mxu0 %v4243_v25 }
0x10c6   : > { %v4228_v10 = vrot.slane %v4183_v33, 4  ;;  %v4198_v4 = vpop.permute.xlu0 %4197 }
0x10c7   : > { %v4227_v49 = vrot.slane %v4182_v52, 4  ;;  %v4202_v44 = vsel %vm6720_vm3, %v4198_v4, 0  ;;  %v4196_v50 = vpop.permute.xlu1 %4195 }
0x10c8   : > { %v4205_v3 = vmul.bf16 %v4202_v44, %v5381_v18  ;;  %v4199_v24 = vsel %vm6721_vm6, %v4196_v50, %v4198_v4  ;;  %v4255_v28 = vsel %vm1648_vm10, %v4172_v55, %v4228_v10 }
0x10c9   : > { %v4204_v20 = vmul.bf16 %v4199_v24, %v5377_v22  ;;  %4283 = vmatprep.subr.bf16.mxu0 %v4255_v28  ;;  %v4251_v39 = vsel %vm1648_vm10, %v4171_v21, %v4227_v49 }
0x10ca   : > { %v4187_v17 = vpop.permute.xlu0 %4186  ;;  %4284 = vmatpush1.bf16.msra.mxu0 %v4251_v39  ;;  %v4232_v2 = vrot.slane %v4205_v3, 4 }
0x10cb   : > { %v4191_v53 = vsel %vm6722_vm13, %v4187_v17, 0  ;;  %v4185_v59 = vpop.permute.xlu1 %4184  ;;  %v4231_v18 = vrot.slane %v4204_v20, 4 }
0x10cc   : > { %v4194_v27 = vmul.bf16 %v4191_v53, %v5360_v43  ;;  %v4188_v57 = vsel %vm6723_vm9, %v4185_v59, %v4187_v17 }
0x10cd   : > { %v4193_v5 = vmul.bf16 %v4188_v57, %v5357_v37 }
0x10ce   : > { %v4207_v29 = vpop.permute.xlu0 %4206  ;;  %v4263_v62 = vsel %vm1648_vm10, %v4194_v27, %v4232_v2 }
0x10cf   : > { %v4209_v22 = vpop.permute.xlu1 %4208  ;;  %4285 = vmatprep.subr.bf16.mxu0 %v4263_v62  ;;  %v4259_v63 = vsel %vm1648_vm10, %v4193_v5, %v4231_v18 }
0x10d0   : > { %v4210_v51 = vsel %vm6724_vm15, %v4207_v29, %v4209_v22  ;;  %v4213_v7 = vsel %vm6725_vm0, %v4209_v22, 0  ;;  %4286 = vmatpush1.bf16.msra.mxu0 %v4259_v63 }
0x10d1   : > { %v4215_v13 = vmul.bf16 %v4210_v51, %v5396_v40  ;;  %v4216_v43 = vmul.bf16 %v4213_v7, %v5385_v30 }
0x10d3   : > { %4450 = vmatprep.subr.msk.bf16.mxu0 %vm1648_vm10, %v4216_v43  ;;  %v4274_v37 = vsel %vm1648_vm10, %v4215_v13, 0  ;;  %vm6727_vm10 = vcmask 1042432  }
0x10d4   : > { %4288 = vmatpush1.bf16.msra.mxu0 %v4274_v37  ;;  %vm6728_vm11 = vmmov %vm6727_vm10 }
0x10d7   : > { %4451 = vmatmul.mubr.msk.bf16.vlgmr.msra.gmra.mrb[24].mxu0 %vm6726_vm7, %v4121_v26 }
0x10df   : > { %v4268_v14 = vpop.permute.xlu0 %4267 }
0x11aa   : > { %v4313_v42 = vpop.f32.mrb[24].mxu0 }
0x11ab   : > { %v4314_v34 = vadd.f32 %v4313_v42, %v4268_v14  ;;  %v4315_v36 = vpop.f32.mrb[25].mxu0 }
0x11ac   : > { %v4316_v40 = vadd.f32 %v4315_v36, %v4268_v14  ;;  %v4317_v23 = vpop.f32.mrb[26].mxu0 }
0x11ad   : > { %4833 = vtanh.f32 %v4314_v34  ;;  %v4318_v30 = vpop.f32.mrb[27].mxu0 }
0x11ae   : > { %4835 = vtanh.f32 %v4316_v40 }
0x11b7   : > { %v4834_v60 = vpop.eup %4833 }
0x11b8   : > { %v4836_v38 = vpop.eup %4835  ;;  %v4341_v56 = vsel %vm6727_vm10, %v4834_v60, %v4324_v11 }
0x11b9   : > { %4345 = vst [vmem:[%s5705_s9] sm:$0xff] %v4341_v56  ;;  %v4342_v48 = vsel %vm6728_vm11, %v4836_v38, %v4325_v9 }
0x11ba   : > { %4346 = vst [vmem:[%s5705_s9 + $0x8] sm:$0xff] %v4342_v48 }
0x11bb PF: > { %s35_s29 = sadd.s32 1, %s4846_s29  }
0x11bc   : > { %p32_p4 = scmp.ge.s32.totalorder %s35_s29, 4  }
0x11be   :  { %34 = sbr.rel (!%p32_p4) target bundleno = 19 (0x13), region = 150 }

</bundles_post_ra>
